<compile_context>
chip_gen: v5e
topology: v5e:2x2
jax: 0.10.0
libtpu: 0.0.40
codegen_flags: <defaults>
</compile_context>

<pallas_src>
import functools

import numpy as np
import jax
import jax.numpy as jnp
from jax import lax
from jax.experimental import pallas as pl
from jax.experimental.pallas import tpu as pltpu

EPS = 1e-5
PAD = 16  # zero-separator rows between stacked images (also the vertical conv halo)


# ---------------------------------------------------------------------------
# Fused kernel: conv3x3->BN->ReLU (x3)  ||  conv1x1->BN  ->  add -> ReLU -> maxpool2x2
# One grid step processes B_TILE images stacked along the scratch row axis.
# ---------------------------------------------------------------------------
def _sepres_kernel(x_ref, w1_ref, w2_ref, w3_ref, wr_ref, sb_ref, sh_ref, sw_ref,
                   o_ref, px_ref, pa_ref, pb_ref, *, H, b_tile):
    # x_ref : (B_TILE, H, W*Cpin)             input images, lanes = (w, cin)
    # w*_ref: (3, W*Cpin(out), W*Cpout) bf16  per-ky banded conv weights
    #                                         (kx taps + groups + BN scale folded in)
    # wr_ref: (W*Cpin, W*Cpout)        bf16   block-diag 1x1 residual weight (BN-scaled)
    # sb_ref: (4, W*Cpout)             f32    rows: b1, b2, b3, br (folded BN bias)
    # sh_ref: (2, B_TILE*H/2, M)       bf16   row-pair (height) pooling selectors
    # sw_ref: (2, W*Cpout, (W/2)*Cpout) bf16  lane-pair (width) pooling selectors
    # o_ref : (B_TILE*H/2, (W/2)*Cpout)
    # p*_ref: (B_TILE*(H+PAD)+PAD, lanes) f32 zero-separated activation scratch
    f32, bf16 = jnp.float32, jnp.bfloat16
    P = PAD
    slot = H + P
    M = b_tile * slot - P          # rows covered by each conv dot (all images + gaps)

    # Zero only the separator / halo blocks (each an aligned (16, lanes) store).
    # Data rows are fully overwritten below, so no full-scratch memset.
    for ref in (px_ref, pa_ref, pb_ref):
        zeros_sep = jnp.zeros((P, ref.shape[1]), f32)
        for i in range(b_tile + 1):
            ref[i * slot:i * slot + P, :] = zeros_sep

    # Scatter the B_TILE input images into the zero-separated scratch.
    for i in range(b_tile):
        px_ref[P + i * slot:P + i * slot + H, :] = x_ref[i]

    def conv3x3(p_ref, w_ref, b_row, relu):
        # Three ky taps = three row-shifted (M,128)@(128,128) bf16 dots, f32 acc.
        acc = jnp.dot(p_ref[P - 1:P - 1 + M, :].astype(bf16), w_ref[0],
                      preferred_element_type=f32)
        acc = acc + jnp.dot(p_ref[P:P + M, :].astype(bf16), w_ref[1],
                            preferred_element_type=f32)
        acc = acc + jnp.dot(p_ref[P + 1:P + 1 + M, :].astype(bf16), w_ref[2],
                            preferred_element_type=f32)
        y = acc + b_row                      # BN scale is folded into the weights
        return jnp.maximum(y, 0.0) if relu else y

    y1 = conv3x3(px_ref, w1_ref, sb_ref[0:1, :], True)
    for i in range(b_tile):                  # store only data rows (keeps halos zero)
        pa_ref[P + i * slot:P + i * slot + H, :] = y1[i * slot:i * slot + H, :]

    y2 = conv3x3(pa_ref, w2_ref, sb_ref[1:2, :], True)
    for i in range(b_tile):
        pb_ref[P + i * slot:P + i * slot + H, :] = y2[i * slot:i * slot + H, :]

    y3 = conv3x3(pb_ref, w3_ref, sb_ref[2:3, :], False)

    # Residual 1x1 grouped conv + folded BN (reads the zero-separated input stack).
    r = jnp.dot(px_ref[P:P + M, :].astype(bf16), wr_ref[...],
                preferred_element_type=f32) + sb_ref[3:4, :]

    v = jnp.maximum(y3 + r, 0.0).astype(bf16)            # (M, W*Cpout)

    # 2x2 stride-2 max pool via exact 0/1 selector dots: rows, then width-lane groups.
    # The selectors pick only the data rows, so separator-row garbage never propagates.
    mh = jnp.maximum(
        jnp.dot(sh_ref[0], v, preferred_element_type=f32),
        jnp.dot(sh_ref[1], v, preferred_element_type=f32)).astype(bf16)
    o_ref[...] = jnp.maximum(
        jnp.dot(mh, sw_ref[0], preferred_element_type=f32),
        jnp.dot(mh, sw_ref[1], preferred_element_type=f32))


def sepres_block_pallas(x_nchw, params, *, cout):
    N, Cin, H, W = x_nchw.shape
    Hh, Wh = H // 2, W // 2
    Win = params["wr"].shape[0]              # W * Cpad_in
    Wout = params["wr"].shape[1]             # W * Cpad_out
    cpad_in, cpad_out = Win // W, Wout // W
    b_tile = params["sh"].shape[1] // Hh     # images per grid step (baked into sh)
    n_steps = -(-N // b_tile)
    Npad = n_steps * b_tile

    P = PAD
    R = b_tile * (H + P) + P                 # scratch rows
    M = b_tile * (H + P) - P                 # rows covered by each conv dot

    # NCHW -> (Npad, H, W*Cpad_in): pad batch to a multiple of b_tile and pad
    # channels so the lane dim is 128-dense.
    xt = jnp.transpose(x_nchw, (0, 2, 3, 1)).astype(jnp.float32)       # (N,H,W,Cin)
    xt = jnp.pad(xt, ((0, Npad - N), (0, 0), (0, 0), (0, cpad_in - Cin)))
    x2 = xt.reshape(Npad, H, Win)

    kernel = functools.partial(_sepres_kernel, H=H, b_tile=b_tile)
    out = pl.pallas_call(
        kernel,
        out_shape=jax.ShapeDtypeStruct((Npad * Hh, Wh * cpad_out), jnp.float32),
        grid=(n_steps,),
        in_specs=[
            pl.BlockSpec((b_tile, H, Win), lambda n: (n, 0, 0)),
            pl.BlockSpec((3, Win, Wout), lambda n: (0, 0, 0)),
            pl.BlockSpec((3, Wout, Wout), lambda n: (0, 0, 0)),
            pl.BlockSpec((3, Wout, Wout), lambda n: (0, 0, 0)),
            pl.BlockSpec((Win, Wout), lambda n: (0, 0)),
            pl.BlockSpec((4, Wout), lambda n: (0, 0)),
            pl.BlockSpec((2, b_tile * Hh, M), lambda n: (0, 0, 0)),
            pl.BlockSpec((2, Wout, Wh * cpad_out), lambda n: (0, 0, 0)),
        ],
        out_specs=pl.BlockSpec((b_tile * Hh, Wh * cpad_out), lambda n: (n, 0)),
        scratch_shapes=[
            pltpu.VMEM((R, Win), jnp.float32),
            pltpu.VMEM((R, Wout), jnp.float32),
            pltpu.VMEM((R, Wout), jnp.float32),
        ],
        compiler_params=pltpu.CompilerParams(
            dimension_semantics=("parallel",)),
    )(x2, params["w1"], params["w2"], params["w3"], params["wr"],
      params["sb"], params["sh"], params["sw"])

    # (Npad*Hh, Wh*Cpad_out) -> NCHW, dropping batch/channel padding.
    out = out.reshape(Npad, Hh, Wh, cpad_out)[:N, :, :, :cout]
    return jnp.transpose(out, (0, 3, 1, 2))


# ---------------------------------------------------------------------------
# Host-side parameter preparation (plain numpy/JAX glue)
# ---------------------------------------------------------------------------
def _dense_block_diag(w_grouped, cin, cout, G, cpad):
    """PyTorch grouped (cout, cin//G, kh, kw) -> dense (kh, kw, cpad, cpad) block-diag."""
    w_np = np.asarray(w_grouped, np.float32)
    kh, kw = w_np.shape[2], w_np.shape[3]
    cin_g, cout_g = cin // G, cout // G
    dense = np.zeros((kh, kw, cpad, cpad), np.float32)
    for g in range(G):
        blk = np.transpose(w_np[g * cout_g:(g + 1) * cout_g], (2, 3, 1, 0))
        dense[:, :, g * cin_g:(g + 1) * cin_g, g * cout_g:(g + 1) * cout_g] = blk
    return dense


def _pad_scale(bn_scale, cpad):
    s = np.zeros((cpad,), np.float32)
    s[:np.asarray(bn_scale).shape[0]] = np.asarray(bn_scale, np.float32)
    return s


def band_weight_3x3(w_grouped, cin, cout, G, W, cpad, bn_scale):
    """-> bf16 (3, W*cpad, W*cpad): kx taps + groups + BN scale folded into bands."""
    dense = _dense_block_diag(w_grouped, cin, cout, G, cpad)     # (3,3,cpad,cpad)
    dense = dense * _pad_scale(bn_scale, cpad)[None, None, None, :]
    band = np.zeros((3, W * cpad, W * cpad), np.float32)
    for ky in range(3):
        for kx in range(3):
            for w in range(W):
                wp = w + kx - 1
                if 0 <= wp < W:
                    band[ky, wp * cpad:(wp + 1) * cpad,
                         w * cpad:(w + 1) * cpad] = dense[ky, kx]
    return jnp.asarray(band, dtype=jnp.bfloat16)


def block_weight_1x1(w_grouped, cin, cout, G, W, cpad, bn_scale):
    dense = _dense_block_diag(w_grouped, cin, cout, G, cpad)[0, 0]   # (cpad,cpad)
    dense = dense * _pad_scale(bn_scale, cpad)[None, :]
    return jnp.asarray(np.kron(np.eye(W, dtype=np.float32), dense),
                       dtype=jnp.bfloat16)


def fold_bn(conv_bias, gamma, beta, mean, var):
    """Fold eval-mode BN (+ conv bias) into per-channel scale / bias."""
    scale = np.asarray(gamma, np.float32) / np.sqrt(np.asarray(var, np.float32) + EPS)
    bias = np.asarray(beta, np.float32) + scale * (np.asarray(conv_bias, np.float32)
                                                   - np.asarray(mean, np.float32))
    return scale.astype(np.float32), bias.astype(np.float32)


def tile_bias(bias, W, cpad):
    b = np.zeros((cpad,), np.float32)
    b[:bias.shape[0]] = bias
    return np.tile(b, W).astype(np.float32)


def pool_selectors(H, W, cpad, b_tile):
    """Exact 0/1 selection matrices implementing the 2x2/2 max-pool gathers (bf16)."""
    P = PAD
    slot = H + P
    M = b_tile * slot - P
    Hh, Wh = H // 2, W // 2
    sh = np.zeros((2, b_tile * Hh, M), np.float32)
    for i in range(b_tile):
        for ho in range(Hh):
            sh[0, i * Hh + ho, i * slot + 2 * ho] = 1.0
            sh[1, i * Hh + ho, i * slot + 2 * ho + 1] = 1.0
    sw = np.zeros((2, W * cpad, Wh * cpad), np.float32)
    for wo in range(Wh):
        for c in range(cpad):
            sw[0, (2 * wo) * cpad + c, wo * cpad + c] = 1.0
            sw[1, (2 * wo + 1) * cpad + c, wo * cpad + c] = 1.0
    return (jnp.asarray(sh, dtype=jnp.bfloat16),
            jnp.asarray(sw, dtype=jnp.bfloat16))


# ---------------------------------------------------------------------------
# Pure-JAX (lax) reference of the PyTorch module (eval-mode BN)
# ---------------------------------------------------------------------------
def sepres_block_ref(x, raw, G):
    def conv(y, w, b, pad):
        o = lax.conv_general_dilated(
            y, w, (1, 1), pad,
            dimension_numbers=("NCHW", "OIHW", "NCHW"),
            feature_group_count=G)
        return o + b[None, :, None, None]

    def bn(y, gamma, beta, mean, var):
        inv = gamma / jnp.sqrt(var + EPS)
        return (y - mean[None, :, None, None]) * inv[None, :, None, None] \
            + beta[None, :, None, None]

    pad3 = ((1, 1), (1, 1))
    pad1 = ((0, 0), (0, 0))
    h = jax.nn.relu(bn(conv(x, raw["cw1"], raw["cb1"], pad3), *raw["bn1"]))
    h = jax.nn.relu(bn(conv(h, raw["cw2"], raw["cb2"], pad3), *raw["bn2"]))
    h = bn(conv(h, raw["cw3"], raw["cb3"], pad3), *raw["bn3"])
    r = bn(conv(x, raw["cwr"], raw["cbr"], pad1), *raw["bnr"])
    o = jax.nn.relu(h + r)
    o = lax.reduce_window(o, -jnp.inf, lax.max,
                          (1, 1, 2, 2), (1, 1, 2, 2), "VALID")
    return o


# ---------------------------------------------------------------------------
if __name__ == "__main__":
    # channels divisible by groups=3; channels padded to CPAD=8 so W*C = 128.
    N, Cin, Cout, H, W, G = 16, 6, 6, 16, 16, 3
    B_TILE = 8          # images per grid step -> 2 grid steps (both v7x TCs busy)
    CPAD = 8

    key = jax.random.PRNGKey(0)
    keys = list(jax.random.split(key, 32))
    ki = iter(keys)

    def conv_params(cout, cin_g, ksize):
        w = 0.1 * jax.random.normal(next(ki), (cout, cin_g, ksize, ksize), jnp.float32)
        b = 0.1 * jax.random.normal(next(ki), (cout,), jnp.float32)
        return w, b

    def bn_params(c):
        gamma = 1.0 + 0.1 * jax.random.normal(next(ki), (c,), jnp.float32)
        beta = 0.1 * jax.random.normal(next(ki), (c,), jnp.float32)
        mean = 0.1 * jax.random.normal(next(ki), (c,), jnp.float32)
        var = 1.0 + 0.5 * jax.random.uniform(next(ki), (c,), jnp.float32)
        return gamma, beta, mean, var

    cw1, cb1 = conv_params(Cout, Cin // G, 3); bn1 = bn_params(Cout)
    cw2, cb2 = conv_params(Cout, Cout // G, 3); bn2 = bn_params(Cout)
    cw3, cb3 = conv_params(Cout, Cout // G, 3); bn3 = bn_params(Cout)
    cwr, cbr = conv_params(Cout, Cin // G, 1); bnr = bn_params(Cout)

    raw = dict(cw1=cw1, cb1=cb1, bn1=bn1, cw2=cw2, cb2=cb2, bn2=bn2,
               cw3=cw3, cb3=cb3, bn3=bn3, cwr=cwr, cbr=cbr, bnr=bnr)

    s1, b1 = fold_bn(cb1, *bn1)
    s2, b2 = fold_bn(cb2, *bn2)
    s3, b3 = fold_bn(cb3, *bn3)
    sr, br = fold_bn(cbr, *bnr)
    sb = jnp.asarray(np.stack([tile_bias(b1, W, CPAD), tile_bias(b2, W, CPAD),
                               tile_bias(b3, W, CPAD), tile_bias(br, W, CPAD)], 0))

    sh, sw = pool_selectors(H, W, CPAD, B_TILE)

    params = dict(
        w1=band_weight_3x3(cw1, Cin, Cout, G, W, CPAD, s1),
        w2=band_weight_3x3(cw2, Cout, Cout, G, W, CPAD, s2),
        w3=band_weight_3x3(cw3, Cout, Cout, G, W, CPAD, s3),
        wr=block_weight_1x1(cwr, Cin, Cout, G, W, CPAD, sr),
        sb=sb, sh=sh, sw=sw,
    )

    x_nchw = jax.random.normal(next(ki), (N, Cin, H, W), jnp.float32)

    fwd = jax.jit(functools.partial(sepres_block_pallas, cout=Cout))
    out = jax.block_until_ready(fwd(x_nchw, params))

    ref = jax.block_until_ready(sepres_block_ref(x_nchw, raw, G))
    np.testing.assert_allclose(np.asarray(out), np.asarray(ref),
                               rtol=3e-2, atol=3e-2)
    assert out.shape == (N, Cout, H // 2, W // 2)
    print("KERNEL_OK")
</pallas_src>

<mosaic_0001>
module attributes {stable_mosaic.version = 11 : i64} {
  func.func @_sepres_kernel(%arg0: i32, %arg1: memref<8x16x128xf32, #tpu.memory_space<vmem>>, %arg2: memref<3x128x128xbf16, #tpu.memory_space<vmem>>, %arg3: memref<3x128x128xbf16, #tpu.memory_space<vmem>>, %arg4: memref<3x128x128xbf16, #tpu.memory_space<vmem>>, %arg5: memref<128x128xbf16, #tpu.memory_space<vmem>>, %arg6: memref<4x128xf32, #tpu.memory_space<vmem>>, %arg7: memref<2x64x240xbf16, #tpu.memory_space<vmem>>, %arg8: memref<2x128x64xbf16, #tpu.memory_space<vmem>>, %arg9: memref<64x64xf32, #tpu.memory_space<vmem>>, %arg10: memref<272x128xf32, #tpu.memory_space<vmem>>, %arg11: memref<272x128xf32, #tpu.memory_space<vmem>>, %arg12: memref<272x128xf32, #tpu.memory_space<vmem>>) attributes {dimension_semantics = [#tpu.dimension_semantics<parallel>], iteration_bounds = array<i64: 2>, scalar_prefetch = 0 : i64, scratch_operands = 3 : i64, tpu.core_type = #tpu.core_type<tc>, window_params = [{transform_indices = @transform_0, window_bounds = array<i64: 8, 16, 128>}, {pipeline_mode = #tpu.pipeline_mode<synchronous>, transform_indices = @transform_1, window_bounds = array<i64: 3, 128, 128>}, {pipeline_mode = #tpu.pipeline_mode<synchronous>, transform_indices = @transform_2, window_bounds = array<i64: 3, 128, 128>}, {pipeline_mode = #tpu.pipeline_mode<synchronous>, transform_indices = @transform_3, window_bounds = array<i64: 3, 128, 128>}, {pipeline_mode = #tpu.pipeline_mode<synchronous>, transform_indices = @transform_4, window_bounds = array<i64: 128, 128>}, {pipeline_mode = #tpu.pipeline_mode<synchronous>, transform_indices = @transform_5, window_bounds = array<i64: 4, 128>}, {pipeline_mode = #tpu.pipeline_mode<synchronous>, transform_indices = @transform_6, window_bounds = array<i64: 2, 64, 240>}, {pipeline_mode = #tpu.pipeline_mode<synchronous>, transform_indices = @transform_7, window_bounds = array<i64: 2, 128, 64>}, {transform_indices = @transform_8, window_bounds = array<i64: 64, 64>}]} {
    %cst = arith.constant 0.000000e+00 : f32
    %0 = vector.broadcast %cst : f32 to vector<16x128xf32>
    %c0 = arith.constant 0 : index
    %c0_0 = arith.constant 0 : index
    %1 = vector.load %arg10[%c0, %c0_0] : memref<272x128xf32, #tpu.memory_space<vmem>>, vector<16x128xf32>
    tpu.vector_store %arg10[%c0, %c0_0], %0 {strides = array<i32>} : memref<272x128xf32, #tpu.memory_space<vmem>>, vector<16x128xf32>,
    %c32 = arith.constant 32 : index
    %c0_1 = arith.constant 0 : index
    %2 = vector.load %arg10[%c32, %c0_1] : memref<272x128xf32, #tpu.memory_space<vmem>>, vector<16x128xf32>
    tpu.vector_store %arg10[%c32, %c0_1], %0 {strides = array<i32>} : memref<272x128xf32, #tpu.memory_space<vmem>>, vector<16x128xf32>,
    %c64 = arith.constant 64 : index
    %c0_2 = arith.constant 0 : index
    %3 = vector.load %arg10[%c64, %c0_2] : memref<272x128xf32, #tpu.memory_space<vmem>>, vector<16x128xf32>
    tpu.vector_store %arg10[%c64, %c0_2], %0 {strides = array<i32>} : memref<272x128xf32, #tpu.memory_space<vmem>>, vector<16x128xf32>,
    %c96 = arith.constant 96 : index
    %c0_3 = arith.constant 0 : index
    %4 = vector.load %arg10[%c96, %c0_3] : memref<272x128xf32, #tpu.memory_space<vmem>>, vector<16x128xf32>
    tpu.vector_store %arg10[%c96, %c0_3], %0 {strides = array<i32>} : memref<272x128xf32, #tpu.memory_space<vmem>>, vector<16x128xf32>,
    %c128 = arith.constant 128 : index
    %c0_4 = arith.constant 0 : index
    %5 = vector.load %arg10[%c128, %c0_4] : memref<272x128xf32, #tpu.memory_space<vmem>>, vector<16x128xf32>
    tpu.vector_store %arg10[%c128, %c0_4], %0 {strides = array<i32>} : memref<272x128xf32, #tpu.memory_space<vmem>>, vector<16x128xf32>,
    %c160 = arith.constant 160 : index
    %c0_5 = arith.constant 0 : index
    %6 = vector.load %arg10[%c160, %c0_5] : memref<272x128xf32, #tpu.memory_space<vmem>>, vector<16x128xf32>
    tpu.vector_store %arg10[%c160, %c0_5], %0 {strides = array<i32>} : memref<272x128xf32, #tpu.memory_space<vmem>>, vector<16x128xf32>,
    %c192 = arith.constant 192 : index
    %c0_6 = arith.constant 0 : index
    %7 = vector.load %arg10[%c192, %c0_6] : memref<272x128xf32, #tpu.memory_space<vmem>>, vector<16x128xf32>
    tpu.vector_store %arg10[%c192, %c0_6], %0 {strides = array<i32>} : memref<272x128xf32, #tpu.memory_space<vmem>>, vector<16x128xf32>,
    %c224 = arith.constant 224 : index
    %c0_7 = arith.constant 0 : index
    %8 = vector.load %arg10[%c224, %c0_7] : memref<272x128xf32, #tpu.memory_space<vmem>>, vector<16x128xf32>
    tpu.vector_store %arg10[%c224, %c0_7], %0 {strides = array<i32>} : memref<272x128xf32, #tpu.memory_space<vmem>>, vector<16x128xf32>,
    %c256 = arith.constant 256 : index
    %c0_8 = arith.constant 0 : index
    %9 = vector.load %arg10[%c256, %c0_8] : memref<272x128xf32, #tpu.memory_space<vmem>>, vector<16x128xf32>
    tpu.vector_store %arg10[%c256, %c0_8], %0 {strides = array<i32>} : memref<272x128xf32, #tpu.memory_space<vmem>>, vector<16x128xf32>,
    %cst_9 = arith.constant 0.000000e+00 : f32
    %10 = vector.broadcast %cst_9 : f32 to vector<16x128xf32>
    %c0_10 = arith.constant 0 : index
    %c0_11 = arith.constant 0 : index
    %11 = vector.load %arg11[%c0_10, %c0_11] : memref<272x128xf32, #tpu.memory_space<vmem>>, vector<16x128xf32>
    tpu.vector_store %arg11[%c0_10, %c0_11], %10 {strides = array<i32>} : memref<272x128xf32, #tpu.memory_space<vmem>>, vector<16x128xf32>,
    %c32_12 = arith.constant 32 : index
    %c0_13 = arith.constant 0 : index
    %12 = vector.load %arg11[%c32_12, %c0_13] : memref<272x128xf32, #tpu.memory_space<vmem>>, vector<16x128xf32>
    tpu.vector_store %arg11[%c32_12, %c0_13], %10 {strides = array<i32>} : memref<272x128xf32, #tpu.memory_space<vmem>>, vector<16x128xf32>,
    %c64_14 = arith.constant 64 : index
    %c0_15 = arith.constant 0 : index
    %13 = vector.load %arg11[%c64_14, %c0_15] : memref<272x128xf32, #tpu.memory_space<vmem>>, vector<16x128xf32>
    tpu.vector_store %arg11[%c64_14, %c0_15], %10 {strides = array<i32>} : memref<272x128xf32, #tpu.memory_space<vmem>>, vector<16x128xf32>,
    %c96_16 = arith.constant 96 : index
    %c0_17 = arith.constant 0 : index
    %14 = vector.load %arg11[%c96_16, %c0_17] : memref<272x128xf32, #tpu.memory_space<vmem>>, vector<16x128xf32>
    tpu.vector_store %arg11[%c96_16, %c0_17], %10 {strides = array<i32>} : memref<272x128xf32, #tpu.memory_space<vmem>>, vector<16x128xf32>,
    %c128_18 = arith.constant 128 : index
    %c0_19 = arith.constant 0 : index
    %15 = vector.load %arg11[%c128_18, %c0_19] : memref<272x128xf32, #tpu.memory_space<vmem>>, vector<16x128xf32>
    tpu.vector_store %arg11[%c128_18, %c0_19], %10 {strides = array<i32>} : memref<272x128xf32, #tpu.memory_space<vmem>>, vector<16x128xf32>,
    %c160_20 = arith.constant 160 : index
    %c0_21 = arith.constant 0 : index
    %16 = vector.load %arg11[%c160_20, %c0_21] : memref<272x128xf32, #tpu.memory_space<vmem>>, vector<16x128xf32>
    tpu.vector_store %arg11[%c160_20, %c0_21], %10 {strides = array<i32>} : memref<272x128xf32, #tpu.memory_space<vmem>>, vector<16x128xf32>,
    %c192_22 = arith.constant 192 : index
    %c0_23 = arith.constant 0 : index
    %17 = vector.load %arg11[%c192_22, %c0_23] : memref<272x128xf32, #tpu.memory_space<vmem>>, vector<16x128xf32>
    tpu.vector_store %arg11[%c192_22, %c0_23], %10 {strides = array<i32>} : memref<272x128xf32, #tpu.memory_space<vmem>>, vector<16x128xf32>,
    %c224_24 = arith.constant 224 : index
    %c0_25 = arith.constant 0 : index
    %18 = vector.load %arg11[%c224_24, %c0_25] : memref<272x128xf32, #tpu.memory_space<vmem>>, vector<16x128xf32>
    tpu.vector_store %arg11[%c224_24, %c0_25], %10 {strides = array<i32>} : memref<272x128xf32, #tpu.memory_space<vmem>>, vector<16x128xf32>,
    %c256_26 = arith.constant 256 : index
    %c0_27 = arith.constant 0 : index
    %19 = vector.load %arg11[%c256_26, %c0_27] : memref<272x128xf32, #tpu.memory_space<vmem>>, vector<16x128xf32>
    tpu.vector_store %arg11[%c256_26, %c0_27], %10 {strides = array<i32>} : memref<272x128xf32, #tpu.memory_space<vmem>>, vector<16x128xf32>,
    %cst_28 = arith.constant 0.000000e+00 : f32
    %20 = vector.broadcast %cst_28 : f32 to vector<16x128xf32>
    %c0_29 = arith.constant 0 : index
    %c0_30 = arith.constant 0 : index
    %21 = vector.load %arg12[%c0_29, %c0_30] : memref<272x128xf32, #tpu.memory_space<vmem>>, vector<16x128xf32>
    tpu.vector_store %arg12[%c0_29, %c0_30], %20 {strides = array<i32>} : memref<272x128xf32, #tpu.memory_space<vmem>>, vector<16x128xf32>,
    %c32_31 = arith.constant 32 : index
    %c0_32 = arith.constant 0 : index
    %22 = vector.load %arg12[%c32_31, %c0_32] : memref<272x128xf32, #tpu.memory_space<vmem>>, vector<16x128xf32>
    tpu.vector_store %arg12[%c32_31, %c0_32], %20 {strides = array<i32>} : memref<272x128xf32, #tpu.memory_space<vmem>>, vector<16x128xf32>,
    %c64_33 = arith.constant 64 : index
    %c0_34 = arith.constant 0 : index
    %23 = vector.load %arg12[%c64_33, %c0_34] : memref<272x128xf32, #tpu.memory_space<vmem>>, vector<16x128xf32>
    tpu.vector_store %arg12[%c64_33, %c0_34], %20 {strides = array<i32>} : memref<272x128xf32, #tpu.memory_space<vmem>>, vector<16x128xf32>,
    %c96_35 = arith.constant 96 : index
    %c0_36 = arith.constant 0 : index
    %24 = vector.load %arg12[%c96_35, %c0_36] : memref<272x128xf32, #tpu.memory_space<vmem>>, vector<16x128xf32>
    tpu.vector_store %arg12[%c96_35, %c0_36], %20 {strides = array<i32>} : memref<272x128xf32, #tpu.memory_space<vmem>>, vector<16x128xf32>,
    %c128_37 = arith.constant 128 : index
    %c0_38 = arith.constant 0 : index
    %25 = vector.load %arg12[%c128_37, %c0_38] : memref<272x128xf32, #tpu.memory_space<vmem>>, vector<16x128xf32>
    tpu.vector_store %arg12[%c128_37, %c0_38], %20 {strides = array<i32>} : memref<272x128xf32, #tpu.memory_space<vmem>>, vector<16x128xf32>,
    %c160_39 = arith.constant 160 : index
    %c0_40 = arith.constant 0 : index
    %26 = vector.load %arg12[%c160_39, %c0_40] : memref<272x128xf32, #tpu.memory_space<vmem>>, vector<16x128xf32>
    tpu.vector_store %arg12[%c160_39, %c0_40], %20 {strides = array<i32>} : memref<272x128xf32, #tpu.memory_space<vmem>>, vector<16x128xf32>,
    %c192_41 = arith.constant 192 : index
    %c0_42 = arith.constant 0 : index
    %27 = vector.load %arg12[%c192_41, %c0_42] : memref<272x128xf32, #tpu.memory_space<vmem>>, vector<16x128xf32>
    tpu.vector_store %arg12[%c192_41, %c0_42], %20 {strides = array<i32>} : memref<272x128xf32, #tpu.memory_space<vmem>>, vector<16x128xf32>,
    %c224_43 = arith.constant 224 : index
    %c0_44 = arith.constant 0 : index
    %28 = vector.load %arg12[%c224_43, %c0_44] : memref<272x128xf32, #tpu.memory_space<vmem>>, vector<16x128xf32>
    tpu.vector_store %arg12[%c224_43, %c0_44], %20 {strides = array<i32>} : memref<272x128xf32, #tpu.memory_space<vmem>>, vector<16x128xf32>,
    %c256_45 = arith.constant 256 : index
    %c0_46 = arith.constant 0 : index
    %29 = vector.load %arg12[%c256_45, %c0_46] : memref<272x128xf32, #tpu.memory_space<vmem>>, vector<16x128xf32>
    tpu.vector_store %arg12[%c256_45, %c0_46], %20 {strides = array<i32>} : memref<272x128xf32, #tpu.memory_space<vmem>>, vector<16x128xf32>,
    %c0_47 = arith.constant 0 : index
    %c0_48 = arith.constant 0 : index
    %c0_49 = arith.constant 0 : index
    %30 = vector.load %arg1[%c0_47, %c0_48, %c0_49] : memref<8x16x128xf32, #tpu.memory_space<vmem>>, vector<1x16x128xf32>
    %31 = vector.shape_cast %30 : vector<1x16x128xf32> to vector<16x128xf32>
    %c16 = arith.constant 16 : index
    %c0_50 = arith.constant 0 : index
    %32 = vector.load %arg10[%c16, %c0_50] : memref<272x128xf32, #tpu.memory_space<vmem>>, vector<16x128xf32>
    tpu.vector_store %arg10[%c16, %c0_50], %31 {strides = array<i32>} : memref<272x128xf32, #tpu.memory_space<vmem>>, vector<16x128xf32>,
    %c1 = arith.constant 1 : index
    %c0_51 = arith.constant 0 : index
    %c0_52 = arith.constant 0 : index
    %33 = vector.load %arg1[%c1, %c0_51, %c0_52] : memref<8x16x128xf32, #tpu.memory_space<vmem>>, vector<1x16x128xf32>
    %34 = vector.shape_cast %33 : vector<1x16x128xf32> to vector<16x128xf32>
    %c48 = arith.constant 48 : index
    %c0_53 = arith.constant 0 : index
    %35 = vector.load %arg10[%c48, %c0_53] : memref<272x128xf32, #tpu.memory_space<vmem>>, vector<16x128xf32>
    tpu.vector_store %arg10[%c48, %c0_53], %34 {strides = array<i32>} : memref<272x128xf32, #tpu.memory_space<vmem>>, vector<16x128xf32>,
    %c2 = arith.constant 2 : index
    %c0_54 = arith.constant 0 : index
    %c0_55 = arith.constant 0 : index
    %36 = vector.load %arg1[%c2, %c0_54, %c0_55] : memref<8x16x128xf32, #tpu.memory_space<vmem>>, vector<1x16x128xf32>
    %37 = vector.shape_cast %36 : vector<1x16x128xf32> to vector<16x128xf32>
    %c80 = arith.constant 80 : index
    %c0_56 = arith.constant 0 : index
    %38 = vector.load %arg10[%c80, %c0_56] : memref<272x128xf32, #tpu.memory_space<vmem>>, vector<16x128xf32>
    tpu.vector_store %arg10[%c80, %c0_56], %37 {strides = array<i32>} : memref<272x128xf32, #tpu.memory_space<vmem>>, vector<16x128xf32>,
    %c3 = arith.constant 3 : index
    %c0_57 = arith.constant 0 : index
    %c0_58 = arith.constant 0 : index
    %39 = vector.load %arg1[%c3, %c0_57, %c0_58] : memref<8x16x128xf32, #tpu.memory_space<vmem>>, vector<1x16x128xf32>
    %40 = vector.shape_cast %39 : vector<1x16x128xf32> to vector<16x128xf32>
    %c112 = arith.constant 112 : index
    %c0_59 = arith.constant 0 : index
    %41 = vector.load %arg10[%c112, %c0_59] : memref<272x128xf32, #tpu.memory_space<vmem>>, vector<16x128xf32>
    tpu.vector_store %arg10[%c112, %c0_59], %40 {strides = array<i32>} : memref<272x128xf32, #tpu.memory_space<vmem>>, vector<16x128xf32>,
    %c4 = arith.constant 4 : index
    %c0_60 = arith.constant 0 : index
    %c0_61 = arith.constant 0 : index
    %42 = vector.load %arg1[%c4, %c0_60, %c0_61] : memref<8x16x128xf32, #tpu.memory_space<vmem>>, vector<1x16x128xf32>
    %43 = vector.shape_cast %42 : vector<1x16x128xf32> to vector<16x128xf32>
    %c144 = arith.constant 144 : index
    %c0_62 = arith.constant 0 : index
    %44 = vector.load %arg10[%c144, %c0_62] : memref<272x128xf32, #tpu.memory_space<vmem>>, vector<16x128xf32>
    tpu.vector_store %arg10[%c144, %c0_62], %43 {strides = array<i32>} : memref<272x128xf32, #tpu.memory_space<vmem>>, vector<16x128xf32>,
    %c5 = arith.constant 5 : index
    %c0_63 = arith.constant 0 : index
    %c0_64 = arith.constant 0 : index
    %45 = vector.load %arg1[%c5, %c0_63, %c0_64] : memref<8x16x128xf32, #tpu.memory_space<vmem>>, vector<1x16x128xf32>
    %46 = vector.shape_cast %45 : vector<1x16x128xf32> to vector<16x128xf32>
    %c176 = arith.constant 176 : index
    %c0_65 = arith.constant 0 : index
    %47 = vector.load %arg10[%c176, %c0_65] : memref<272x128xf32, #tpu.memory_space<vmem>>, vector<16x128xf32>
    tpu.vector_store %arg10[%c176, %c0_65], %46 {strides = array<i32>} : memref<272x128xf32, #tpu.memory_space<vmem>>, vector<16x128xf32>,
    %c6 = arith.constant 6 : index
    %c0_66 = arith.constant 0 : index
    %c0_67 = arith.constant 0 : index
    %48 = vector.load %arg1[%c6, %c0_66, %c0_67] : memref<8x16x128xf32, #tpu.memory_space<vmem>>, vector<1x16x128xf32>
    %49 = vector.shape_cast %48 : vector<1x16x128xf32> to vector<16x128xf32>
    %c208 = arith.constant 208 : index
    %c0_68 = arith.constant 0 : index
    %50 = vector.load %arg10[%c208, %c0_68] : memref<272x128xf32, #tpu.memory_space<vmem>>, vector<16x128xf32>
    tpu.vector_store %arg10[%c208, %c0_68], %49 {strides = array<i32>} : memref<272x128xf32, #tpu.memory_space<vmem>>, vector<16x128xf32>,
    %c7 = arith.constant 7 : index
    %c0_69 = arith.constant 0 : index
    %c0_70 = arith.constant 0 : index
    %51 = vector.load %arg1[%c7, %c0_69, %c0_70] : memref<8x16x128xf32, #tpu.memory_space<vmem>>, vector<1x16x128xf32>
    %52 = vector.shape_cast %51 : vector<1x16x128xf32> to vector<16x128xf32>
    %c240 = arith.constant 240 : index
    %c0_71 = arith.constant 0 : index
    %53 = vector.load %arg10[%c240, %c0_71] : memref<272x128xf32, #tpu.memory_space<vmem>>, vector<16x128xf32>
    tpu.vector_store %arg10[%c240, %c0_71], %52 {strides = array<i32>} : memref<272x128xf32, #tpu.memory_space<vmem>>, vector<16x128xf32>,
    %c0_72 = arith.constant 0 : index
    %c0_73 = arith.constant 0 : index
    %54 = vector.load %arg6[%c0_72, %c0_73] : memref<4x128xf32, #tpu.memory_space<vmem>>, vector<1x128xf32>
    %c15 = arith.constant 15 : index
    %c0_74 = arith.constant 0 : index
    %55 = vector.load %arg10[%c15, %c0_74] : memref<272x128xf32, #tpu.memory_space<vmem>>, vector<240x128xf32>
    %56 = arith.truncf %55 : vector<240x128xf32> to vector<240x128xbf16>
    %c0_75 = arith.constant 0 : index
    %c0_76 = arith.constant 0 : index
    %c0_77 = arith.constant 0 : index
    %57 = vector.load %arg2[%c0_75, %c0_76, %c0_77] : memref<3x128x128xbf16, #tpu.memory_space<vmem>>, vector<1x128x128xbf16>
    %58 = vector.shape_cast %57 : vector<1x128x128xbf16> to vector<128x128xbf16>
    %cst_78 = arith.constant dense<0.000000e+00> : vector<240x128xf32>
    %59 = tpu.matmul %56, %58, %cst_78 {dimension_numbers = #tpu.dot_dimension_numbers<[1], [0], [0], [1], [0, 0, 1, 1], [], []>} : vector<240x128xbf16>, vector<128x128xbf16>, vector<240x128xf32> -> vector<240x128xf32>
    %c16_79 = arith.constant 16 : index
    %c0_80 = arith.constant 0 : index
    %60 = vector.load %arg10[%c16_79, %c0_80] : memref<272x128xf32, #tpu.memory_space<vmem>>, vector<240x128xf32>
    %61 = arith.truncf %60 : vector<240x128xf32> to vector<240x128xbf16>
    %c1_81 = arith.constant 1 : index
    %c0_82 = arith.constant 0 : index
    %c0_83 = arith.constant 0 : index
    %62 = vector.load %arg2[%c1_81, %c0_82, %c0_83] : memref<3x128x128xbf16, #tpu.memory_space<vmem>>, vector<1x128x128xbf16>
    %63 = vector.shape_cast %62 : vector<1x128x128xbf16> to vector<128x128xbf16>
    %cst_84 = arith.constant dense<0.000000e+00> : vector<240x128xf32>
    %64 = tpu.matmul %61, %63, %cst_84 {dimension_numbers = #tpu.dot_dimension_numbers<[1], [0], [0], [1], [0, 0, 1, 1], [], []>} : vector<240x128xbf16>, vector<128x128xbf16>, vector<240x128xf32> -> vector<240x128xf32>
    %65 = arith.addf %59, %64 : vector<240x128xf32>
    %c17 = arith.constant 17 : index
    %c0_85 = arith.constant 0 : index
    %66 = vector.load %arg10[%c17, %c0_85] : memref<272x128xf32, #tpu.memory_space<vmem>>, vector<240x128xf32>
    %67 = arith.truncf %66 : vector<240x128xf32> to vector<240x128xbf16>
    %c2_86 = arith.constant 2 : index
    %c0_87 = arith.constant 0 : index
    %c0_88 = arith.constant 0 : index
    %68 = vector.load %arg2[%c2_86, %c0_87, %c0_88] : memref<3x128x128xbf16, #tpu.memory_space<vmem>>, vector<1x128x128xbf16>
    %69 = vector.shape_cast %68 : vector<1x128x128xbf16> to vector<128x128xbf16>
    %cst_89 = arith.constant dense<0.000000e+00> : vector<240x128xf32>
    %70 = tpu.matmul %67, %69, %cst_89 {dimension_numbers = #tpu.dot_dimension_numbers<[1], [0], [0], [1], [0, 0, 1, 1], [], []>} : vector<240x128xbf16>, vector<128x128xbf16>, vector<240x128xf32> -> vector<240x128xf32>
    %71 = arith.addf %65, %70 : vector<240x128xf32>
    %72 = vector.broadcast %54 : vector<1x128xf32> to vector<240x128xf32>
    %73 = arith.addf %71, %72 : vector<240x128xf32>
    %cst_90 = arith.constant 0.000000e+00 : f32
    %74 = vector.broadcast %cst_90 : f32 to vector<240x128xf32>
    %75 = arith.maximumf %73, %74 : vector<240x128xf32>
    %76 = vector.extract_strided_slice %75 {offsets = [0, 0], sizes = [16, 128], strides = [1, 1]} : vector<240x128xf32> to vector<16x128xf32>
    %c16_91 = arith.constant 16 : index
    %c0_92 = arith.constant 0 : index
    %77 = vector.load %arg11[%c16_91, %c0_92] : memref<272x128xf32, #tpu.memory_space<vmem>>, vector<16x128xf32>
    tpu.vector_store %arg11[%c16_91, %c0_92], %76 {strides = array<i32>} : memref<272x128xf32, #tpu.memory_space<vmem>>, vector<16x128xf32>,
    %78 = vector.extract_strided_slice %75 {offsets = [32, 0], sizes = [16, 128], strides = [1, 1]} : vector<240x128xf32> to vector<16x128xf32>
    %c48_93 = arith.constant 48 : index
    %c0_94 = arith.constant 0 : index
    %79 = vector.load %arg11[%c48_93, %c0_94] : memref<272x128xf32, #tpu.memory_space<vmem>>, vector<16x128xf32>
    tpu.vector_store %arg11[%c48_93, %c0_94], %78 {strides = array<i32>} : memref<272x128xf32, #tpu.memory_space<vmem>>, vector<16x128xf32>,
    %80 = vector.extract_strided_slice %75 {offsets = [64, 0], sizes = [16, 128], strides = [1, 1]} : vector<240x128xf32> to vector<16x128xf32>
    %c80_95 = arith.constant 80 : index
    %c0_96 = arith.constant 0 : index
    %81 = vector.load %arg11[%c80_95, %c0_96] : memref<272x128xf32, #tpu.memory_space<vmem>>, vector<16x128xf32>
    tpu.vector_store %arg11[%c80_95, %c0_96], %80 {strides = array<i32>} : memref<272x128xf32, #tpu.memory_space<vmem>>, vector<16x128xf32>,
    %82 = vector.extract_strided_slice %75 {offsets = [96, 0], sizes = [16, 128], strides = [1, 1]} : vector<240x128xf32> to vector<16x128xf32>
    %c112_97 = arith.constant 112 : index
    %c0_98 = arith.constant 0 : index
    %83 = vector.load %arg11[%c112_97, %c0_98] : memref<272x128xf32, #tpu.memory_space<vmem>>, vector<16x128xf32>
    tpu.vector_store %arg11[%c112_97, %c0_98], %82 {strides = array<i32>} : memref<272x128xf32, #tpu.memory_space<vmem>>, vector<16x128xf32>,
    %84 = vector.extract_strided_slice %75 {offsets = [128, 0], sizes = [16, 128], strides = [1, 1]} : vector<240x128xf32> to vector<16x128xf32>
    %c144_99 = arith.constant 144 : index
    %c0_100 = arith.constant 0 : index
    %85 = vector.load %arg11[%c144_99, %c0_100] : memref<272x128xf32, #tpu.memory_space<vmem>>, vector<16x128xf32>
    tpu.vector_store %arg11[%c144_99, %c0_100], %84 {strides = array<i32>} : memref<272x128xf32, #tpu.memory_space<vmem>>, vector<16x128xf32>,
    %86 = vector.extract_strided_slice %75 {offsets = [160, 0], sizes = [16, 128], strides = [1, 1]} : vector<240x128xf32> to vector<16x128xf32>
    %c176_101 = arith.constant 176 : index
    %c0_102 = arith.constant 0 : index
    %87 = vector.load %arg11[%c176_101, %c0_102] : memref<272x128xf32, #tpu.memory_space<vmem>>, vector<16x128xf32>
    tpu.vector_store %arg11[%c176_101, %c0_102], %86 {strides = array<i32>} : memref<272x128xf32, #tpu.memory_space<vmem>>, vector<16x128xf32>,
    %88 = vector.extract_strided_slice %75 {offsets = [192, 0], sizes = [16, 128], strides = [1, 1]} : vector<240x128xf32> to vector<16x128xf32>
    %c208_103 = arith.constant 208 : index
    %c0_104 = arith.constant 0 : index
    %89 = vector.load %arg11[%c208_103, %c0_104] : memref<272x128xf32, #tpu.memory_space<vmem>>, vector<16x128xf32>
    tpu.vector_store %arg11[%c208_103, %c0_104], %88 {strides = array<i32>} : memref<272x128xf32, #tpu.memory_space<vmem>>, vector<16x128xf32>,
    %90 = vector.extract_strided_slice %75 {offsets = [224, 0], sizes = [16, 128], strides = [1, 1]} : vector<240x128xf32> to vector<16x128xf32>
    %c240_105 = arith.constant 240 : index
    %c0_106 = arith.constant 0 : index
    %91 = vector.load %arg11[%c240_105, %c0_106] : memref<272x128xf32, #tpu.memory_space<vmem>>, vector<16x128xf32>
    tpu.vector_store %arg11[%c240_105, %c0_106], %90 {strides = array<i32>} : memref<272x128xf32, #tpu.memory_space<vmem>>, vector<16x128xf32>,
    %c1_107 = arith.constant 1 : index
    %c0_108 = arith.constant 0 : index
    %92 = vector.load %arg6[%c1_107, %c0_108] : memref<4x128xf32, #tpu.memory_space<vmem>>, vector<1x128xf32>
    %c15_109 = arith.constant 15 : index
    %c0_110 = arith.constant 0 : index
    %93 = vector.load %arg11[%c15_109, %c0_110] : memref<272x128xf32, #tpu.memory_space<vmem>>, vector<240x128xf32>
    %94 = arith.truncf %93 : vector<240x128xf32> to vector<240x128xbf16>
    %c0_111 = arith.constant 0 : index
    %c0_112 = arith.constant 0 : index
    %c0_113 = arith.constant 0 : index
    %95 = vector.load %arg3[%c0_111, %c0_112, %c0_113] : memref<3x128x128xbf16, #tpu.memory_space<vmem>>, vector<1x128x128xbf16>
    %96 = vector.shape_cast %95 : vector<1x128x128xbf16> to vector<128x128xbf16>
    %cst_114 = arith.constant dense<0.000000e+00> : vector<240x128xf32>
    %97 = tpu.matmul %94, %96, %cst_114 {dimension_numbers = #tpu.dot_dimension_numbers<[1], [0], [0], [1], [0, 0, 1, 1], [], []>} : vector<240x128xbf16>, vector<128x128xbf16>, vector<240x128xf32> -> vector<240x128xf32>
    %c16_115 = arith.constant 16 : index
    %c0_116 = arith.constant 0 : index
    %98 = vector.load %arg11[%c16_115, %c0_116] : memref<272x128xf32, #tpu.memory_space<vmem>>, vector<240x128xf32>
    %99 = arith.truncf %98 : vector<240x128xf32> to vector<240x128xbf16>
    %c1_117 = arith.constant 1 : index
    %c0_118 = arith.constant 0 : index
    %c0_119 = arith.constant 0 : index
    %100 = vector.load %arg3[%c1_117, %c0_118, %c0_119] : memref<3x128x128xbf16, #tpu.memory_space<vmem>>, vector<1x128x128xbf16>
    %101 = vector.shape_cast %100 : vector<1x128x128xbf16> to vector<128x128xbf16>
    %cst_120 = arith.constant dense<0.000000e+00> : vector<240x128xf32>
    %102 = tpu.matmul %99, %101, %cst_120 {dimension_numbers = #tpu.dot_dimension_numbers<[1], [0], [0], [1], [0, 0, 1, 1], [], []>} : vector<240x128xbf16>, vector<128x128xbf16>, vector<240x128xf32> -> vector<240x128xf32>
    %103 = arith.addf %97, %102 : vector<240x128xf32>
    %c17_121 = arith.constant 17 : index
    %c0_122 = arith.constant 0 : index
    %104 = vector.load %arg11[%c17_121, %c0_122] : memref<272x128xf32, #tpu.memory_space<vmem>>, vector<240x128xf32>
    %105 = arith.truncf %104 : vector<240x128xf32> to vector<240x128xbf16>
    %c2_123 = arith.constant 2 : index
    %c0_124 = arith.constant 0 : index
    %c0_125 = arith.constant 0 : index
    %106 = vector.load %arg3[%c2_123, %c0_124, %c0_125] : memref<3x128x128xbf16, #tpu.memory_space<vmem>>, vector<1x128x128xbf16>
    %107 = vector.shape_cast %106 : vector<1x128x128xbf16> to vector<128x128xbf16>
    %cst_126 = arith.constant dense<0.000000e+00> : vector<240x128xf32>
    %108 = tpu.matmul %105, %107, %cst_126 {dimension_numbers = #tpu.dot_dimension_numbers<[1], [0], [0], [1], [0, 0, 1, 1], [], []>} : vector<240x128xbf16>, vector<128x128xbf16>, vector<240x128xf32> -> vector<240x128xf32>
    %109 = arith.addf %103, %108 : vector<240x128xf32>
    %110 = vector.broadcast %92 : vector<1x128xf32> to vector<240x128xf32>
    %111 = arith.addf %109, %110 : vector<240x128xf32>
    %cst_127 = arith.constant 0.000000e+00 : f32
    %112 = vector.broadcast %cst_127 : f32 to vector<240x128xf32>
    %113 = arith.maximumf %111, %112 : vector<240x128xf32>
    %114 = vector.extract_strided_slice %113 {offsets = [0, 0], sizes = [16, 128], strides = [1, 1]} : vector<240x128xf32> to vector<16x128xf32>
    %c16_128 = arith.constant 16 : index
    %c0_129 = arith.constant 0 : index
    %115 = vector.load %arg12[%c16_128, %c0_129] : memref<272x128xf32, #tpu.memory_space<vmem>>, vector<16x128xf32>
    tpu.vector_store %arg12[%c16_128, %c0_129], %114 {strides = array<i32>} : memref<272x128xf32, #tpu.memory_space<vmem>>, vector<16x128xf32>,
    %116 = vector.extract_strided_slice %113 {offsets = [32, 0], sizes = [16, 128], strides = [1, 1]} : vector<240x128xf32> to vector<16x128xf32>
    %c48_130 = arith.constant 48 : index
    %c0_131 = arith.constant 0 : index
    %117 = vector.load %arg12[%c48_130, %c0_131] : memref<272x128xf32, #tpu.memory_space<vmem>>, vector<16x128xf32>
    tpu.vector_store %arg12[%c48_130, %c0_131], %116 {strides = array<i32>} : memref<272x128xf32, #tpu.memory_space<vmem>>, vector<16x128xf32>,
    %118 = vector.extract_strided_slice %113 {offsets = [64, 0], sizes = [16, 128], strides = [1, 1]} : vector<240x128xf32> to vector<16x128xf32>
    %c80_132 = arith.constant 80 : index
    %c0_133 = arith.constant 0 : index
    %119 = vector.load %arg12[%c80_132, %c0_133] : memref<272x128xf32, #tpu.memory_space<vmem>>, vector<16x128xf32>
    tpu.vector_store %arg12[%c80_132, %c0_133], %118 {strides = array<i32>} : memref<272x128xf32, #tpu.memory_space<vmem>>, vector<16x128xf32>,
    %120 = vector.extract_strided_slice %113 {offsets = [96, 0], sizes = [16, 128], strides = [1, 1]} : vector<240x128xf32> to vector<16x128xf32>
    %c112_134 = arith.constant 112 : index
    %c0_135 = arith.constant 0 : index
    %121 = vector.load %arg12[%c112_134, %c0_135] : memref<272x128xf32, #tpu.memory_space<vmem>>, vector<16x128xf32>
    tpu.vector_store %arg12[%c112_134, %c0_135], %120 {strides = array<i32>} : memref<272x128xf32, #tpu.memory_space<vmem>>, vector<16x128xf32>,
    %122 = vector.extract_strided_slice %113 {offsets = [128, 0], sizes = [16, 128], strides = [1, 1]} : vector<240x128xf32> to vector<16x128xf32>
    %c144_136 = arith.constant 144 : index
    %c0_137 = arith.constant 0 : index
    %123 = vector.load %arg12[%c144_136, %c0_137] : memref<272x128xf32, #tpu.memory_space<vmem>>, vector<16x128xf32>
    tpu.vector_store %arg12[%c144_136, %c0_137], %122 {strides = array<i32>} : memref<272x128xf32, #tpu.memory_space<vmem>>, vector<16x128xf32>,
    %124 = vector.extract_strided_slice %113 {offsets = [160, 0], sizes = [16, 128], strides = [1, 1]} : vector<240x128xf32> to vector<16x128xf32>
    %c176_138 = arith.constant 176 : index
    %c0_139 = arith.constant 0 : index
    %125 = vector.load %arg12[%c176_138, %c0_139] : memref<272x128xf32, #tpu.memory_space<vmem>>, vector<16x128xf32>
    tpu.vector_store %arg12[%c176_138, %c0_139], %124 {strides = array<i32>} : memref<272x128xf32, #tpu.memory_space<vmem>>, vector<16x128xf32>,
    %126 = vector.extract_strided_slice %113 {offsets = [192, 0], sizes = [16, 128], strides = [1, 1]} : vector<240x128xf32> to vector<16x128xf32>
    %c208_140 = arith.constant 208 : index
    %c0_141 = arith.constant 0 : index
    %127 = vector.load %arg12[%c208_140, %c0_141] : memref<272x128xf32, #tpu.memory_space<vmem>>, vector<16x128xf32>
    tpu.vector_store %arg12[%c208_140, %c0_141], %126 {strides = array<i32>} : memref<272x128xf32, #tpu.memory_space<vmem>>, vector<16x128xf32>,
    %128 = vector.extract_strided_slice %113 {offsets = [224, 0], sizes = [16, 128], strides = [1, 1]} : vector<240x128xf32> to vector<16x128xf32>
    %c240_142 = arith.constant 240 : index
    %c0_143 = arith.constant 0 : index
    %129 = vector.load %arg12[%c240_142, %c0_143] : memref<272x128xf32, #tpu.memory_space<vmem>>, vector<16x128xf32>
    tpu.vector_store %arg12[%c240_142, %c0_143], %128 {strides = array<i32>} : memref<272x128xf32, #tpu.memory_space<vmem>>, vector<16x128xf32>,
    %c2_144 = arith.constant 2 : index
    %c0_145 = arith.constant 0 : index
    %130 = vector.load %arg6[%c2_144, %c0_145] : memref<4x128xf32, #tpu.memory_space<vmem>>, vector<1x128xf32>
    %c15_146 = arith.constant 15 : index
    %c0_147 = arith.constant 0 : index
    %131 = vector.load %arg12[%c15_146, %c0_147] : memref<272x128xf32, #tpu.memory_space<vmem>>, vector<240x128xf32>
    %132 = arith.truncf %131 : vector<240x128xf32> to vector<240x128xbf16>
    %c0_148 = arith.constant 0 : index
    %c0_149 = arith.constant 0 : index
    %c0_150 = arith.constant 0 : index
    %133 = vector.load %arg4[%c0_148, %c0_149, %c0_150] : memref<3x128x128xbf16, #tpu.memory_space<vmem>>, vector<1x128x128xbf16>
    %134 = vector.shape_cast %133 : vector<1x128x128xbf16> to vector<128x128xbf16>
    %cst_151 = arith.constant dense<0.000000e+00> : vector<240x128xf32>
    %135 = tpu.matmul %132, %134, %cst_151 {dimension_numbers = #tpu.dot_dimension_numbers<[1], [0], [0], [1], [0, 0, 1, 1], [], []>} : vector<240x128xbf16>, vector<128x128xbf16>, vector<240x128xf32> -> vector<240x128xf32>
    %c16_152 = arith.constant 16 : index
    %c0_153 = arith.constant 0 : index
    %136 = vector.load %arg12[%c16_152, %c0_153] : memref<272x128xf32, #tpu.memory_space<vmem>>, vector<240x128xf32>
    %137 = arith.truncf %136 : vector<240x128xf32> to vector<240x128xbf16>
    %c1_154 = arith.constant 1 : index
    %c0_155 = arith.constant 0 : index
    %c0_156 = arith.constant 0 : index
    %138 = vector.load %arg4[%c1_154, %c0_155, %c0_156] : memref<3x128x128xbf16, #tpu.memory_space<vmem>>, vector<1x128x128xbf16>
    %139 = vector.shape_cast %138 : vector<1x128x128xbf16> to vector<128x128xbf16>
    %cst_157 = arith.constant dense<0.000000e+00> : vector<240x128xf32>
    %140 = tpu.matmul %137, %139, %cst_157 {dimension_numbers = #tpu.dot_dimension_numbers<[1], [0], [0], [1], [0, 0, 1, 1], [], []>} : vector<240x128xbf16>, vector<128x128xbf16>, vector<240x128xf32> -> vector<240x128xf32>
    %141 = arith.addf %135, %140 : vector<240x128xf32>
    %c17_158 = arith.constant 17 : index
    %c0_159 = arith.constant 0 : index
    %142 = vector.load %arg12[%c17_158, %c0_159] : memref<272x128xf32, #tpu.memory_space<vmem>>, vector<240x128xf32>
    %143 = arith.truncf %142 : vector<240x128xf32> to vector<240x128xbf16>
    %c2_160 = arith.constant 2 : index
    %c0_161 = arith.constant 0 : index
    %c0_162 = arith.constant 0 : index
    %144 = vector.load %arg4[%c2_160, %c0_161, %c0_162] : memref<3x128x128xbf16, #tpu.memory_space<vmem>>, vector<1x128x128xbf16>
    %145 = vector.shape_cast %144 : vector<1x128x128xbf16> to vector<128x128xbf16>
    %cst_163 = arith.constant dense<0.000000e+00> : vector<240x128xf32>
    %146 = tpu.matmul %143, %145, %cst_163 {dimension_numbers = #tpu.dot_dimension_numbers<[1], [0], [0], [1], [0, 0, 1, 1], [], []>} : vector<240x128xbf16>, vector<128x128xbf16>, vector<240x128xf32> -> vector<240x128xf32>
    %147 = arith.addf %141, %146 : vector<240x128xf32>
    %148 = vector.broadcast %130 : vector<1x128xf32> to vector<240x128xf32>
    %149 = arith.addf %147, %148 : vector<240x128xf32>
    %c16_164 = arith.constant 16 : index
    %c0_165 = arith.constant 0 : index
    %150 = vector.load %arg10[%c16_164, %c0_165] : memref<272x128xf32, #tpu.memory_space<vmem>>, vector<240x128xf32>
    %151 = arith.truncf %150 : vector<240x128xf32> to vector<240x128xbf16>
    %c0_166 = arith.constant 0 : index
    %c0_167 = arith.constant 0 : index
    %152 = vector.load %arg5[%c0_166, %c0_167] : memref<128x128xbf16, #tpu.memory_space<vmem>>, vector<128x128xbf16>
    %cst_168 = arith.constant dense<0.000000e+00> : vector<240x128xf32>
    %153 = tpu.matmul %151, %152, %cst_168 {dimension_numbers = #tpu.dot_dimension_numbers<[1], [0], [0], [1], [0, 0, 1, 1], [], []>} : vector<240x128xbf16>, vector<128x128xbf16>, vector<240x128xf32> -> vector<240x128xf32>
    %c3_169 = arith.constant 3 : index
    %c0_170 = arith.constant 0 : index
    %154 = vector.load %arg6[%c3_169, %c0_170] : memref<4x128xf32, #tpu.memory_space<vmem>>, vector<1x128xf32>
    %155 = vector.broadcast %154 : vector<1x128xf32> to vector<240x128xf32>
    %156 = arith.addf %153, %155 : vector<240x128xf32>
    %157 = arith.addf %149, %156 : vector<240x128xf32>
    %cst_171 = arith.constant 0.000000e+00 : f32
    %158 = vector.broadcast %cst_171 : f32 to vector<240x128xf32>
    %159 = arith.maximumf %157, %158 : vector<240x128xf32>
    %160 = arith.truncf %159 : vector<240x128xf32> to vector<240x128xbf16>
    %c0_172 = arith.constant 0 : index
    %c0_173 = arith.constant 0 : index
    %c0_174 = arith.constant 0 : index
    %161 = vector.load %arg7[%c0_172, %c0_173, %c0_174] : memref<2x64x240xbf16, #tpu.memory_space<vmem>>, vector<1x64x240xbf16>
    %162 = vector.shape_cast %161 : vector<1x64x240xbf16> to vector<64x240xbf16>
    %cst_175 = arith.constant dense<0.000000e+00> : vector<64x128xf32>
    %163 = tpu.matmul %162, %160, %cst_175 {dimension_numbers = #tpu.dot_dimension_numbers<[1], [0], [0], [1], [0, 0, 1, 1], [], []>} : vector<64x240xbf16>, vector<240x128xbf16>, vector<64x128xf32> -> vector<64x128xf32>
    %c1_176 = arith.constant 1 : index
    %c0_177 = arith.constant 0 : index
    %c0_178 = arith.constant 0 : index
    %164 = vector.load %arg7[%c1_176, %c0_177, %c0_178] : memref<2x64x240xbf16, #tpu.memory_space<vmem>>, vector<1x64x240xbf16>
    %165 = vector.shape_cast %164 : vector<1x64x240xbf16> to vector<64x240xbf16>
    %cst_179 = arith.constant dense<0.000000e+00> : vector<64x128xf32>
    %166 = tpu.matmul %165, %160, %cst_179 {dimension_numbers = #tpu.dot_dimension_numbers<[1], [0], [0], [1], [0, 0, 1, 1], [], []>} : vector<64x240xbf16>, vector<240x128xbf16>, vector<64x128xf32> -> vector<64x128xf32>
    %167 = arith.maximumf %163, %166 : vector<64x128xf32>
    %168 = arith.truncf %167 : vector<64x128xf32> to vector<64x128xbf16>
    %c0_180 = arith.constant 0 : index
    %c0_181 = arith.constant 0 : index
    %c0_182 = arith.constant 0 : index
    %169 = vector.load %arg8[%c0_180, %c0_181, %c0_182] : memref<2x128x64xbf16, #tpu.memory_space<vmem>>, vector<1x128x64xbf16>
    %170 = vector.shape_cast %169 : vector<1x128x64xbf16> to vector<128x64xbf16>
    %cst_183 = arith.constant dense<0.000000e+00> : vector<64x64xf32>
    %171 = tpu.matmul %168, %170, %cst_183 {dimension_numbers = #tpu.dot_dimension_numbers<[1], [0], [0], [1], [0, 0, 1, 1], [], []>} : vector<64x128xbf16>, vector<128x64xbf16>, vector<64x64xf32> -> vector<64x64xf32>
    %c1_184 = arith.constant 1 : index
    %c0_185 = arith.constant 0 : index
    %c0_186 = arith.constant 0 : index
    %172 = vector.load %arg8[%c1_184, %c0_185, %c0_186] : memref<2x128x64xbf16, #tpu.memory_space<vmem>>, vector<1x128x64xbf16>
    %173 = vector.shape_cast %172 : vector<1x128x64xbf16> to vector<128x64xbf16>
    %cst_187 = arith.constant dense<0.000000e+00> : vector<64x64xf32>
    %174 = tpu.matmul %168, %173, %cst_187 {dimension_numbers = #tpu.dot_dimension_numbers<[1], [0], [0], [1], [0, 0, 1, 1], [], []>} : vector<64x128xbf16>, vector<128x64xbf16>, vector<64x64xf32> -> vector<64x64xf32>
    %175 = arith.maximumf %171, %174 : vector<64x64xf32>
    %c0_188 = arith.constant 0 : index
    %c0_189 = arith.constant 0 : index
    %176 = vector.load %arg9[%c0_188, %c0_189] : memref<64x64xf32, #tpu.memory_space<vmem>>, vector<64x64xf32>
    tpu.vector_store %arg9[%c0_188, %c0_189], %175 {strides = array<i32>} : memref<64x64xf32, #tpu.memory_space<vmem>>, vector<64x64xf32>,
    return
  }
  func.func @transform_0(%arg0: i32) -> (i32, i32, i32) {
    %c0_i32 = arith.constant 0 : i32
    %c0_i32_0 = arith.constant 0 : i32
    %c0_i32_1 = arith.constant 0 : i32
    return %arg0, %c0_i32, %c0_i32_0 : i32, i32, i32
  }
  func.func @transform_1(%arg0: i32) -> (i32, i32, i32) {
    %c0_i32 = arith.constant 0 : i32
    %c0_i32_0 = arith.constant 0 : i32
    %c0_i32_1 = arith.constant 0 : i32
    %c0_i32_2 = arith.constant 0 : i32
    return %c0_i32, %c0_i32_0, %c0_i32_1 : i32, i32, i32
  }
  func.func @transform_2(%arg0: i32) -> (i32, i32, i32) {
    %c0_i32 = arith.constant 0 : i32
    %c0_i32_0 = arith.constant 0 : i32
    %c0_i32_1 = arith.constant 0 : i32
    %c0_i32_2 = arith.constant 0 : i32
    return %c0_i32, %c0_i32_0, %c0_i32_1 : i32, i32, i32
  }
  func.func @transform_3(%arg0: i32) -> (i32, i32, i32) {
    %c0_i32 = arith.constant 0 : i32
    %c0_i32_0 = arith.constant 0 : i32
    %c0_i32_1 = arith.constant 0 : i32
    %c0_i32_2 = arith.constant 0 : i32
    return %c0_i32, %c0_i32_0, %c0_i32_1 : i32, i32, i32
  }
  func.func @transform_4(%arg0: i32) -> (i32, i32) {
    %c0_i32 = arith.constant 0 : i32
    %c0_i32_0 = arith.constant 0 : i32
    %c0_i32_1 = arith.constant 0 : i32
    return %c0_i32, %c0_i32_0 : i32, i32
  }
  func.func @transform_5(%arg0: i32) -> (i32, i32) {
    %c0_i32 = arith.constant 0 : i32
    %c0_i32_0 = arith.constant 0 : i32
    %c0_i32_1 = arith.constant 0 : i32
    return %c0_i32, %c0_i32_0 : i32, i32
  }
  func.func @transform_6(%arg0: i32) -> (i32, i32, i32) {
    %c0_i32 = arith.constant 0 : i32
    %c0_i32_0 = arith.constant 0 : i32
    %c0_i32_1 = arith.constant 0 : i32
    %c0_i32_2 = arith.constant 0 : i32
    return %c0_i32, %c0_i32_0, %c0_i32_1 : i32, i32, i32
  }
  func.func @transform_7(%arg0: i32) -> (i32, i32, i32) {
    %c0_i32 = arith.constant 0 : i32
    %c0_i32_0 = arith.constant 0 : i32
    %c0_i32_1 = arith.constant 0 : i32
    %c0_i32_2 = arith.constant 0 : i32
    return %c0_i32, %c0_i32_0, %c0_i32_1 : i32, i32, i32
  }
  func.func @transform_8(%arg0: i32) -> (i32, i32) {
    %c0_i32 = arith.constant 0 : i32
    %c0_i32_0 = arith.constant 0 : i32
    return %arg0, %c0_i32 : i32, i32
  }
}

</mosaic_0001>

<bundles_post_ra>
// kernel: sepres_block_pallas.1
= control target key start
LH: loop header
LB: loop body
LE: loop exit
PB: predicated region body
PF: predicated region fallthrough
CT: control target
= control target key end

     0   :  { %s3815_s27 = smov 0   ;;  %s4660_s0 = inlined_call_operand.vmem [shape: f32[16,16,128], index: 0, kind: input, shape index: {}]   ;;  %s4661_s1 = inlined_call_operand.vmem [shape: bf16[3,128,128], index: 1, kind: input, shape index: {}]   ;;  %s4662_s2 = inlined_call_operand.vmem [shape: bf16[3,128,128], index: 2, kind: input, shape index: {}]   ;;  %s4663_s3 = inlined_call_operand.vmem [shape: bf16[3,128,128], index: 3, kind: input, shape index: {}]   ;;  %s4664_s4 = inlined_call_operand.vmem [shape: bf16[128,128], index: 4, kind: input, shape index: {}]   ;;  %s4665_s5 = inlined_call_operand.vmem [shape: f32[4,128], index: 5, kind: input, shape index: {}]   ;;  %s4666_s6 = inlined_call_operand.vmem [shape: bf16[2,64,240], index: 6, kind: input, shape index: {}]   ;;  %s4667_s7 = inlined_call_operand.vmem [shape: bf16[2,128,64], index: 7, kind: input, shape index: {}]   ;;  %s4668_s8 = inlined_call_operand.vmem [shape: f32[128,64], index: 8, kind: output, shape index: {}]  }
   0x1 LB: > { %s3031_s28 = sadd.s32 4294967295, %s3766_s27   ;;  %p3035_p0 = scmp.ge.s32.totalorder %s3766_s27, 1  ;;  %s3766_s27 = sphi %s3815_s27, %s18_s27  }
   0x2   : > { %p264_p1 = scmp.lt.s32.totalorder %s3766_s27, 3 }
   0x4   : > { %p265_p2 = pnand %p3035_p0, %p264_p1 }
   0x5   : > { %s3036_s13 = sshll.u32 (!%p265_p2), %s3031_s28, 3 }
   0x6   : > { %268 = sbr.rel (%p265_p2) target bundleno = 1319 (0x527), region = 52  ;;  %p300_p3 = scmp.lt.s32.totalorder (!%p265_p2), %s3036_s13, 15 }
   0xb   : > { %v3649_v0 = vld [vmem:[%s4661_s1 + $0x78] sm:$0xff]  ;;  %v3768_v3 = vmov 0.0   ;;  %v3648_v4 = vld [vmem:[%s4661_s1 + $0x70] sm:$0xff]  ;;  %s4670_s13 = smov (!%p300_p3, %s3036_s13), 15  ;;  %v3647_v7 = vld [vmem:[%s4661_s1 + $0x68] sm:$0xff]  ;;  %v3769_v37 = vmov 0.0|0.0  }
   0xc   : > { %v3641_v1 = vld [vmem:[%s4661_s1 + $0x38] sm:$0xff]  ;;  %314 = vst [vmem:[#allocation2 + $0x8] sm:$0xff] %v3768_v3  ;;  %578 = vmatpush.bf16.msra.mxu0 %v3649_v0  ;;  %v3640_v5 = vld [vmem:[%s4661_s1 + $0x30] sm:$0xff]  ;;  %s3633_s20 = sshll.u32 %s4670_s13, 4  ;;  %v3639_v8 = vld [vmem:[%s4661_s1 + $0x28] sm:$0xff]  ;;  %vm2573_vm0 = vcmask 916480  }
   0xd   : > { %v3657_v2 = vld [vmem:[%s4661_s1 + $0xb8] sm:$0xff]  ;;  %696 = vmatpush.bf16.msra.mxu1 %v3641_v1  ;;  %v3656_v6 = vld [vmem:[%s4661_s1 + $0xb0] sm:$0xff]  ;;  %315 = vst [vmem:[#allocation2 + $0x20] sm:$0xff] %v3768_v3  ;;  %s3857_s28 = scalar_lea.vmem %s4660_s0, %s3633_s20  ;;  %v3655_v9 = vld [vmem:[%s4661_s1 + $0xa8] sm:$0xff]  ;;  %s3040_s18 = sshll.u32 %s4670_s13, 3  ;;  %vm2966_vm1 = vcmask 523264  }
   0xe   : > { %876 = vmatpush.bf16.msra.mxu2 %v3657_v2  ;;  %316 = vst [vmem:[#allocation2 + $0x28] sm:$0xff] %v3768_v3  ;;  %v3865_v10 = vld [vmem:[%s3857_s28] sm:$0xff]  ;;  %v3868_v11 = vld [vmem:[%s3857_s28 + $0x8] sm:$0xff]  ;;  %v3645_v15 = vld [vmem:[%s4661_s1 + $0x58] sm:$0xff]  ;;  %s4639_s21 = scalar_lea.vmem %s4668_s8, %s3040_s18 }
   0xf   : > { %317 = vst [vmem:[#allocation2 + $0x40] sm:$0xff] %v3768_v3  ;;  %v3646_v12 = vld [vmem:[%s4661_s1 + $0x60] sm:$0xff]  ;;  %v3637_v16 = vld [vmem:[%s4661_s1 + $0x18] sm:$0xff]  ;;  %v3644_v18 = vld [vmem:[%s4661_s1 + $0x50] sm:$0xff]  ;;  %v498_v31 = vpack.c.bf16 %v3868_v11, %v3865_v10 }
  0x10   : > { %579 = vmatpush.bf16.msra.mxu0 %v3648_v4  ;;  %318 = vst [vmem:[#allocation2 + $0x48] sm:$0xff] %v3768_v3  ;;  %v3638_v13 = vld [vmem:[%s4661_s1 + $0x20] sm:$0xff]  ;;  %v3653_v17 = vld [vmem:[%s4661_s1 + $0x98] sm:$0xff]  ;;  %v3636_v19 = vld [vmem:[%s4661_s1 + $0x10] sm:$0xff] }
  0x11   : > { %697 = vmatpush.bf16.msra.mxu1 %v3640_v5  ;;  %319 = vst [vmem:[#allocation2 + $0x60] sm:$0xff] %v3768_v3  ;;  %v3654_v14 = vld [vmem:[%s4661_s1 + $0xa0] sm:$0xff]  ;;  %v3652_v20 = vld [vmem:[%s4661_s1 + $0x90] sm:$0xff]  ;;  %v3643_v21 = vld [vmem:[%s4661_s1 + $0x48] sm:$0xff] }
  0x12   : > { %877 = vmatpush.bf16.msra.mxu2 %v3656_v6  ;;  %320 = vst [vmem:[#allocation2 + $0x68] sm:$0xff] %v3768_v3  ;;  %v3635_v22 = vld [vmem:[%s4661_s1 + $0x8] sm:$0xff]  ;;  %v3642_v24 = vld [vmem:[%s4661_s1 + $0x40] sm:$0xff]  ;;  %v3041_v38 = vld [vmem:[%s3857_s28 + $0x10] sm:$0xff] }
  0x13   : > { %369 = vst [vmem:[#allocation2 + $0x10] sm:$0xff] %v3865_v10  ;;  %v3651_v23 = vld [vmem:[%s4661_s1 + $0x88] sm:$0xff]  ;;  %v3634_v25 = vld [vmem:[%s4661_s1] sm:$0xff]  ;;  %v3042_v39 = vld [vmem:[%s3857_s28 + $0x18] sm:$0xff] }
  0x14   : > { %580 = vmatpush.bf16.msra.mxu0 %v3647_v7  ;;  %370 = vst [vmem:[#allocation2 + $0x18] sm:$0xff] %v3868_v11  ;;  %v3650_v28 = vld [vmem:[%s4661_s1 + $0x80] sm:$0xff]  ;;  %v500_v41 = vpack.c.bf16 %v3042_v39, %v3041_v38  ;;  %v3044_v48 = vld [vmem:[%s3857_s28 + $0x28] sm:$0xff]  ;;  %v3045_v55 = vld [vmem:[%s3857_s28 + $0x30] sm:$0xff] }
  0x15   : > { %698 = vmatpush.bf16.msra.mxu1 %v3639_v8  ;;  %321 = vst [vmem:[#allocation2 + $0x80] sm:$0xff] %v3768_v3  ;;  %v410_v35 = vld [vmem:[#allocation2 + $0x27] sm:$0xff]  ;;  %v3046_v63 = vld [vmem:[%s3857_s28 + $0x38] sm:$0xff] }
  0x16   : > { %878 = vmatpush.bf16.msra.mxu2 %v3655_v9  ;;  %322 = vst [vmem:[#allocation2 + $0x88] sm:$0xff] %v3768_v3  ;;  %v3043_v40 = vld [vmem:[%s3857_s28 + $0x20] sm:$0xff]  ;;  %v504_v9 = vpack.c.bf16 %v3046_v63, %v3045_v55 }
  0x17   : > { %323 = vst [vmem:[#allocation2 + $0xa0] sm:$0xff] %v3768_v3  ;;  %v768_v42 = vld [vmem:[#allocation2 + $0x21] sm:$0xff]  ;;  %v502_v58 = vpack.c.bf16 %v3044_v48, %v3043_v40 }
  0x18   : > { %581 = vmatpush.bf16.msra.mxu0 %v3646_v12  ;;  %324 = vst [vmem:[#allocation2 + $0xa8] sm:$0xff] %v3768_v3  ;;  %v414_v52 = vld [vmem:[#allocation2 + $0x47] sm:$0xff] }
  0x19   : > { %699 = vmatpush.bf16.msra.mxu1 %v3638_v13  ;;  %325 = vst [vmem:[#allocation2 + $0xc0] sm:$0xff] %v3768_v3  ;;  %v772_v56 = vld [vmem:[#allocation2 + $0x41] sm:$0xff] }
  0x1a   : > { %879 = vmatpush.bf16.msra.mxu2 %v3654_v14  ;;  %326 = vst [vmem:[#allocation2 + $0xc8] sm:$0xff] %v3768_v3  ;;  %v407_v26 = vld [vmem:[#allocation2 + $0xf] sm:$0xff]  ;;  %v3047_v6 = vld [vmem:[%s3857_s28 + $0x40] sm:$0xff]  ;;  %v3673_v14 = vld [vmem:[%s4662_s2 + $0x78] sm:$0xff] }
  0x1b   : > { %327 = vst [vmem:[#allocation2 + $0xe0] sm:$0xff] %v3768_v3  ;;  %v408_v27 = vld [vmem:[#allocation2 + $0x17] sm:$0xff]  ;;  %v409_v34 = vld [vmem:[#allocation2 + $0x1f] sm:$0xff]  ;;  %1183 = vmatpush.bf16.msra.mxu3 %v3673_v14 }
  0x1c   : > { %582 = vmatpush.bf16.msra.mxu0 %v3645_v15  ;;  %328 = vst [vmem:[#allocation2 + $0xe8] sm:$0xff] %v3768_v3  ;;  %v766_v29 = vld [vmem:[#allocation2 + $0x11] sm:$0xff]  ;;  %v767_v30 = vld [vmem:[#allocation2 + $0x19] sm:$0xff]  ;;  %v437_v32 = vpack.c.bf16 %v408_v27, %v407_v26  ;;  %v438_v36 = vpack.c.bf16 %v410_v35, %v409_v34  ;;  %v776_v7 = vld [vmem:[#allocation2 + $0x61] sm:$0xff] }
  0x1d   : > { %700 = vmatpush.bf16.msra.mxu1 %v3637_v16  ;;  %329 = vst [vmem:[#allocation2 + $0x100] sm:$0xff] %v3768_v3  ;;  %v796_v33 = vpack.c.bf16 %v767_v30, %v766_v29  ;;  %v3048_v15 = vld [vmem:[%s3857_s28 + $0x48] sm:$0xff]  ;;  %v3672_v16 = vld [vmem:[%s4662_s2 + $0x70] sm:$0xff] }
  0x1e   : > { %880 = vmatpush.bf16.msra.mxu2 %v3653_v17  ;;  %332 = vst [vmem:[#allocation3 + $0x8] sm:$0xff] %v3768_v3  ;;  %v3989_v26 = vld [vmem:[%s3857_s28 + $0x50] sm:$0xff]  ;;  %v506_v30 = vpack.c.bf16 %v3048_v15, %v3047_v6  ;;  %v3667_v35 = vld [vmem:[%s4662_s2 + $0x48] sm:$0xff] }
  0x1f   : > { %333 = vst [vmem:[#allocation3 + $0x20] sm:$0xff] %v3768_v3  ;;  %1184 = vmatpush.bf16.msra.mxu3 %v3672_v16  ;;  %v3668_v27 = vld [vmem:[%s4662_s2 + $0x50] sm:$0xff] }
  0x20   : > { %583 = vmatpush.bf16.msra.mxu0 %v3644_v18  ;;  %334 = vst [vmem:[#allocation3 + $0x28] sm:$0xff] %v3768_v3 }
  0x21   : > { %701 = vmatpush.bf16.msra.mxu1 %v3636_v19  ;;  %335 = vst [vmem:[#allocation3 + $0x40] sm:$0xff] %v3768_v3 }
  0x22   : > { %881 = vmatpush.bf16.msra.mxu2 %v3652_v20  ;;  %336 = vst [vmem:[#allocation3 + $0x48] sm:$0xff] %v3768_v3  ;;  %v422_v20 = vld [vmem:[#allocation2 + $0x87] sm:$0xff] }
  0x23   : > { %337 = vst [vmem:[#allocation3 + $0x60] sm:$0xff] %v3768_v3 }
  0x24   : > { %584 = vmatpush.bf16.msra.mxu0 %v3643_v21  ;;  %338 = vst [vmem:[#allocation3 + $0x68] sm:$0xff] %v3768_v3  ;;  %v3671_v21 = vld [vmem:[%s4662_s2 + $0x68] sm:$0xff] }
  0x25   : > { %702 = vmatpush.bf16.msra.mxu1 %v3635_v22  ;;  %339 = vst [vmem:[#allocation3 + $0x80] sm:$0xff] %v3768_v3  ;;  %1185 = vmatpush.bf16.msra.mxu3 %v3671_v21 }
  0x26   : > { %882 = vmatpush.bf16.msra.mxu2 %v3651_v23  ;;  %340 = vst [vmem:[#allocation3 + $0x88] sm:$0xff] %v3768_v3 }
  0x27   : > { %341 = vst [vmem:[#allocation3 + $0xa0] sm:$0xff] %v3768_v3 }
  0x28   : > { %585 = vmatpush.bf16.msra.mxu0 %v3642_v24  ;;  %342 = vst [vmem:[#allocation3 + $0xa8] sm:$0xff] %v3768_v3  ;;  %v3670_v24 = vld [vmem:[%s4662_s2 + $0x60] sm:$0xff] }
  0x29   : > { %703 = vmatpush.bf16.msra.mxu1 %v3634_v25  ;;  %343 = vst [vmem:[#allocation3 + $0xc0] sm:$0xff] %v3768_v3  ;;  %1186 = vmatpush.bf16.msra.mxu3 %v3670_v24  ;;  %v3669_v25 = vld [vmem:[%s4662_s2 + $0x58] sm:$0xff] }
  0x2a   : > { %883 = vmatpush.bf16.msra.mxu2 %v3650_v28  ;;  %344 = vst [vmem:[#allocation3 + $0xc8] sm:$0xff] %v3768_v3  ;;  %v780_v28 = vld [vmem:[#allocation2 + $0x81] sm:$0xff] }
  0x2b   : > { %586 = vmatmul.bf16.vlgmr.msra.gmra.mxu0 %v498_v31  ;;  %345 = vst [vmem:[#allocation3 + $0xe0] sm:$0xff] %v3768_v3 }
  0x2c   : > { %704 = vmatmul.bf16.vlgmr.msra.gmra.mxu1 %v437_v32  ;;  %346 = vst [vmem:[#allocation3 + $0xe8] sm:$0xff] %v3768_v3 }
  0x2d   : > { %884 = vmatmul.bf16.vlgmr.msra.gmra.mxu2 %v796_v33  ;;  %347 = vst [vmem:[#allocation3 + $0x100] sm:$0xff] %v3768_v3  ;;  %1187 = vmatpush.bf16.msra.mxu3 %v3669_v25 }
  0x2e   : > { %350 = vst [vmem:[#allocation4 + $0x8] sm:$0xff] %v3768_v3 }
  0x2f   : > { %351 = vst [vmem:[#allocation4 + $0x20] sm:$0xff] %v3768_v3 }
  0x30   : > { %352 = vst [vmem:[#allocation4 + $0x28] sm:$0xff] %v3768_v3 }
  0x31   : > { %353 = vst [vmem:[#allocation4 + $0x40] sm:$0xff] %v3768_v3  ;;  %1188 = vmatpush.bf16.msra.mxu3 %v3668_v27 }
  0x32   : > { %354 = vst [vmem:[#allocation4 + $0x48] sm:$0xff] %v3768_v3 }
  0x33   : > { %355 = vst [vmem:[#allocation4 + $0x60] sm:$0xff] %v3768_v3 }
  0x34   : > { %356 = vst [vmem:[#allocation4 + $0x68] sm:$0xff] %v3768_v3 }
  0x35   : > { %357 = vst [vmem:[#allocation4 + $0x80] sm:$0xff] %v3768_v3  ;;  %1189 = vmatpush.bf16.msra.mxu3 %v3667_v35 }
  0x36   : > { %358 = vst [vmem:[#allocation4 + $0x88] sm:$0xff] %v3768_v3 }
  0x37   : > { %359 = vst [vmem:[#allocation4 + $0xa0] sm:$0xff] %v3768_v3 }
  0x38   : > { %360 = vst [vmem:[#allocation4 + $0xa8] sm:$0xff] %v3768_v3 }
  0x39   : > { %361 = vst [vmem:[#allocation4 + $0xc0] sm:$0xff] %v3768_v3 }
  0x3a   : > { %362 = vst [vmem:[#allocation4 + $0xc8] sm:$0xff] %v3768_v3 }
  0x3b   : > { %591 = vmatmul.bf16.gmra.mxu0 %v3769_v37  ;;  %363 = vst [vmem:[#allocation4 + $0xe0] sm:$0xff] %v3768_v3 }
  0x3c   : > { %709 = vmatmul.bf16.gmra.mxu1 %v438_v36  ;;  %364 = vst [vmem:[#allocation4 + $0xe8] sm:$0xff] %v3768_v3 }
  0x3d   : > { %365 = vst [vmem:[#allocation4 + $0x100] sm:$0xff] %v3768_v3  ;;  %v418_v3 = vld [vmem:[#allocation2 + $0x67] sm:$0xff] }
  0x3e   : > { %374 = vst [vmem:[#allocation2 + $0x30] sm:$0xff] %v3041_v38 }
  0x3f   : > { %375 = vst [vmem:[#allocation2 + $0x38] sm:$0xff] %v3042_v39  ;;  %v3666_v39 = vld [vmem:[%s4662_s2 + $0x40] sm:$0xff] }
  0x40   : > { %379 = vst [vmem:[#allocation2 + $0x50] sm:$0xff] %v3043_v40  ;;  %1190 = vmatpush.bf16.msra.mxu3 %v3666_v39 }
  0x41   : > { %380 = vst [vmem:[#allocation2 + $0x58] sm:$0xff] %v3044_v48 }
  0x42   : > { %384 = vst [vmem:[#allocation2 + $0x70] sm:$0xff] %v3045_v55 }
  0x43   : > { %385 = vst [vmem:[#allocation2 + $0x78] sm:$0xff] %v3046_v63 }
  0x44   : > { %389 = vst [vmem:[#allocation2 + $0x90] sm:$0xff] %v3047_v6 }
  0x45   : > { %v769_v43 = vld [vmem:[#allocation2 + $0x29] sm:$0xff]  ;;  %390 = vst [vmem:[#allocation2 + $0x98] sm:$0xff] %v3048_v15 }
  0x46   : > { %v411_v44 = vld [vmem:[#allocation2 + $0x2f] sm:$0xff]  ;;  %v797_v45 = vpack.c.bf16 %v769_v43, %v768_v42  ;;  %v412_v46 = vld [vmem:[#allocation2 + $0x37] sm:$0xff]  ;;  %v413_v51 = vld [vmem:[#allocation2 + $0x3f] sm:$0xff]  ;;  %394 = vst [vmem:[#allocation2 + $0xb0] sm:$0xff] %v3989_v26 }
  0x47   : > { %v439_v47 = vpack.c.bf16 %v412_v46, %v411_v44  ;;  %v770_v49 = vld [vmem:[#allocation2 + $0x31] sm:$0xff]  ;;  %v771_v50 = vld [vmem:[#allocation2 + $0x39] sm:$0xff]  ;;  %v440_v54 = vpack.c.bf16 %v414_v52, %v413_v51  ;;  %v773_v57 = vld [vmem:[#allocation2 + $0x49] sm:$0xff] }
  0x48   : > { %889 = vmatmul.bf16.gmra.mxu2 %v797_v45  ;;  %v798_v53 = vpack.c.bf16 %v771_v50, %v770_v49  ;;  %v415_v59 = vld [vmem:[#allocation2 + $0x4f] sm:$0xff]  ;;  %v416_v60 = vld [vmem:[#allocation2 + $0x57] sm:$0xff]  ;;  %v799_v61 = vpack.c.bf16 %v773_v57, %v772_v56  ;;  %v417_v2 = vld [vmem:[#allocation2 + $0x5f] sm:$0xff] }
  0x49   : > { %v441_v62 = vpack.c.bf16 %v416_v60, %v415_v59  ;;  %v774_v0 = vld [vmem:[#allocation2 + $0x51] sm:$0xff]  ;;  %v775_v1 = vld [vmem:[#allocation2 + $0x59] sm:$0xff]  ;;  %v442_v5 = vpack.c.bf16 %v418_v3, %v417_v2  ;;  %v777_v8 = vld [vmem:[#allocation2 + $0x69] sm:$0xff] }
  0x4a   : > { %v800_v4 = vpack.c.bf16 %v775_v1, %v774_v0  ;;  %v419_v10 = vld [vmem:[#allocation2 + $0x6f] sm:$0xff]  ;;  %v420_v11 = vld [vmem:[#allocation2 + $0x77] sm:$0xff]  ;;  %v801_v12 = vpack.c.bf16 %v777_v8, %v776_v7  ;;  %v421_v19 = vld [vmem:[#allocation2 + $0x7f] sm:$0xff] }
  0x4b   : > { %594 = vmatmul.bf16.gmra.mxu0 %v500_v41  ;;  %v443_v13 = vpack.c.bf16 %v420_v11, %v419_v10  ;;  %v778_v17 = vld [vmem:[#allocation2 + $0x71] sm:$0xff]  ;;  %v779_v18 = vld [vmem:[#allocation2 + $0x79] sm:$0xff]  ;;  %v444_v23 = vpack.c.bf16 %v422_v20, %v421_v19  ;;  %v781_v29 = vld [vmem:[#allocation2 + $0x89] sm:$0xff] }
  0x4c   : > { %712 = vmatmul.bf16.gmra.mxu1 %v439_v47  ;;  %v802_v22 = vpack.c.bf16 %v779_v18, %v778_v17  ;;  %v423_v31 = vld [vmem:[#allocation2 + $0x8f] sm:$0xff]  ;;  %v424_v32 = vld [vmem:[#allocation2 + $0x97] sm:$0xff]  ;;  %v803_v36 = vpack.c.bf16 %v781_v29, %v780_v28  ;;  %v4004_v41 = vld [vmem:[%s4665_s5] ss:$0 sm:$0xff] }
  0x4d   : > { %v445_v38 = vpack.c.bf16 %v424_v32, %v423_v31  ;;  %v3050_v47 = vld [vmem:[%s3857_s28 + $0x58] sm:$0xff]  ;;  %v3051_v1 = vld [vmem:[%s3857_s28 + $0x60] sm:$0xff]  ;;  %v785_v3 = vld [vmem:[#allocation2 + $0xa9] sm:$0xff] }
  0x4e   : > { %395 = vst [vmem:[#allocation2 + $0xb8] sm:$0xff] %v3050_v47  ;;  %v782_v49 = vld [vmem:[#allocation2 + $0x91] sm:$0xff]  ;;  %v783_v50 = vld [vmem:[#allocation2 + $0x99] sm:$0xff]  ;;  %v784_v2 = vld [vmem:[#allocation2 + $0xa1] sm:$0xff] }
  0x4f   : > { %399 = vst [vmem:[#allocation2 + $0xd0] sm:$0xff] %v3051_v1  ;;  %v805_v8 = vpack.c.bf16 %v785_v3, %v784_v2  ;;  %v430_v18 = vld [vmem:[#allocation2 + $0xc7] sm:$0xff]  ;;  %v4016_v28 = vld [vmem:[%s3857_s28 + $0x70] sm:$0xff] }
  0x50   : > { %404 = vst [vmem:[#allocation2 + $0xf0] sm:$0xff] %v4016_v28  ;;  %v788_v32 = vld [vmem:[#allocation2 + $0xc1] sm:$0xff] }
  0x51   : > { %v3678_v2 = vld [vmem:[%s4662_s2 + $0xa0] sm:$0xff] }
  0x55   : > { %v428_v6 = vld [vmem:[#allocation2 + $0xb7] sm:$0xff]  ;;  %v429_v17 = vld [vmem:[#allocation2 + $0xbf] sm:$0xff] }
  0x56   : > { %v786_v15 = vld [vmem:[#allocation2 + $0xb1] sm:$0xff]  ;;  %v787_v16 = vld [vmem:[#allocation2 + $0xb9] sm:$0xff] }
  0x57   : > { %v806_v21 = vpack.c.bf16 %v787_v16, %v786_v15  ;;  %v3659_v16 = vld [vmem:[%s4662_s2 + $0x8] sm:$0xff] }
  0x58   : > { %892 = vmatmul.bf16.gmra.mxu2 %v798_v53  ;;  %v425_v53 = vld [vmem:[#allocation2 + $0x9f] sm:$0xff] }
  0x5b   : > { %599 = vmatmul.bf16.gmra.mxu0 %v3769_v37 }
  0x5c   : > { %717 = vmatmul.bf16.gmra.mxu1 %v440_v54  ;;  %v426_v54 = vld [vmem:[#allocation2 + $0xa7] sm:$0xff] }
  0x5d   : > { %v446_v60 = vpack.c.bf16 %v426_v54, %v425_v53  ;;  %v3664_v53 = vld [vmem:[%s4662_s2 + $0x30] sm:$0xff] }
  0x5e   : > { %v3680_v54 = vld [vmem:[%s4662_s2 + $0xb0] sm:$0xff] }
  0x68   : > { %897 = vmatmul.bf16.gmra.mxu2 %v799_v61 }
  0x6b   : > { %602 = vmatmul.bf16.gmra.mxu0 %v502_v58  ;;  %v804_v58 = vpack.c.bf16 %v783_v50, %v782_v49 }
  0x6c   : > { %720 = vmatmul.bf16.gmra.mxu1 %v441_v62 }
  0x78   : > { %900 = vmatmul.bf16.gmra.mxu2 %v800_v4  ;;  %v508_v4 = vpack.c.bf16 %v3050_v47, %v3989_v26  ;;  %v3665_v47 = vld [vmem:[%s4662_s2 + $0x38] sm:$0xff] }
  0x79   : > { %1301 = vmatpush.bf16.msrb.mxu0 %v3665_v47 }
  0x7b   : > { %607 = vmatmul.bf16.gmra.mxu0 %v3769_v37 }
  0x7c   : > { %725 = vmatmul.bf16.gmra.mxu1 %v442_v5  ;;  %v427_v5 = vld [vmem:[#allocation2 + $0xaf] sm:$0xff] }
  0x7d   : > { %1302 = vmatpush.bf16.msrb.mxu0 %v3664_v53 }
  0x88   : > { %905 = vmatmul.bf16.gmra.mxu2 %v801_v12 }
  0x8b   : > { %610 = vmatmul.bf16.gmra.mxu0 %v504_v9  ;;  %v447_v9 = vpack.c.bf16 %v428_v6, %v427_v5  ;;  %v3661_v6 = vld [vmem:[%s4662_s2 + $0x18] sm:$0xff] }
  0x8c   : > { %728 = vmatmul.bf16.gmra.mxu1 %v443_v13  ;;  %v3052_v13 = vld [vmem:[%s3857_s28 + $0x68] sm:$0xff] }
  0x8d   : > { %400 = vst [vmem:[#allocation2 + $0xd8] sm:$0xff] %v3052_v13  ;;  %v510_v35 = vpack.c.bf16 %v3052_v13, %v3051_v1  ;;  %v3662_v1 = vld [vmem:[%s4662_s2 + $0x20] sm:$0xff] }
  0x98   : > { %908 = vmatmul.bf16.gmra.mxu2 %v802_v22  ;;  %v448_v22 = vpack.c.bf16 %v430_v18, %v429_v17  ;;  %v3675_v17 = vld [vmem:[%s4662_s2 + $0x88] sm:$0xff] }
  0x9b   : > { %615 = vmatmul.bf16.gmra.mxu0 %v3769_v37 }
  0x9c   : > { %733 = vmatmul.bf16.gmra.mxu1 %v444_v23 }
  0xa8   : > { %v587_v33 = vpop.f32.mrf.mxu0  ;;  %913 = vmatmul.bf16.gmra.mxu2 %v803_v36  ;;  %v431_v36 = vld [vmem:[#allocation2 + $0xcf] sm:$0xff] }
  0xa9   : > { %v705_v34 = vpop.f32.mrf.mxu1 }
  0xaa   : > { %v706_v40 = vadd.f32 %v705_v34, %v587_v33  ;;  %v789_v33 = vld [vmem:[#allocation2 + $0xc9] sm:$0xff] }
  0xab   : > { %618 = vmatmul.bf16.gmra.mxu0 %v506_v30 }
  0xac   : > { %736 = vmatmul.bf16.gmra.mxu1 %v445_v38  ;;  %v432_v38 = vld [vmem:[#allocation2 + $0xd7] sm:$0xff] }
  0xb0   : > { %v885_v42 = vpop.f32.mrf.mxu2  ;;  %v589_v44 = vpop.f32.mrf.mxu0 }
  0xb1   : > { %v946_v43 = vadd.f32 %v885_v42, %v706_v40  ;;  %v707_v45 = vpop.f32.mrf.mxu1 }
  0xb2   : > { %v708_v51 = vadd.f32 %v707_v45, %v589_v44  ;;  %v449_v44 = vpack.c.bf16 %v432_v38, %v431_v36 }
  0xb3   : > { %v963_v46 = vadd.f32 %v4004_v41, %v946_v43  ;;  %v807_v43 = vpack.c.bf16 %v789_v33, %v788_v32 }
  0xb5   : > { %v979_v48 = vmax.f32 %v963_v46, 0.0 }
  0xb7   : > { %995 = vst [vmem:[#allocation3 + $0x10] sm:$0xff] %v979_v48 }
  0xb8   : > { %v887_v52 = vpop.f32.mrf.mxu2  ;;  %v592_v56 = vpop.f32.mrf.mxu0  ;;  %916 = vmatmul.bf16.gmra.mxu2 %v804_v58  ;;  %v3679_v58 = vld [vmem:[%s4662_s2 + $0xa8] sm:$0xff] }
  0xb9   : > { %v947_v55 = vadd.f32 %v887_v52, %v708_v51  ;;  %v710_v57 = vpop.f32.mrf.mxu1  ;;  %v3054_v56 = vld [vmem:[%s3857_s28 + $0x78] sm:$0xff] }
  0xba   : > { %405 = vst [vmem:[#allocation2 + $0xf8] sm:$0xff] %v3054_v56 }
  0xbb   : > { %v964_v59 = vadd.f32 %v4004_v41, %v947_v55  ;;  %623 = vmatmul.bf16.gmra.mxu0 %v3769_v37  ;;  %v3663_v55 = vld [vmem:[%s4662_s2 + $0x28] sm:$0xff] }
  0xbc   : > { %741 = vmatmul.bf16.gmra.mxu1 %v446_v60  ;;  %v791_v60 = vld [vmem:[#allocation2 + $0xd9] sm:$0xff]  ;;  %1303 = vmatpush.bf16.msrb.mxu0 %v3663_v55 }
  0xbd   : > { %v980_v61 = vmax.f32 %v964_v59, 0.0  ;;  %v790_v59 = vld [vmem:[#allocation2 + $0xd1] sm:$0xff] }
  0xbe   : > { %v808_v3 = vpack.c.bf16 %v791_v60, %v790_v59 }
  0xbf   : > { %996 = vst [vmem:[#allocation3 + $0x18] sm:$0xff] %v980_v61  ;;  %v1103_v62 = vpack.c.bf16 %v980_v61, %v979_v48  ;;  %v3681_v48 = vld [vmem:[%s4662_s2 + $0xb8] sm:$0xff] }
  0xc0   : > { %v593_v63 = vpop.f32.mrf.mxu0  ;;  %1481 = vmatpush.bf16.msrb.mxu1 %v3681_v48  ;;  %v433_v61 = vld [vmem:[#allocation2 + $0xdf] sm:$0xff]  ;;  %1304 = vmatpush.bf16.msrb.mxu0 %v3662_v1 }
  0xc1   : > { %v711_v0 = vpop.f32.mrf.mxu1  ;;  %1191 = vmatmul.bf16.vlgmr.msra.gmra.mxu3 %v1103_v62  ;;  %v434_v62 = vld [vmem:[#allocation2 + $0xe7] sm:$0xff] }
  0xc4   : > { %1482 = vmatpush.bf16.msrb.mxu1 %v3680_v54  ;;  %1305 = vmatpush.bf16.msrb.mxu0 %v3661_v6 }
  0xc6   : > { %v1014_v60 = vld [vmem:[#allocation3 + $0x1f] sm:$0xff] }
  0xc8   : > { %v595_v7 = vpop.f32.mrf.mxu0  ;;  %921 = vmatmul.bf16.gmra.mxu2 %v805_v8  ;;  %1483 = vmatpush.bf16.msrb.mxu1 %v3679_v58 }
  0xc9   : > { %v713_v10 = vpop.f32.mrf.mxu1 }
  0xca   : > { %v714_v24 = vadd.f32 %v713_v10, %v595_v7  ;;  %v3677_v7 = vld [vmem:[%s4662_s2 + $0x98] sm:$0xff] }
  0xcb   : > { %626 = vmatmul.bf16.gmra.mxu0 %v508_v4  ;;  %v890_v11 = vpop.f32.mrf.mxu2  ;;  %v450_v4 = vpack.c.bf16 %v434_v62, %v433_v61  ;;  %v1015_v61 = vld [vmem:[#allocation3 + $0x27] sm:$0xff] }
  0xcc   : > { %744 = vmatmul.bf16.gmra.mxu1 %v447_v9  ;;  %v3660_v11 = vld [vmem:[%s4662_s2 + $0x10] sm:$0xff] }
  0xcd   : > { %1484 = vmatpush.bf16.msrb.mxu1 %v3678_v2  ;;  %1306 = vmatpush.bf16.msrb.mxu0 %v3660_v11  ;;  %v1043_v2 = vpack.c.bf16 %v1015_v61, %v1014_v60 }
  0xd0   : > { %v597_v12 = vpop.f32.mrf.mxu0 }
  0xd1   : > { %1196 = vmatmul.bf16.gmra.mxu3 %v3769_v37  ;;  %v715_v14 = vpop.f32.mrf.mxu1  ;;  %1485 = vmatpush.bf16.msrb.mxu1 %v3677_v7 }
  0xd2   : > { %v716_v34 = vadd.f32 %v715_v14, %v597_v12  ;;  %v3676_v12 = vld [vmem:[%s4662_s2 + $0x90] sm:$0xff]  ;;  %1307 = vmatpush.bf16.msrb.mxu0 %v3659_v16 }
  0xd3   : > { %v891_v19 = vpop.f32.mrf.mxu2 }
  0xd4   : > { %v792_v19 = vld [vmem:[#allocation2 + $0xe1] sm:$0xff] }
  0xd5   : > { %1486 = vmatpush.bf16.msrb.mxu1 %v3676_v12 }
  0xd8   : > { %v600_v20 = vpop.f32.mrf.mxu0  ;;  %924 = vmatmul.bf16.gmra.mxu2 %v806_v21 }
  0xd9   : > { %v718_v23 = vpop.f32.mrf.mxu1  ;;  %v793_v20 = vld [vmem:[#allocation2 + $0xe9] sm:$0xff]  ;;  %1487 = vmatpush.bf16.msrb.mxu1 %v3675_v17 }
  0xda   : > { %v435_v23 = vld [vmem:[#allocation2 + $0xef] sm:$0xff] }
  0xdb   : > { %631 = vmatmul.bf16.gmra.mxu0 %v3769_v37  ;;  %v893_v25 = vpop.f32.mrf.mxu2 }
  0xdc   : > { %749 = vmatmul.bf16.gmra.mxu1 %v448_v22  ;;  %v948_v27 = vadd.f32 %v893_v25, %v714_v24  ;;  %v512_v22 = vpack.c.bf16 %v3054_v56, %v4016_v28  ;;  %v436_v24 = vld [vmem:[#allocation2 + $0xf7] sm:$0xff] }
  0xdd   : > { %v451_v32 = vpack.c.bf16 %v436_v24, %v435_v23 }
  0xde   : > { %v965_v29 = vadd.f32 %v4004_v41, %v948_v27  ;;  %v3658_v27 = vld [vmem:[%s4662_s2] sm:$0xff] }
  0xdf   : > { %1308 = vmatpush.bf16.msrb.mxu0 %v3658_v27 }
  0xe0   : > { %v601_v26 = vpop.f32.mrf.mxu0  ;;  %v981_v31 = vmax.f32 %v965_v29, 0.0  ;;  %v3674_v29 = vld [vmem:[%s4662_s2 + $0x80] sm:$0xff] }
  0xe1   : > { %v719_v30 = vpop.f32.mrf.mxu1  ;;  %1488 = vmatpush.bf16.msrb.mxu1 %v3674_v29 }
  0xe2   : > { %997 = vst [vmem:[#allocation3 + $0x30] sm:$0xff] %v981_v31 }
  0xe3   : > { %v895_v39 = vpop.f32.mrf.mxu2 }
  0xe4   : > { %v949_v42 = vadd.f32 %v895_v39, %v716_v34 }
  0xe6   : > { %v966_v45 = vadd.f32 %v4004_v41, %v949_v42  ;;  %v795_v42 = vld [vmem:[#allocation2 + $0xf9] sm:$0xff] }
  0xe8   : > { %v603_v40 = vpop.f32.mrf.mxu0  ;;  %v982_v49 = vmax.f32 %v966_v45, 0.0  ;;  %929 = vmatmul.bf16.gmra.mxu2 %v807_v43  ;;  %v1013_v43 = vld [vmem:[#allocation3 + $0x17] sm:$0xff] }
  0xe9   : > { %v721_v46 = vpop.f32.mrf.mxu1  ;;  %v1016_v16 = vld [vmem:[#allocation3 + $0x2f] sm:$0xff] }
  0xea   : > { %998 = vst [vmem:[#allocation3 + $0x38] sm:$0xff] %v982_v49  ;;  %v1105_v50 = vpack.c.bf16 %v982_v49, %v981_v31  ;;  %v722_v8 = vadd.f32 %v721_v46, %v603_v40  ;;  %v809_v31 = vpack.c.bf16 %v793_v20, %v792_v19  ;;  %v794_v40 = vld [vmem:[#allocation2 + $0xf1] sm:$0xff]  ;;  %v1012_v46 = vld [vmem:[#allocation3 + $0xf] sm:$0xff] }
  0xeb   : > { %634 = vmatmul.bf16.gmra.mxu0 %v510_v35  ;;  %v898_v51 = vpop.f32.mrf.mxu2  ;;  %v810_v47 = vpack.c.bf16 %v795_v42, %v794_v40  ;;  %v1042_v48 = vpack.c.bf16 %v1013_v43, %v1012_v46  ;;  %v1371_v49 = vld [vmem:[#allocation3 + $0x11] sm:$0xff] }
  0xec   : > { %752 = vmatmul.bf16.gmra.mxu1 %v449_v44  ;;  %1199 = vmatmul.bf16.gmra.mxu3 %v1105_v50  ;;  %v1372_v50 = vld [vmem:[#allocation3 + $0x19] sm:$0xff] }
  0xf0   : > { %v605_v52 = vpop.f32.mrf.mxu0 }
  0xf1   : > { %v723_v57 = vpop.f32.mrf.mxu1  ;;  %v1376_v19 = vld [vmem:[#allocation3 + $0x39] sm:$0xff] }
  0xf2   : > { %v724_v21 = vadd.f32 %v723_v57, %v605_v52  ;;  %v1401_v52 = vpack.c.bf16 %v1372_v50, %v1371_v49 }
  0xf3   : > { %v899_v63 = vpop.f32.mrf.mxu2 }
  0xf8   : > { %v608_v0 = vpop.f32.mrf.mxu0  ;;  %932 = vmatmul.bf16.gmra.mxu2 %v808_v3  ;;  %v1373_v3 = vld [vmem:[#allocation3 + $0x21] sm:$0xff] }
  0xf9   : > { %v726_v5 = vpop.f32.mrf.mxu1 }
  0xfb   : > { %639 = vmatmul.bf16.gmra.mxu0 %v3769_v37  ;;  %v901_v9 = vpop.f32.mrf.mxu2 }
  0xfc   : > { %757 = vmatmul.bf16.gmra.mxu1 %v450_v4  ;;  %v950_v13 = vadd.f32 %v901_v9, %v722_v8  ;;  %1204 = vmatmul.bf16.gmra.mxu3 %v3769_v37  ;;  %v1374_v4 = vld [vmem:[#allocation3 + $0x29] sm:$0xff] }
  0xfd   : > { %v1402_v7 = vpack.c.bf16 %v1374_v4, %v1373_v3 }
  0xfe   : > { %v967_v14 = vadd.f32 %v4004_v41, %v950_v13  ;;  %v1017_v13 = vld [vmem:[#allocation3 + $0x37] sm:$0xff] }
  0xff   : > { %v1044_v17 = vpack.c.bf16 %v1017_v13, %v1016_v16 }
 0x100   : > { %v609_v10 = vpop.f32.mrf.mxu0  ;;  %v983_v18 = vmax.f32 %v967_v14, 0.0 }
 0x101   : > { %v727_v15 = vpop.f32.mrf.mxu1 }
 0x102   : > { %999 = vst [vmem:[#allocation3 + $0x50] sm:$0xff] %v983_v18 }
 0x103   : > { %v903_v25 = vpop.f32.mrf.mxu2 }
 0x104   : > { %v951_v30 = vadd.f32 %v903_v25, %v724_v21 }
 0x106   : > { %v968_v33 = vadd.f32 %v4004_v41, %v951_v30 }
 0x108   : > { %v611_v26 = vpop.f32.mrf.mxu0  ;;  %v984_v34 = vmax.f32 %v968_v33, 0.0  ;;  %937 = vmatmul.bf16.gmra.mxu2 %v809_v31  ;;  %v1018_v31 = vld [vmem:[#allocation3 + $0x3f] sm:$0xff] }
 0x109   : > { %v729_v28 = vpop.f32.mrf.mxu1 }
 0x10a   : > { %1000 = vst [vmem:[#allocation3 + $0x58] sm:$0xff] %v984_v34  ;;  %v1107_v35 = vpack.c.bf16 %v984_v34, %v983_v18  ;;  %v730_v53 = vadd.f32 %v729_v28, %v611_v26  ;;  %v1375_v18 = vld [vmem:[#allocation3 + $0x31] sm:$0xff] }
 0x10b   : > { %642 = vmatmul.bf16.gmra.mxu0 %v512_v22  ;;  %v906_v36 = vpop.f32.mrf.mxu2  ;;  %v1403_v21 = vpack.c.bf16 %v1376_v19, %v1375_v18 }
 0x10c   : > { %760 = vmatmul.bf16.gmra.mxu1 %v451_v32  ;;  %1207 = vmatmul.bf16.gmra.mxu3 %v1107_v35  ;;  %v1019_v32 = vld [vmem:[#allocation3 + $0x47] sm:$0xff] }
 0x10d   : > { %v1045_v36 = vpack.c.bf16 %v1019_v32, %v1018_v31 }
 0x110   : > { %v613_v38 = vpop.f32.mrf.mxu0 }
 0x111   : > { %v731_v39 = vpop.f32.mrf.mxu1  ;;  %v1022_v4 = vld [vmem:[#allocation3 + $0x5f] sm:$0xff] }
 0x112   : > { %v732_v62 = vadd.f32 %v731_v39, %v613_v38  ;;  %v1377_v38 = vld [vmem:[#allocation3 + $0x41] sm:$0xff]  ;;  %v1378_v39 = vld [vmem:[#allocation3 + $0x49] sm:$0xff] }
 0x113   : > { %v907_v44 = vpop.f32.mrf.mxu2 }
 0x114   : > { %v1404_v44 = vpack.c.bf16 %v1378_v39, %v1377_v38 }
 0x118   : > { %v616_v45 = vpop.f32.mrf.mxu0  ;;  %940 = vmatmul.bf16.gmra.mxu2 %v810_v47 }
 0x119   : > { %v734_v51 = vpop.f32.mrf.mxu1 }
 0x11a   : > { %v1021_v51 = vld [vmem:[#allocation3 + $0x57] sm:$0xff] }
 0x11b   : > { %1309 = vmatmul.bf16.vlgmr.msrb.gmra.mxu0 %v1042_v48  ;;  %v909_v54 = vpop.f32.mrf.mxu2 }
 0x11c   : > { %1489 = vmatmul.bf16.vlgmr.msrb.gmra.mxu1 %v1401_v52  ;;  %v952_v56 = vadd.f32 %v909_v54, %v730_v53  ;;  %1212 = vmatmul.bf16.gmra.mxu3 %v3769_v37  ;;  %v1020_v54 = vld [vmem:[#allocation3 + $0x4f] sm:$0xff] }
 0x11e   : > { %v969_v57 = vadd.f32 %v4004_v41, %v952_v56  ;;  %v1379_v56 = vld [vmem:[#allocation3 + $0x51] sm:$0xff] }
 0x120   : > { %v617_v55 = vpop.f32.mrf.mxu0  ;;  %v985_v59 = vmax.f32 %v969_v57, 0.0  ;;  %v1380_v57 = vld [vmem:[#allocation3 + $0x59] sm:$0xff] }
 0x121   : > { %v735_v58 = vpop.f32.mrf.mxu1  ;;  %v1046_v55 = vpack.c.bf16 %v1021_v51, %v1020_v54  ;;  %v1405_v60 = vpack.c.bf16 %v1380_v57, %v1379_v56  ;;  %v1385_v54 = vld [vmem:[#allocation3 + $0x81] sm:$0xff] }
 0x122   : > { %1001 = vst [vmem:[#allocation3 + $0x70] sm:$0xff] %v985_v59 }
 0x123   : > { %v911_v63 = vpop.f32.mrf.mxu2 }
 0x124   : > { %v953_v1 = vadd.f32 %v911_v63, %v732_v62 }
 0x126   : > { %v970_v5 = vadd.f32 %v4004_v41, %v953_v1 }
 0x128   : > { %v619_v0 = vpop.f32.mrf.mxu0  ;;  %v986_v8 = vmax.f32 %v970_v5, 0.0  ;;  %v1023_v5 = vld [vmem:[#allocation3 + $0x67] sm:$0xff] }
 0x129   : > { %v737_v6 = vpop.f32.mrf.mxu1 }
 0x12a   : > { %1002 = vst [vmem:[#allocation3 + $0x78] sm:$0xff] %v986_v8  ;;  %v1109_v9 = vpack.c.bf16 %v986_v8, %v985_v59  ;;  %v738_v22 = vadd.f32 %v737_v6, %v619_v0 }
 0x12b   : > { %1314 = vmatmul.bf16.gmra.mxu0 %v1043_v2  ;;  %v914_v10 = vpop.f32.mrf.mxu2 }
 0x12c   : > { %1494 = vmatmul.bf16.gmra.mxu1 %v1402_v7  ;;  %1215 = vmatmul.bf16.gmra.mxu3 %v1109_v9  ;;  %v1047_v10 = vpack.c.bf16 %v1023_v5, %v1022_v4  ;;  %v3686_v4 = vld [vmem:[%s4663_s3 + $0x20] sm:$0xff] }
 0x130   : > { %v621_v11 = vpop.f32.mrf.mxu0 }
 0x131   : > { %v739_v12 = vpop.f32.mrf.mxu1 }
 0x132   : > { %v740_v33 = vadd.f32 %v739_v12, %v621_v11  ;;  %v1381_v11 = vld [vmem:[#allocation3 + $0x61] sm:$0xff]  ;;  %v1382_v12 = vld [vmem:[#allocation3 + $0x69] sm:$0xff] }
 0x133   : > { %v915_v14 = vpop.f32.mrf.mxu2 }
 0x138   : > { %v624_v15 = vpop.f32.mrf.mxu0 }
 0x139   : > { %v742_v20 = vpop.f32.mrf.mxu1  ;;  %v1406_v15 = vpack.c.bf16 %v1382_v12, %v1381_v11  ;;  %v3691_v11 = vld [vmem:[%s4663_s3 + $0x48] sm:$0xff] }
 0x13b   : > { %1317 = vmatmul.bf16.gmra.mxu0 %v1044_v17  ;;  %v917_v23 = vpop.f32.mrf.mxu2 }
 0x13c   : > { %1497 = vmatmul.bf16.gmra.mxu1 %v1403_v21  ;;  %v954_v25 = vadd.f32 %v917_v23, %v738_v22  ;;  %1220 = vmatmul.bf16.gmra.mxu3 %v3769_v37  ;;  %v1025_v21 = vld [vmem:[#allocation3 + $0x77] sm:$0xff] }
 0x13e   : > { %v971_v26 = vadd.f32 %v4004_v41, %v954_v25 }
 0x140   : > { %v625_v24 = vpop.f32.mrf.mxu0  ;;  %v987_v30 = vmax.f32 %v971_v26, 0.0  ;;  %v1383_v26 = vld [vmem:[#allocation3 + $0x71] sm:$0xff] }
 0x141   : > { %v743_v27 = vpop.f32.mrf.mxu1  ;;  %v1024_v24 = vld [vmem:[#allocation3 + $0x6f] sm:$0xff] }
 0x142   : > { %1003 = vst [vmem:[#allocation3 + $0x90] sm:$0xff] %v987_v30  ;;  %v1048_v25 = vpack.c.bf16 %v1025_v21, %v1024_v24  ;;  %v1384_v27 = vld [vmem:[#allocation3 + $0x79] sm:$0xff] }
 0x143   : > { %v919_v28 = vpop.f32.mrf.mxu2  ;;  %v1407_v32 = vpack.c.bf16 %v1384_v27, %v1383_v26  ;;  %v3683_v24 = vld [vmem:[%s4663_s3 + $0x8] sm:$0xff] }
 0x144   : > { %v4080_v29 = vpop.f32.mrf.mxu3  ;;  %v955_v35 = vadd.f32 %v919_v28, %v740_v33  ;;  %v3759_v33 = vld [vmem:[#allocation2 + $0x8] sm:$0xff] }
 0x145   : > { %v4092_v28 = vpack.c.bf16 %v3759_v33, %v3759_v33 }
 0x146   : > { %v972_v40 = vadd.f32 %v4004_v41, %v955_v35 }
 0x148   : > { %v627_v34 = vpop.f32.mrf.mxu0  ;;  %v988_v45 = vmax.f32 %v972_v40, 0.0  ;;  %v3696_v40 = vld [vmem:[%s4663_s3 + $0x70] sm:$0xff] }
 0x149   : > { %v745_v42 = vpop.f32.mrf.mxu1  ;;  %v1386_v57 = vld [vmem:[#allocation3 + $0x89] sm:$0xff] }
 0x14a   : > { %1004 = vst [vmem:[#allocation3 + $0x98] sm:$0xff] %v988_v45  ;;  %v1111_v46 = vpack.c.bf16 %v988_v45, %v987_v30  ;;  %v746_v61 = vadd.f32 %v745_v42, %v627_v34  ;;  %v3697_v34 = vld [vmem:[%s4663_s3 + $0x78] sm:$0xff] }
 0x14b   : > { %1322 = vmatmul.bf16.gmra.mxu0 %v1045_v36  ;;  %v922_v47 = vpop.f32.mrf.mxu2  ;;  %1788 = vmatpush.bf16.msrb.mxu2 %v3697_v34 }
 0x14c   : > { %v4083_v43 = vpop.f32.mrf.mxu3  ;;  %1502 = vmatmul.bf16.gmra.mxu1 %v1404_v44  ;;  %1223 = vmatmul.bf16.gmra.mxu3 %v1111_v46  ;;  %v3689_v47 = vld [vmem:[%s4663_s3 + $0x38] sm:$0xff] }
 0x14d   : > { %1920 = vmatpush.bf16.msrb.mxu3 %v3689_v47 }
 0x14f   : > { %1789 = vmatpush.bf16.msrb.mxu2 %v3696_v40 }
 0x150   : > { %v629_v48 = vpop.f32.mrf.mxu0 }
 0x151   : > { %v747_v49 = vpop.f32.mrf.mxu1  ;;  %v1029_v12 = vld [vmem:[#allocation3 + $0x97] sm:$0xff]  ;;  %v1030_v47 = vld [vmem:[#allocation3 + $0x9f] sm:$0xff] }
 0x152   : > { %v748_v6 = vadd.f32 %v747_v49, %v629_v48  ;;  %v3695_v48 = vld [vmem:[%s4663_s3 + $0x68] sm:$0xff] }
 0x153   : > { %v923_v52 = vpop.f32.mrf.mxu2  ;;  %v1026_v49 = vld [vmem:[#allocation3 + $0x7f] sm:$0xff]  ;;  %1790 = vmatpush.bf16.msrb.mxu2 %v3695_v48  ;;  %v1031_v48 = vld [vmem:[#allocation3 + $0xa7] sm:$0xff] }
 0x154   : > { %v1197_v50 = vpop.f32.mrf.mxu3  ;;  %v1388_v21 = vld [vmem:[#allocation3 + $0x99] sm:$0xff] }
 0x155   : > { %v1027_v50 = vld [vmem:[#allocation3 + $0x87] sm:$0xff] }
 0x156   : > { %v1049_v56 = vpack.c.bf16 %v1027_v50, %v1026_v49 }
 0x158   : > { %v632_v53 = vpop.f32.mrf.mxu0 }
 0x159   : > { %v750_v58 = vpop.f32.mrf.mxu1 }
 0x15a   : > { %v3688_v58 = vld [vmem:[%s4663_s3 + $0x30] sm:$0xff] }
 0x15b   : > { %1325 = vmatmul.bf16.gmra.mxu0 %v1046_v55  ;;  %v925_v62 = vpop.f32.mrf.mxu2  ;;  %1921 = vmatpush.bf16.msrb.mxu3 %v3688_v58 }
 0x15c   : > { %v1198_v59 = vpop.f32.mrf.mxu3  ;;  %1505 = vmatmul.bf16.gmra.mxu1 %v1405_v60  ;;  %v956_v0 = vadd.f32 %v925_v62, %v746_v61  ;;  %1228 = vmatmul.bf16.gmra.mxu3 %v3769_v37 }
 0x15d   : > { %v3694_v59 = vld [vmem:[%s4663_s3 + $0x60] sm:$0xff] }
 0x15e   : > { %v973_v1 = vadd.f32 %v4004_v41, %v956_v0  ;;  %1791 = vmatpush.bf16.msrb.mxu2 %v3694_v59 }
 0x160   : > { %v633_v63 = vpop.f32.mrf.mxu0  ;;  %v989_v3 = vmax.f32 %v973_v1, 0.0  ;;  %v3687_v1 = vld [vmem:[%s4663_s3 + $0x28] sm:$0xff] }
 0x161   : > { %v751_v2 = vpop.f32.mrf.mxu1  ;;  %v1408_v63 = vpack.c.bf16 %v1386_v57, %v1385_v54  ;;  %1922 = vmatpush.bf16.msrb.mxu3 %v3687_v1  ;;  %v1051_v54 = vpack.c.bf16 %v1031_v48, %v1030_v47  ;;  %v3713_v47 = vld [vmem:[%s4664_s4 + $0x38] sm:$0xff] }
 0x162   : > { %1005 = vst [vmem:[#allocation3 + $0xb0] sm:$0xff] %v989_v3  ;;  %v3693_v2 = vld [vmem:[%s4663_s3 + $0x58] sm:$0xff]  ;;  %2370 = vmatpush.bf16.msra.mxu1 %v3713_v47 }
 0x163   : > { %v927_v7 = vpop.f32.mrf.mxu2  ;;  %1792 = vmatpush.bf16.msrb.mxu2 %v3693_v2 }
 0x164   : > { %v957_v9 = vadd.f32 %v927_v7, %v748_v6  ;;  %v3692_v7 = vld [vmem:[%s4663_s3 + $0x50] sm:$0xff] }
 0x165   : > { %1923 = vmatpush.bf16.msrb.mxu3 %v3686_v4 }
 0x166   : > { %v974_v13 = vadd.f32 %v4004_v41, %v957_v9  ;;  %v3685_v9 = vld [vmem:[%s4663_s3 + $0x18] sm:$0xff] }
 0x167   : > { %1793 = vmatpush.bf16.msrb.mxu2 %v3692_v7 }
 0x168   : > { %v635_v8 = vpop.f32.mrf.mxu0  ;;  %v990_v37 = vmax.f32 %v974_v13, 0.0  ;;  %v3684_v13 = vld [vmem:[%s4663_s3 + $0x10] sm:$0xff] }
 0x169   : > { %v753_v14 = vpop.f32.mrf.mxu1  ;;  %1924 = vmatpush.bf16.msrb.mxu3 %v3685_v9  ;;  %v1032_v4 = vld [vmem:[#allocation3 + $0xaf] sm:$0xff] }
 0x16a   : > { %1006 = vst [vmem:[#allocation3 + $0xb8] sm:$0xff] %v990_v37  ;;  %v1113_v16 = vpack.c.bf16 %v990_v37, %v989_v3  ;;  %v754_v35 = vadd.f32 %v753_v14, %v635_v8  ;;  %v1028_v37 = vld [vmem:[#allocation3 + $0x8f] sm:$0xff] }
 0x16b   : > { %1330 = vmatmul.bf16.gmra.mxu0 %v1047_v10  ;;  %v930_v17 = vpop.f32.mrf.mxu2  ;;  %1794 = vmatpush.bf16.msrb.mxu2 %v3691_v11 }
 0x16c   : > { %1510 = vmatmul.bf16.gmra.mxu1 %v1406_v15  ;;  %1231 = vmatmul.bf16.gmra.mxu3 %v1113_v16  ;;  %v3690_v16 = vld [vmem:[%s4663_s3 + $0x40] sm:$0xff] }
 0x16d   : > { %1925 = vmatpush.bf16.msrb.mxu3 %v3684_v13 }
 0x16f   : > { %v4088_v20 = vpop.f32.mrf.mxu3  ;;  %1795 = vmatpush.bf16.msrb.mxu2 %v3690_v16 }
 0x170   : > { %v637_v18 = vpop.f32.mrf.mxu0 }
 0x171   : > { %v755_v19 = vpop.f32.mrf.mxu1  ;;  %1926 = vmatpush.bf16.msrb.mxu3 %v3683_v24  ;;  %v1033_v2 = vld [vmem:[#allocation3 + $0xb7] sm:$0xff]  ;;  %v1034_v24 = vld [vmem:[#allocation3 + $0xbf] sm:$0xff] }
 0x172   : > { %v756_v51 = vadd.f32 %v755_v19, %v637_v18  ;;  %v1050_v18 = vpack.c.bf16 %v1029_v12, %v1028_v37  ;;  %v1387_v19 = vld [vmem:[#allocation3 + $0x91] sm:$0xff]  ;;  %v1392_v7 = vld [vmem:[#allocation3 + $0xb9] sm:$0xff] }
 0x173   : > { %v931_v22 = vpop.f32.mrf.mxu2  ;;  %v1409_v27 = vpack.c.bf16 %v1388_v21, %v1387_v19 }
 0x174   : > { %v4145_v22 = vld [vmem:[%s4665_s5 + $0x1] ss:$0 sm:$0xff] }
 0x177   : > { %v4090_v31 = vpop.f32.mrf.mxu3 }
 0x178   : > { %v640_v23 = vpop.f32.mrf.mxu0 }
 0x179   : > { %v758_v30 = vpop.f32.mrf.mxu1 }
 0x17b   : > { %1333 = vmatmul.bf16.gmra.mxu0 %v1048_v25  ;;  %v933_v36 = vpop.f32.mrf.mxu2 }
 0x17c   : > { %1513 = vmatmul.bf16.gmra.mxu1 %v1407_v32  ;;  %v958_v39 = vadd.f32 %v933_v36, %v754_v35  ;;  %1236 = vmatmul.bf16.gmra.mxu3 %v4092_v28  ;;  %v3682_v32 = vld [vmem:[%s4663_s3] sm:$0xff] }
 0x17d   : > { %1927 = vmatpush.bf16.msrb.mxu3 %v3682_v32  ;;  %v1393_v32 = vld [vmem:[#allocation3 + $0xc1] sm:$0xff] }
 0x17e   : > { %v975_v42 = vadd.f32 %v4004_v41, %v958_v39 }
 0x17f   : > { %v1205_v45 = vpop.f32.mrf.mxu3 }
 0x180   : > { %v641_v38 = vpop.f32.mrf.mxu0  ;;  %v991_v46 = vmax.f32 %v975_v42, 0.0 }
 0x181   : > { %v759_v44 = vpop.f32.mrf.mxu1 }
 0x182   : > { %1007 = vst [vmem:[#allocation3 + $0xd0] sm:$0xff] %v991_v46 }
 0x183   : > { %v935_v52 = vpop.f32.mrf.mxu2 }
 0x184   : > { %v959_v55 = vadd.f32 %v935_v52, %v756_v51 }
 0x186   : > { %v976_v60 = vadd.f32 %v4004_v41, %v959_v55  ;;  %v1390_v55 = vld [vmem:[#allocation3 + $0xa9] sm:$0xff] }
 0x187   : > { %v1206_v62 = vpop.f32.mrf.mxu3 }
 0x188   : > { %v643_v53 = vpop.f32.mrf.mxu0  ;;  %v992_v0 = vmax.f32 %v976_v60, 0.0 }
 0x189   : > { %v761_v61 = vpop.f32.mrf.mxu1 }
 0x18a   : > { %1008 = vst [vmem:[#allocation3 + $0xd8] sm:$0xff] %v992_v0  ;;  %v1115_v3 = vpack.c.bf16 %v992_v0, %v991_v46  ;;  %v762_v30 = vadd.f32 %v761_v61, %v643_v53 }
 0x18b   : > { %1338 = vmatmul.bf16.gmra.mxu0 %v1049_v56  ;;  %v938_v5 = vpop.f32.mrf.mxu2 }
 0x18c   : > { %1518 = vmatmul.bf16.gmra.mxu1 %v1408_v63  ;;  %1239 = vmatmul.bf16.gmra.mxu3 %v1115_v3 }
 0x18f   : > { %v4130_v10 = vpop.f32.mrf.mxu3 }
 0x190   : > { %v645_v6 = vpop.f32.mrf.mxu0 }
 0x191   : > { %v763_v8 = vpop.f32.mrf.mxu1  ;;  %v1037_v48 = vld [vmem:[#allocation3 + $0xd7] sm:$0xff] }
 0x192   : > { %v764_v49 = vadd.f32 %v763_v8, %v645_v6  ;;  %v1391_v6 = vld [vmem:[#allocation3 + $0xb1] sm:$0xff] }
 0x193   : > { %v939_v14 = vpop.f32.mrf.mxu2 }
 0x194   : > { %v1411_v14 = vpack.c.bf16 %v1392_v7, %v1391_v6 }
 0x197   : > { %v4150_v25 = vpop.f32.mrf.mxu3 }
 0x198   : > { %v1310_v15 = vpop.f32.mrf.mxu0 }
 0x199   : > { %v1311_v17 = vadd.f32 %v1310_v15, %v4080_v29  ;;  %v1490_v23 = vpop.f32.mrf.mxu1 }
 0x19b   : > { %1341 = vmatmul.bf16.gmra.mxu0 %v1050_v18  ;;  %v1551_v26 = vadd.f32 %v1490_v23, %v1311_v17  ;;  %v941_v33 = vpop.f32.mrf.mxu2 }
 0x19c   : > { %1521 = vmatmul.bf16.gmra.mxu1 %v1409_v27  ;;  %v960_v36 = vadd.f32 %v941_v33, %v762_v30  ;;  %1244 = vmatmul.bf16.gmra.mxu3 %v4092_v28  ;;  %v1394_v33 = vld [vmem:[#allocation3 + $0xc9] sm:$0xff] }
 0x19d   : > { %v1568_v29 = vadd.f32 %v4145_v22, %v1551_v26  ;;  %v1035_v26 = vld [vmem:[#allocation3 + $0xc7] sm:$0xff] }
 0x19e   : > { %v977_v39 = vadd.f32 %v4004_v41, %v960_v36  ;;  %v1053_v30 = vpack.c.bf16 %v1035_v26, %v1034_v24 }
 0x19f   : > { %v1584_v34 = vmax.f32 %v1568_v29, 0.0  ;;  %v1213_v42 = vpop.f32.mrf.mxu3 }
 0x1a0   : > { %v1312_v35 = vpop.f32.mrf.mxu0  ;;  %v993_v45 = vmax.f32 %v977_v39, 0.0  ;;  %v1412_v39 = vpack.c.bf16 %v1394_v33, %v1393_v32  ;;  %v3707_v32 = vld [vmem:[%s4664_s4 + $0x8] sm:$0xff] }
 0x1a1   : > { %v1313_v38 = vadd.f32 %v1312_v35, %v4083_v43  ;;  %1600 = vst [vmem:[#allocation4 + $0x10] sm:$0xff] %v1584_v34  ;;  %v1492_v40 = vpop.f32.mrf.mxu1  ;;  %v1389_v43 = vld [vmem:[#allocation3 + $0xa1] sm:$0xff] }
 0x1a2   : > { %1009 = vst [vmem:[#allocation3 + $0xf0] sm:$0xff] %v993_v45  ;;  %v1410_v60 = vpack.c.bf16 %v1390_v55, %v1389_v43  ;;  %v1395_v43 = vld [vmem:[#allocation3 + $0xd1] sm:$0xff]  ;;  %v1396_v55 = vld [vmem:[#allocation3 + $0xd9] sm:$0xff] }
 0x1a3   : > { %v1552_v44 = vadd.f32 %v1492_v40, %v1313_v38  ;;  %v943_v50 = vpop.f32.mrf.mxu2 }
 0x1a4   : > { %v961_v53 = vadd.f32 %v943_v50, %v764_v49  ;;  %v3704_v49 = vld [vmem:[%s4663_s3 + $0xb0] sm:$0xff] }
 0x1a5   : > { %v1569_v46 = vadd.f32 %v4145_v22, %v1552_v44  ;;  %v3712_v50 = vld [vmem:[%s4664_s4 + $0x30] sm:$0xff] }
 0x1a6   : > { %v978_v57 = vadd.f32 %v4004_v41, %v961_v53  ;;  %v1052_v41 = vpack.c.bf16 %v1033_v2, %v1032_v4  ;;  %2371 = vmatpush.bf16.msra.mxu1 %v3712_v50 }
 0x1a7   : > { %v1585_v51 = vmax.f32 %v1569_v46, 0.0  ;;  %v1214_v59 = vpop.f32.mrf.mxu3  ;;  %v3705_v46 = vld [vmem:[%s4663_s3 + $0xb8] sm:$0xff] }
 0x1a8   : > { %v1315_v52 = vpop.f32.mrf.mxu0  ;;  %v994_v61 = vmax.f32 %v978_v57, 0.0  ;;  %v1617_v12 = vld [vmem:[#allocation4 + $0xf] sm:$0xff]  ;;  %2114 = vmatpush.bf16.msra.mxu0 %v3705_v46 }
 0x1a9   : > { %1601 = vst [vmem:[#allocation4 + $0x18] sm:$0xff] %v1585_v51  ;;  %v1708_v56 = vpack.c.bf16 %v1585_v51, %v1584_v34  ;;  %v1495_v58 = vpop.f32.mrf.mxu1  ;;  %v1036_v52 = vld [vmem:[#allocation3 + $0xcf] sm:$0xff] }
 0x1aa   : > { %1010 = vst [vmem:[#allocation3 + $0xf8] sm:$0xff] %v994_v61  ;;  %v1117_v62 = vpack.c.bf16 %v994_v61, %v993_v45  ;;  %v1413_v61 = vpack.c.bf16 %v1396_v55, %v1395_v43 }
 0x1ab   : > { %1346 = vmatmul.bf16.gmra.mxu0 %v1051_v54  ;;  %1796 = vmatmul.bf16.vlgmr.msrb.gmra.mxu2 %v1708_v56  ;;  %v1054_v54 = vpack.c.bf16 %v1037_v48, %v1036_v52 }
 0x1ac   : > { %1526 = vmatmul.bf16.gmra.mxu1 %v1410_v60  ;;  %1247 = vmatmul.bf16.gmra.mxu3 %v1117_v62  ;;  %v3703_v62 = vld [vmem:[%s4663_s3 + $0xa8] sm:$0xff] }
 0x1ad   : > { %2115 = vmatpush.bf16.msra.mxu0 %v3704_v49 }
 0x1af   : > { %v4161_v1 = vpop.f32.mrf.mxu3 }
 0x1b0   : > { %v1316_v63 = vpop.f32.mrf.mxu0  ;;  %v1618_v8 = vld [vmem:[#allocation4 + $0x17] sm:$0xff]  ;;  %v1619_v38 = vld [vmem:[#allocation4 + $0x1f] sm:$0xff] }
 0x1b1   : > { %v1496_v0 = vpop.f32.mrf.mxu1  ;;  %v1647_v15 = vpack.c.bf16 %v1618_v8, %v1617_v12  ;;  %2116 = vmatpush.bf16.msra.mxu0 %v3703_v62  ;;  %v1399_v47 = vld [vmem:[#allocation3 + $0xf1] sm:$0xff]  ;;  %v1400_v48 = vld [vmem:[#allocation3 + $0xf9] sm:$0xff] }
 0x1b7   : > { %v4164_v11 = vpop.f32.mrf.mxu3 }
 0x1b8   : > { %v1318_v3 = vpop.f32.mrf.mxu0 }
 0x1b9   : > { %v1319_v5 = vadd.f32 %v1318_v3, %v4088_v20  ;;  %v1498_v9 = vpop.f32.mrf.mxu1 }
 0x1bb   : > { %1349 = vmatmul.bf16.gmra.mxu0 %v1052_v41  ;;  %v1553_v13 = vadd.f32 %v1498_v9, %v1319_v5  ;;  %1801 = vmatmul.bf16.gmra.mxu2 %v4092_v28  ;;  %v3702_v5 = vld [vmem:[%s4663_s3 + $0xa0] sm:$0xff]  ;;  %v3701_v9 = vld [vmem:[%s4663_s3 + $0x98] sm:$0xff] }
 0x1bc   : > { %1529 = vmatmul.bf16.gmra.mxu1 %v1411_v14  ;;  %1928 = vmatmul.bf16.vlgmr.msrb.gmra.mxu3 %v1647_v15  ;;  %v3710_v41 = vld [vmem:[%s4664_s4 + $0x20] sm:$0xff]  ;;  %v1039_v14 = vld [vmem:[#allocation3 + $0xe7] sm:$0xff] }
 0x1bd   : > { %v1570_v37 = vadd.f32 %v4145_v22, %v1553_v13  ;;  %2117 = vmatpush.bf16.msra.mxu0 %v3702_v5  ;;  %v1038_v13 = vld [vmem:[#allocation3 + $0xdf] sm:$0xff] }
 0x1bf   : > { %v1586_v16 = vmax.f32 %v1570_v37, 0.0  ;;  %v1221_v19 = vpop.f32.mrf.mxu3 }
 0x1c0   : > { %v1320_v17 = vpop.f32.mrf.mxu0  ;;  %v3700_v19 = vld [vmem:[%s4663_s3 + $0x90] sm:$0xff] }
 0x1c1   : > { %v1321_v20 = vadd.f32 %v1320_v17, %v4090_v31  ;;  %1602 = vst [vmem:[#allocation4 + $0x30] sm:$0xff] %v1586_v16  ;;  %v1500_v18 = vpop.f32.mrf.mxu1  ;;  %v1620_v31 = vld [vmem:[#allocation4 + $0x27] sm:$0xff]  ;;  %2118 = vmatpush.bf16.msra.mxu0 %v3701_v9  ;;  %v1397_v17 = vld [vmem:[#allocation3 + $0xe1] sm:$0xff] }
 0x1c2   : > { %v1648_v40 = vpack.c.bf16 %v1620_v31, %v1619_v38  ;;  %v1628_v9 = vld [vmem:[#allocation4 + $0x67] sm:$0xff] }
 0x1c3   : > { %v1554_v21 = vadd.f32 %v1500_v18, %v1321_v20  ;;  %v1398_v20 = vld [vmem:[#allocation3 + $0xe9] sm:$0xff] }
 0x1c5   : > { %v1571_v23 = vadd.f32 %v4145_v22, %v1554_v21  ;;  %v3708_v21 = vld [vmem:[%s4664_s4 + $0x10] sm:$0xff]  ;;  %2119 = vmatpush.bf16.msra.mxu0 %v3700_v19 }
 0x1c7   : > { %v1587_v27 = vmax.f32 %v1571_v23, 0.0  ;;  %v1222_v36 = vpop.f32.mrf.mxu3 }
 0x1c8   : > { %v1323_v29 = vpop.f32.mrf.mxu0  ;;  %v1621_v59 = vld [vmem:[#allocation4 + $0x2f] sm:$0xff]  ;;  %v3706_v36 = vld [vmem:[%s4664_s4] sm:$0xff] }
 0x1c9   : > { %1603 = vst [vmem:[#allocation4 + $0x38] sm:$0xff] %v1587_v27  ;;  %v1710_v34 = vpack.c.bf16 %v1587_v27, %v1586_v16  ;;  %v1503_v35 = vpop.f32.mrf.mxu1  ;;  %v1055_v16 = vpack.c.bf16 %v1039_v14, %v1038_v13  ;;  %v1624_v27 = vld [vmem:[#allocation4 + $0x47] sm:$0xff]  ;;  %v1414_v29 = vpack.c.bf16 %v1398_v20, %v1397_v17 }
 0x1ca   : > { %v3698_v35 = vld [vmem:[%s4663_s3 + $0x80] sm:$0xff] }
 0x1cb   : > { %1354 = vmatmul.bf16.gmra.mxu0 %v1053_v30  ;;  %1806 = vmatmul.bf16.gmra.mxu2 %v1710_v34  ;;  %v3699_v30 = vld [vmem:[%s4663_s3 + $0x88] sm:$0xff] }
 0x1cc   : > { %1534 = vmatmul.bf16.gmra.mxu1 %v1412_v39  ;;  %1933 = vmatmul.bf16.gmra.mxu3 %v1648_v40  ;;  %v1041_v39 = vld [vmem:[#allocation3 + $0xf7] sm:$0xff] }
 0x1cd   : > { %2120 = vmatpush.bf16.msra.mxu0 %v3699_v30 }
 0x1cf   : > { %v4170_v45 = vpop.f32.mrf.mxu3 }
 0x1d0   : > { %v1324_v42 = vpop.f32.mrf.mxu0  ;;  %v1622_v56 = vld [vmem:[#allocation4 + $0x37] sm:$0xff]  ;;  %v1623_v26 = vld [vmem:[#allocation4 + $0x3f] sm:$0xff] }
 0x1d1   : > { %v1504_v44 = vpop.f32.mrf.mxu1  ;;  %v1649_v63 = vpack.c.bf16 %v1622_v56, %v1621_v59  ;;  %v1650_v33 = vpack.c.bf16 %v1624_v27, %v1623_v26  ;;  %2121 = vmatpush.bf16.msra.mxu0 %v3698_v35  ;;  %v1040_v42 = vld [vmem:[#allocation3 + $0xef] sm:$0xff] }
 0x1d2   : > { %v1056_v46 = vpack.c.bf16 %v1041_v39, %v1040_v42  ;;  %v2263_v39 = vld [vmem:[#allocation2 + $0x30] sm:$0xff] }
 0x1d7   : > { %v4185_v58 = vpop.f32.mrf.mxu3 }
 0x1d8   : > { %v1326_v51 = vpop.f32.mrf.mxu0 }
 0x1d9   : > { %v1327_v53 = vadd.f32 %v1326_v51, %v4130_v10  ;;  %v1506_v57 = vpop.f32.mrf.mxu1  ;;  %v3711_v10 = vld [vmem:[%s4664_s4 + $0x28] sm:$0xff] }
 0x1da   : > { %2372 = vmatpush.bf16.msra.mxu1 %v3711_v10  ;;  %v2004_v10 = vld [vmem:[#allocation4 + $0x11] sm:$0xff] }
 0x1db   : > { %1357 = vmatmul.bf16.gmra.mxu0 %v1054_v54  ;;  %v1555_v60 = vadd.f32 %v1506_v57, %v1327_v53  ;;  %1811 = vmatmul.bf16.gmra.mxu2 %v4092_v28  ;;  %v1415_v54 = vpack.c.bf16 %v1400_v48, %v1399_v47 }
 0x1dc   : > { %1537 = vmatmul.bf16.gmra.mxu1 %v1413_v61  ;;  %1938 = vmatmul.bf16.gmra.mxu3 %v1649_v63  ;;  %v2005_v63 = vld [vmem:[#allocation4 + $0x19] sm:$0xff] }
 0x1dd   : > { %v1572_v0 = vadd.f32 %v4145_v22, %v1555_v60  ;;  %v2034_v5 = vpack.c.bf16 %v2005_v63, %v2004_v10 }
 0x1de   : > { %2373 = vmatpush.bf16.msra.mxu1 %v3710_v41 }
 0x1df   : > { %v1588_v2 = vmax.f32 %v1572_v0, 0.0  ;;  %v1229_v7 = vpop.f32.mrf.mxu3  ;;  %v2259_v0 = vld [vmem:[#allocation2 + $0x10] sm:$0xff] }
 0x1e0   : > { %v1328_v3 = vpop.f32.mrf.mxu0 }
 0x1e1   : > { %v1329_v4 = vadd.f32 %v1328_v3, %v4150_v25  ;;  %1604 = vst [vmem:[#allocation4 + $0x50] sm:$0xff] %v1588_v2  ;;  %v1508_v6 = vpop.f32.mrf.mxu1  ;;  %v3709_v25 = vld [vmem:[%s4664_s4 + $0x18] sm:$0xff] }
 0x1e2   : > { %2374 = vmatpush.bf16.msra.mxu1 %v3709_v25 }
 0x1e3   : > { %v1556_v8 = vadd.f32 %v1508_v6, %v1329_v4 }
 0x1e5   : > { %v1573_v12 = vadd.f32 %v4145_v22, %v1556_v8 }
 0x1e6   : > { %2375 = vmatpush.bf16.msra.mxu1 %v3708_v21 }
 0x1e7   : > { %v1589_v15 = vmax.f32 %v1573_v12, 0.0  ;;  %v1230_v24 = vpop.f32.mrf.mxu3 }
 0x1e8   : > { %v1331_v37 = vpop.f32.mrf.mxu0  ;;  %v1625_v52 = vld [vmem:[#allocation4 + $0x4f] sm:$0xff] }
 0x1e9   : > { %1605 = vst [vmem:[#allocation4 + $0x58] sm:$0xff] %v1589_v15  ;;  %v1712_v18 = vpack.c.bf16 %v1589_v15, %v1588_v2  ;;  %v1511_v23 = vpop.f32.mrf.mxu1  ;;  %v2260_v2 = vld [vmem:[#allocation2 + $0x18] sm:$0xff]  ;;  %v2006_v15 = vld [vmem:[#allocation4 + $0x21] sm:$0xff]  ;;  %v2007_v37 = vld [vmem:[#allocation4 + $0x29] sm:$0xff] }
 0x1ea   : > { %2376 = vmatpush.bf16.msra.mxu1 %v3707_v32  ;;  %v2289_v41 = vpack.c.bf16 %v2260_v2, %v2259_v0  ;;  %v2035_v20 = vpack.c.bf16 %v2007_v37, %v2006_v15  ;;  %v2267_v37 = vld [vmem:[#allocation2 + $0x50] sm:$0xff] }
 0x1eb   : > { %1362 = vmatmul.bf16.gmra.mxu0 %v1055_v16  ;;  %1816 = vmatmul.bf16.gmra.mxu2 %v1712_v18 }
 0x1ec   : > { %1542 = vmatmul.bf16.gmra.mxu1 %v1414_v29  ;;  %1943 = vmatmul.bf16.gmra.mxu3 %v1650_v33 }
 0x1ee   : > { %2377 = vmatpush.bf16.msra.mxu1 %v3706_v36  ;;  %v2008_v36 = vld [vmem:[#allocation4 + $0x31] sm:$0xff] }
 0x1ef   : > { %v4227_v31 = vpop.f32.mrf.mxu3 }
 0x1f0   : > { %v1332_v34 = vpop.f32.mrf.mxu0  ;;  %v1626_v49 = vld [vmem:[#allocation4 + $0x57] sm:$0xff] }
 0x1f1   : > { %v1512_v38 = vpop.f32.mrf.mxu1  ;;  %v1651_v43 = vpack.c.bf16 %v1626_v49, %v1625_v52  ;;  %v1632_v52 = vld [vmem:[#allocation4 + $0x87] sm:$0xff]  ;;  %v2013_v15 = vld [vmem:[#allocation4 + $0x59] sm:$0xff] }
 0x1f2   : > { %v2009_v38 = vld [vmem:[#allocation4 + $0x39] sm:$0xff] }
 0x1f7   : > { %v4230_v51 = vpop.f32.mrf.mxu3 }
 0x1f8   : > { %v1334_v40 = vpop.f32.mrf.mxu0 }
 0x1f9   : > { %v1335_v44 = vadd.f32 %v1334_v40, %v4161_v1  ;;  %v1514_v50 = vpop.f32.mrf.mxu1  ;;  %v2264_v40 = vld [vmem:[#allocation2 + $0x38] sm:$0xff] }
 0x1fa   : > { %v2291_v47 = vpack.c.bf16 %v2264_v40, %v2263_v39 }
 0x1fb   : > { %1365 = vmatmul.bf16.gmra.mxu0 %v1056_v46  ;;  %v1557_v53 = vadd.f32 %v1514_v50, %v1335_v44  ;;  %1821 = vmatmul.bf16.gmra.mxu2 %v4092_v28  ;;  %v2036_v46 = vpack.c.bf16 %v2009_v38, %v2008_v36  ;;  %v2014_v38 = vld [vmem:[#allocation4 + $0x61] sm:$0xff] }
 0x1fc   : > { %1545 = vmatmul.bf16.gmra.mxu1 %v1415_v54  ;;  %1948 = vmatmul.bf16.gmra.mxu3 %v1651_v43 }
 0x1fd   : > { %v1574_v55 = vadd.f32 %v4145_v22, %v1557_v53 }
 0x1ff   : > { %v1590_v56 = vmax.f32 %v1574_v55, 0.0  ;;  %v1237_v60 = vpop.f32.mrf.mxu3 }
 0x200   : > { %v1336_v57 = vpop.f32.mrf.mxu0 }
 0x201   : > { %v1337_v1 = vadd.f32 %v1336_v57, %v4164_v11  ;;  %1606 = vst [vmem:[#allocation4 + $0x70] sm:$0xff] %v1590_v56  ;;  %v1516_v59 = vpop.f32.mrf.mxu1  ;;  %v1627_v11 = vld [vmem:[#allocation4 + $0x5f] sm:$0xff] }
 0x202   : > { %v1652_v25 = vpack.c.bf16 %v1628_v9, %v1627_v11  ;;  %v2010_v57 = vld [vmem:[#allocation4 + $0x41] sm:$0xff] }
 0x203   : > { %v1558_v61 = vadd.f32 %v1516_v59, %v1337_v1  ;;  %v2011_v1 = vld [vmem:[#allocation4 + $0x49] sm:$0xff] }
 0x205   : > { %v1575_v62 = vadd.f32 %v4145_v22, %v1558_v61 }
 0x207   : > { %v1591_v3 = vmax.f32 %v1575_v62, 0.0  ;;  %v1238_v8 = vpop.f32.mrf.mxu3  ;;  %v2037_v62 = vpack.c.bf16 %v2011_v1, %v2010_v57 }
 0x208   : > { %v1339_v4 = vpop.f32.mrf.mxu0  ;;  %v1629_v23 = vld [vmem:[#allocation4 + $0x6f] sm:$0xff] }
 0x209   : > { %1607 = vst [vmem:[#allocation4 + $0x78] sm:$0xff] %v1591_v3  ;;  %v1714_v6 = vpack.c.bf16 %v1591_v3, %v1590_v56  ;;  %v1519_v7 = vpop.f32.mrf.mxu1  ;;  %v2015_v39 = vld [vmem:[#allocation4 + $0x69] sm:$0xff] }
 0x20b   : > { %2122 = vmatmul.bf16.vlgmr.msra.gmra.mxu0 %v2034_v5  ;;  %1826 = vmatmul.bf16.gmra.mxu2 %v1714_v6 }
 0x20c   : > { %2378 = vmatmul.bf16.vlgmr.msra.gmra.mxu1 %v2289_v41  ;;  %1953 = vmatmul.bf16.gmra.mxu3 %v1652_v25 }
 0x20f   : > { %v4236_v14 = vpop.f32.mrf.mxu3 }
 0x210   : > { %v1340_v12 = vpop.f32.mrf.mxu0  ;;  %v1630_v18 = vld [vmem:[#allocation4 + $0x77] sm:$0xff] }
 0x211   : > { %v1520_v13 = vpop.f32.mrf.mxu1  ;;  %v1653_v26 = vpack.c.bf16 %v1630_v18, %v1629_v23 }
 0x212   : > { %v2012_v13 = vld [vmem:[#allocation4 + $0x51] sm:$0xff] }
 0x217   : > { %v4239_v21 = vpop.f32.mrf.mxu3 }
 0x218   : > { %v1342_v16 = vpop.f32.mrf.mxu0 }
 0x219   : > { %v1343_v17 = vadd.f32 %v1342_v16, %v4170_v45  ;;  %v1522_v19 = vpop.f32.mrf.mxu1  ;;  %v2268_v16 = vld [vmem:[#allocation2 + $0x58] sm:$0xff] }
 0x21a   : > { %v2293_v23 = vpack.c.bf16 %v2268_v16, %v2267_v37 }
 0x21b   : > { %2127 = vmatmul.bf16.gmra.mxu0 %v2035_v20  ;;  %v1559_v24 = vadd.f32 %v1522_v19, %v1343_v17  ;;  %1831 = vmatmul.bf16.gmra.mxu2 %v4092_v28  ;;  %v2038_v19 = vpack.c.bf16 %v2013_v15, %v2012_v13 }
 0x21c   : > { %2383 = vmatmul.bf16.gmra.mxu1 %v4092_v28  ;;  %1958 = vmatmul.bf16.gmra.mxu3 %v1653_v26 }
 0x21d   : > { %v1576_v27 = vadd.f32 %v4145_v22, %v1559_v24 }
 0x21f   : > { %v1592_v29 = vmax.f32 %v1576_v27, 0.0  ;;  %v1245_v33 = vpop.f32.mrf.mxu3 }
 0x220   : > { %v1344_v30 = vpop.f32.mrf.mxu0 }
 0x221   : > { %v1345_v45 = vadd.f32 %v1344_v30, %v4185_v58  ;;  %1608 = vst [vmem:[#allocation4 + $0x90] sm:$0xff] %v1592_v29  ;;  %v1524_v32 = vpop.f32.mrf.mxu1  ;;  %v1631_v58 = vld [vmem:[#allocation4 + $0x7f] sm:$0xff] }
 0x222   : > { %v1654_v53 = vpack.c.bf16 %v1632_v52, %v1631_v58 }
 0x223   : > { %v1560_v34 = vadd.f32 %v1524_v32, %v1345_v45 }
 0x225   : > { %v1577_v35 = vadd.f32 %v4145_v22, %v1560_v34 }
 0x227   : > { %v1593_v42 = vmax.f32 %v1577_v35, 0.0  ;;  %v1246_v50 = vpop.f32.mrf.mxu3 }
 0x228   : > { %v1347_v44 = vpop.f32.mrf.mxu0  ;;  %v1633_v2 = vld [vmem:[#allocation4 + $0x8f] sm:$0xff] }
 0x229   : > { %1609 = vst [vmem:[#allocation4 + $0x98] sm:$0xff] %v1593_v42  ;;  %v1716_v48 = vpack.c.bf16 %v1593_v42, %v1592_v29  ;;  %v1527_v49 = vpop.f32.mrf.mxu1  ;;  %v1636_v29 = vld [vmem:[#allocation4 + $0xa7] sm:$0xff] }
 0x22b   : > { %2132 = vmatmul.bf16.gmra.mxu0 %v2036_v46  ;;  %1836 = vmatmul.bf16.gmra.mxu2 %v1716_v48  ;;  %v2039_v46 = vpack.c.bf16 %v2015_v39, %v2014_v38 }
 0x22c   : > { %2388 = vmatmul.bf16.gmra.mxu1 %v2291_v47  ;;  %1963 = vmatmul.bf16.gmra.mxu3 %v1654_v53 }
 0x22e   : > { %v1797_v54 = vpop.f32.mrf.mxu2 }
 0x22f   : > { %v4246_v56 = vpop.f32.mrf.mxu3 }
 0x230   : > { %v1348_v43 = vpop.f32.mrf.mxu0  ;;  %v1634_v10 = vld [vmem:[#allocation4 + $0x97] sm:$0xff]  ;;  %v1635_v27 = vld [vmem:[#allocation4 + $0x9f] sm:$0xff] }
 0x231   : > { %v1528_v55 = vpop.f32.mrf.mxu1  ;;  %v1655_v4 = vpack.c.bf16 %v1634_v10, %v1633_v2  ;;  %v1656_v45 = vpack.c.bf16 %v1636_v29, %v1635_v27  ;;  %v2016_v10 = vld [vmem:[#allocation4 + $0x71] sm:$0xff] }
 0x232   : > { %v2271_v2 = vld [vmem:[#allocation2 + $0x70] sm:$0xff] }
 0x236   : > { %v1799_v59 = vpop.f32.mrf.mxu2 }
 0x237   : > { %v4249_v0 = vpop.f32.mrf.mxu3 }
 0x238   : > { %v1350_v60 = vpop.f32.mrf.mxu0 }
 0x239   : > { %v1351_v61 = vadd.f32 %v1350_v60, %v4227_v31  ;;  %v1530_v63 = vpop.f32.mrf.mxu1 }
 0x23b   : > { %2137 = vmatmul.bf16.gmra.mxu0 %v2037_v62  ;;  %v1561_v3 = vadd.f32 %v1530_v63, %v1351_v61  ;;  %1841 = vmatmul.bf16.gmra.mxu2 %v4092_v28  ;;  %v2017_v63 = vld [vmem:[#allocation4 + $0x79] sm:$0xff] }
 0x23c   : > { %2393 = vmatmul.bf16.gmra.mxu1 %v4092_v28  ;;  %1968 = vmatmul.bf16.gmra.mxu3 %v1655_v4 }
 0x23d   : > { %v1578_v5 = vadd.f32 %v4145_v22, %v1561_v3  ;;  %v2272_v3 = vld [vmem:[#allocation2 + $0x78] sm:$0xff] }
 0x23e   : > { %v1802_v41 = vpop.f32.mrf.mxu2 }
 0x23f   : > { %v1594_v6 = vmax.f32 %v1578_v5, 0.0  ;;  %v1929_v11 = vpop.f32.mrf.mxu3 }
 0x240   : > { %v1352_v7 = vpop.f32.mrf.mxu0  ;;  %v4255_v25 = vadd.f32 %v1929_v11, %v1797_v54 }
 0x241   : > { %v1353_v31 = vadd.f32 %v1352_v7, %v4230_v51  ;;  %1610 = vst [vmem:[#allocation4 + $0xb0] sm:$0xff] %v1594_v6  ;;  %v1532_v8 = vpop.f32.mrf.mxu1  ;;  %v2295_v7 = vpack.c.bf16 %v2272_v3, %v2271_v2  ;;  %v1644_v2 = vld [vmem:[#allocation4 + $0xe7] sm:$0xff] }
 0x243   : > { %v1562_v9 = vadd.f32 %v1532_v8, %v1353_v31 }
 0x245   : > { %v1579_v12 = vadd.f32 %v4145_v22, %v1562_v9  ;;  %v1640_v9 = vld [vmem:[#allocation4 + $0xc7] sm:$0xff] }
 0x246   : > { %v1804_v17 = vpop.f32.mrf.mxu2 }
 0x247   : > { %v1595_v20 = vmax.f32 %v1579_v12, 0.0  ;;  %v1931_v26 = vpop.f32.mrf.mxu3 }
 0x248   : > { %v1355_v18 = vpop.f32.mrf.mxu0  ;;  %v4258_v30 = vadd.f32 %v1931_v26, %v1799_v59  ;;  %v1637_v50 = vld [vmem:[#allocation4 + $0xaf] sm:$0xff] }
 0x249   : > { %1611 = vst [vmem:[#allocation4 + $0xb8] sm:$0xff] %v1595_v20  ;;  %v1718_v24 = vpack.c.bf16 %v1595_v20, %v1594_v6  ;;  %v1535_v51 = vpop.f32.mrf.mxu1  ;;  %v2040_v6 = vpack.c.bf16 %v2017_v63, %v2016_v10  ;;  %v2018_v18 = vld [vmem:[#allocation4 + $0x81] sm:$0xff] }
 0x24b   : > { %2142 = vmatmul.bf16.gmra.mxu0 %v2038_v19  ;;  %1846 = vmatmul.bf16.gmra.mxu2 %v1718_v24  ;;  %v2019_v19 = vld [vmem:[#allocation4 + $0x89] sm:$0xff] }
 0x24c   : > { %2398 = vmatmul.bf16.gmra.mxu1 %v2293_v23  ;;  %1973 = vmatmul.bf16.gmra.mxu3 %v1656_v45  ;;  %v2041_v26 = vpack.c.bf16 %v2019_v19, %v2018_v18 }
 0x24e   : > { %v1807_v32 = vpop.f32.mrf.mxu2 }
 0x24f   : > { %v1934_v35 = vpop.f32.mrf.mxu3 }
 0x250   : > { %v1356_v33 = vpop.f32.mrf.mxu0  ;;  %v4260_v36 = vadd.f32 %v1934_v35, %v1802_v41  ;;  %v1638_v47 = vld [vmem:[#allocation4 + $0xb7] sm:$0xff]  ;;  %v1639_v11 = vld [vmem:[#allocation4 + $0xbf] sm:$0xff] }
 0x251   : > { %v1536_v34 = vpop.f32.mrf.mxu1  ;;  %v1657_v53 = vpack.c.bf16 %v1638_v47, %v1637_v50  ;;  %v1658_v13 = vpack.c.bf16 %v1640_v9, %v1639_v11  ;;  %v2021_v50 = vld [vmem:[#allocation4 + $0x99] sm:$0xff] }
 0x256   : > { %v1809_v40 = vpop.f32.mrf.mxu2 }
 0x257   : > { %v1936_v49 = vpop.f32.mrf.mxu3 }
 0x258   : > { %v1358_v42 = vpop.f32.mrf.mxu0  ;;  %v4264_v52 = vadd.f32 %v1936_v49, %v1804_v17  ;;  %v2020_v49 = vld [vmem:[#allocation4 + $0x91] sm:$0xff] }
 0x259   : > { %v1359_v44 = vadd.f32 %v1358_v42, %v4236_v14  ;;  %v1538_v48 = vpop.f32.mrf.mxu1 }
 0x25b   : > { %2147 = vmatmul.bf16.gmra.mxu0 %v2039_v46  ;;  %v1563_v58 = vadd.f32 %v1538_v48, %v1359_v44  ;;  %1851 = vmatmul.bf16.gmra.mxu2 %v4092_v28 }
 0x25c   : > { %2403 = vmatmul.bf16.gmra.mxu1 %v4092_v28  ;;  %1978 = vmatmul.bf16.gmra.mxu3 %v1657_v53  ;;  %v2275_v53 = vld [vmem:[#allocation2 + $0x90] sm:$0xff] }
 0x25d   : > { %v1580_v54 = vadd.f32 %v4145_v22, %v1563_v58  ;;  %v4295_v58 = vld [vmem:[%s4665_s5 + $0x2] ss:$0 sm:$0xff] }
 0x25e   : > { %v1812_v43 = vpop.f32.mrf.mxu2 }
 0x25f   : > { %v1596_v55 = vmax.f32 %v1580_v54, 0.0  ;;  %v1939_v59 = vpop.f32.mrf.mxu3  ;;  %v2276_v54 = vld [vmem:[#allocation2 + $0x98] sm:$0xff] }
 0x260   : > { %v1360_v57 = vpop.f32.mrf.mxu0  ;;  %v4269_v61 = vadd.f32 %v1939_v59, %v1807_v32 }
 0x261   : > { %v1361_v14 = vadd.f32 %v1360_v57, %v4239_v21  ;;  %1612 = vst [vmem:[#allocation4 + $0xd0] sm:$0xff] %v1596_v55  ;;  %v1540_v1 = vpop.f32.mrf.mxu1  ;;  %v4302_v57 = vld [vmem:[%s4665_s5 + $0x3] ss:$0 sm:$0xff] }
 0x263   : > { %v1564_v60 = vadd.f32 %v1540_v1, %v1361_v14  ;;  %v2042_v14 = vpack.c.bf16 %v2021_v50, %v2020_v49  ;;  %v2297_v1 = vpack.c.bf16 %v2276_v54, %v2275_v53  ;;  %v2024_v49 = vld [vmem:[#allocation4 + $0xb1] sm:$0xff]  ;;  %v2025_v50 = vld [vmem:[#allocation4 + $0xb9] sm:$0xff] }
 0x264   : > { %v2279_v53 = vld [vmem:[#allocation2 + $0xb0] sm:$0xff]  ;;  %v2280_v54 = vld [vmem:[#allocation2 + $0xb8] sm:$0xff] }
 0x265   : > { %v1581_v62 = vadd.f32 %v4145_v22, %v1564_v60 }
 0x266   : > { %v4272_v4 = vpop.f32.mrf.mxu2 }
 0x267   : > { %v1597_v5 = vmax.f32 %v1581_v62, 0.0  ;;  %v1941_v8 = vpop.f32.mrf.mxu3 }
 0x268   : > { %v1363_v41 = vpop.f32.mrf.mxu0  ;;  %v4274_v12 = vadd.f32 %v1941_v8, %v1809_v40  ;;  %v1641_v32 = vld [vmem:[#allocation4 + $0xcf] sm:$0xff] }
 0x269   : > { %1613 = vst [vmem:[#allocation4 + $0xd8] sm:$0xff] %v1597_v5  ;;  %v1720_v21 = vpack.c.bf16 %v1597_v5, %v1596_v55  ;;  %v1543_v31 = vpop.f32.mrf.mxu1 }
 0x26b   : > { %2152 = vmatmul.bf16.gmra.mxu0 %v2040_v6  ;;  %1856 = vmatmul.bf16.gmra.mxu2 %v1720_v21 }
 0x26c   : > { %2408 = vmatmul.bf16.gmra.mxu1 %v2295_v7  ;;  %1983 = vmatmul.bf16.gmra.mxu3 %v1658_v13  ;;  %v2022_v13 = vld [vmem:[#allocation4 + $0xa1] sm:$0xff] }
 0x26e   : > { %v1817_v15 = vpop.f32.mrf.mxu2 }
 0x26f   : > { %v1944_v17 = vpop.f32.mrf.mxu3 }
 0x270   : > { %v1364_v37 = vpop.f32.mrf.mxu0  ;;  %v4276_v20 = vadd.f32 %v1944_v17, %v1812_v43  ;;  %v1642_v27 = vld [vmem:[#allocation4 + $0xd7] sm:$0xff]  ;;  %v1643_v63 = vld [vmem:[#allocation4 + $0xdf] sm:$0xff] }
 0x271   : > { %v1544_v16 = vpop.f32.mrf.mxu1  ;;  %v1659_v34 = vpack.c.bf16 %v1642_v27, %v1641_v32  ;;  %v1660_v41 = vpack.c.bf16 %v1644_v2, %v1643_v63 }
 0x276   : > { %v4278_v23 = vpop.f32.mrf.mxu2 }
 0x277   : > { %v4281_v45 = vpop.f32.mrf.mxu3 }
 0x278   : > { %v1366_v24 = vpop.f32.mrf.mxu0 }
 0x279   : > { %v1367_v51 = vadd.f32 %v1366_v24, %v4246_v56  ;;  %v1546_v29 = vpop.f32.mrf.mxu1 }
 0x27b   : > { %2157 = vmatmul.bf16.gmra.mxu0 %v2041_v26  ;;  %v1565_v33 = vadd.f32 %v1546_v29, %v1367_v51  ;;  %1861 = vmatmul.bf16.gmra.mxu2 %v4092_v28 }
 0x27c   : > { %2413 = vmatmul.bf16.gmra.mxu1 %v4092_v28  ;;  %1988 = vmatmul.bf16.gmra.mxu3 %v1659_v34 }
 0x27d   : > { %v1582_v35 = vadd.f32 %v4145_v22, %v1565_v33 }
 0x27e   : > { %v4286_v38 = vpop.f32.mrf.mxu2 }
 0x27f   : > { %v1598_v39 = vmax.f32 %v1582_v35, 0.0  ;;  %v1949_v44 = vpop.f32.mrf.mxu3 }
 0x280   : > { %v1368_v40 = vpop.f32.mrf.mxu0  ;;  %v4289_v47 = vadd.f32 %v1949_v44, %v1817_v15  ;;  %v2023_v15 = vld [vmem:[#allocation4 + $0xa9] sm:$0xff] }
 0x281   : > { %v1369_v56 = vadd.f32 %v1368_v40, %v4249_v0  ;;  %1614 = vst [vmem:[#allocation4 + $0xf0] sm:$0xff] %v1598_v39  ;;  %v1548_v42 = vpop.f32.mrf.mxu1  ;;  %v2043_v19 = vpack.c.bf16 %v2023_v15, %v2022_v13  ;;  %v2027_v13 = vld [vmem:[#allocation4 + $0xc9] sm:$0xff] }
 0x283   : > { %v1566_v46 = vadd.f32 %v1548_v42, %v1369_v56 }
 0x285   : > { %v1583_v48 = vadd.f32 %v4145_v22, %v1566_v46 }
 0x286   : > { %v4297_v43 = vpop.f32.mrf.mxu2 }
 0x287   : > { %v1599_v0 = vmax.f32 %v1583_v48, 0.0  ;;  %v4306_v10 = vpop.f32.mrf.mxu3 }
 0x288   : > { %v2123_v55 = vpop.f32.mrf.mxu0  ;;  %v1645_v32 = vld [vmem:[#allocation4 + $0xef] sm:$0xff] }
 0x289   : > { %v2198_v22 = vadd.f32 %v2123_v55, %v4255_v25  ;;  %1615 = vst [vmem:[#allocation4 + $0xf8] sm:$0xff] %v1599_v0  ;;  %v1722_v59 = vpack.c.bf16 %v1599_v0, %v1598_v39  ;;  %v2379_v62 = vpop.f32.mrf.mxu1 }
 0x28a   : > { %v2380_v3 = vadd.f32 %v4302_v57, %v2379_v62 }
 0x28b   : > { %v2229_v60 = vadd.f32 %v4295_v58, %v2198_v22  ;;  %2162 = vmatmul.bf16.gmra.mxu0 %v2042_v14  ;;  %1866 = vmatmul.bf16.gmra.mxu2 %v1722_v59 }
 0x28c   : > { %2418 = vmatmul.bf16.gmra.mxu1 %v2297_v1  ;;  %1993 = vmatmul.bf16.gmra.mxu3 %v1660_v41  ;;  %v2299_v1 = vpack.c.bf16 %v2280_v54, %v2279_v53  ;;  %v2029_v53 = vld [vmem:[#allocation4 + $0xd9] sm:$0xff]  ;;  %v2283_v54 = vld [vmem:[#allocation2 + $0xd0] sm:$0xff] }
 0x28d   : > { %v2454_v5 = vadd.f32 %v2380_v3, %v2229_v60 }
 0x28e   : > { %v4309_v25 = vpop.f32.mrf.mxu2 }
 0x28f   : > { %v4313_v8 = vpop.f32.mrf.mxu3  ;;  %v2484_v37 = vmax.f32 %v2454_v5, 0.0 }
 0x290   : > { %v2125_v6 = vpop.f32.mrf.mxu0  ;;  %v1646_v24 = vld [vmem:[#allocation4 + $0xf7] sm:$0xff] }
 0x291   : > { %v2199_v7 = vadd.f32 %v2125_v6, %v4258_v30  ;;  %v2381_v31 = vpop.f32.mrf.mxu1  ;;  %v1661_v34 = vpack.c.bf16 %v1646_v24, %v1645_v32 }
 0x292   : > { %v2382_v11 = vadd.f32 %v4302_v57, %v2381_v31 }
 0x293   : > { %v2230_v21 = vadd.f32 %v4295_v58, %v2199_v7 }
 0x295   : > { %v2455_v9 = vadd.f32 %v2382_v11, %v2230_v21 }
 0x296   : > { %v4317_v51 = vpop.f32.mrf.mxu2 }
 0x297   : > { %v2485_v16 = vmax.f32 %v2455_v9, 0.0  ;;  %v4322_v29 = vpop.f32.mrf.mxu3  ;;  %v2026_v9 = vld [vmem:[#allocation4 + $0xc1] sm:$0xff] }
 0x298   : > { %v2128_v17 = vpop.f32.mrf.mxu0 }
 0x299   : > { %v2200_v18 = vadd.f32 %v2128_v17, %v4260_v36  ;;  %v4319_v30 = vpack.c.bf16 %v2485_v16, %v2484_v37  ;;  %v2384_v27 = vpop.f32.mrf.mxu1 }
 0x29a   : > { %v2385_v33 = vadd.f32 %v4302_v57, %v2384_v27 }
 0x29b   : > { %v2231_v26 = vadd.f32 %v4295_v58, %v2200_v18  ;;  %2167 = vmatmul.bf16.gmra.mxu0 %v2043_v19  ;;  %v2045_v19 = vpack.c.bf16 %v2027_v13, %v2026_v9  ;;  %v2030_v9 = vld [vmem:[#allocation4 + $0xe1] sm:$0xff]  ;;  %v2031_v13 = vld [vmem:[#allocation4 + $0xe9] sm:$0xff] }
 0x29c   : > { %2423 = vmatmul.bf16.gmra.mxu1 %v4092_v28  ;;  %1998 = vmatmul.bf16.gmra.mxu3 %v1661_v34  ;;  %v1947_v34 = vadd.f32 %v4281_v45, %v4272_v4 }
 0x29d   : > { %v2456_v35 = vadd.f32 %v2385_v33, %v2231_v26 }
 0x29e   : > { %v4331_v46 = vpop.f32.mrf.mxu2 }
 0x29f   : > { %v4328_v42 = vpop.f32.mrf.mxu3  ;;  %v2486_v0 = vmax.f32 %v2456_v35, 0.0 }
 0x2a0   : > { %v2130_v36 = vpop.f32.mrf.mxu0 }
 0x2a1   : > { %v2201_v39 = vadd.f32 %v2130_v36, %v4264_v52  ;;  %v2386_v56 = vpop.f32.mrf.mxu1  ;;  %v2044_v52 = vpack.c.bf16 %v2025_v50, %v2024_v49  ;;  %v2028_v50 = vld [vmem:[#allocation4 + $0xd1] sm:$0xff] }
 0x2a2   : > { %v2387_v44 = vadd.f32 %v4302_v57, %v2386_v56 }
 0x2a3   : > { %v2232_v40 = vadd.f32 %v4295_v58, %v2201_v39 }
 0x2a5   : > { %v2457_v48 = vadd.f32 %v2387_v44, %v2232_v40 }
 0x2a6   : > { %v4340_v5 = vpop.f32.mrf.mxu2 }
 0x2a7   : > { %v2487_v55 = vmax.f32 %v2457_v48, 0.0  ;;  %v4337_v63 = vpop.f32.mrf.mxu3 }
 0x2a8   : > { %v2133_v22 = vpop.f32.mrf.mxu0 }
 0x2a9   : > { %v2202_v14 = vadd.f32 %v2133_v22, %v4269_v61  ;;  %v4334_v59 = vpack.c.bf16 %v2487_v55, %v2486_v0  ;;  %v2389_v62 = vpop.f32.mrf.mxu1  ;;  %v2284_v0 = vld [vmem:[#allocation2 + $0xd8] sm:$0xff] }
 0x2aa   : > { %v2390_v2 = vadd.f32 %v4302_v57, %v2389_v62 }
 0x2ab   : > { %v2233_v60 = vadd.f32 %v4295_v58, %v2202_v14  ;;  %2172 = vmatmul.bf16.gmra.mxu0 %v2044_v52  ;;  %v2046_v14 = vpack.c.bf16 %v2029_v53, %v2028_v50  ;;  %v2301_v52 = vpack.c.bf16 %v2284_v0, %v2283_v54 }
 0x2ac   : > { %2428 = vmatmul.bf16.gmra.mxu1 %v2299_v1 }
 0x2ad   : > { %v2458_v3 = vadd.f32 %v2390_v2, %v2233_v60 }
 0x2ae   : > { %v1837_v16 = vpop.f32.mrf.mxu2 }
 0x2af   : > { %v4344_v21 = vpop.f32.mrf.mxu3  ;;  %v2488_v15 = vmax.f32 %v2458_v3, 0.0 }
 0x2b0   : > { %v2135_v41 = vpop.f32.mrf.mxu0 }
 0x2b1   : > { %v2203_v6 = vadd.f32 %v2135_v41, %v4274_v12  ;;  %v2391_v7 = vpop.f32.mrf.mxu1 }
 0x2b2   : > { %v2392_v31 = vadd.f32 %v4302_v57, %v2391_v7 }
 0x2b3   : > { %v2234_v61 = vadd.f32 %v4295_v58, %v2203_v6 }
 0x2b5   : > { %v2459_v11 = vadd.f32 %v2392_v31, %v2234_v61 }
 0x2b7   : > { %v2489_v37 = vmax.f32 %v2459_v11, 0.0  ;;  %v4351_v27 = vpop.f32.mrf.mxu3 }
 0x2b8   : > { %v2138_v17 = vpop.f32.mrf.mxu0 }
 0x2b9   : > { %v2204_v18 = vadd.f32 %v2138_v17, %v4276_v20  ;;  %v4348_v24 = vpack.c.bf16 %v2489_v37, %v2488_v15  ;;  %v2394_v26 = vpop.f32.mrf.mxu1  ;;  %v4357_v20 = vpop.f32.mrf.mxu2  ;;  %v2047_v37 = vpack.c.bf16 %v2031_v13, %v2030_v9 }
 0x2ba   : > { %v2395_v32 = vadd.f32 %v4302_v57, %v2394_v26 }
 0x2bb   : > { %v2235_v12 = vadd.f32 %v4295_v58, %v2204_v18  ;;  %2177 = vmatmul.bf16.gmra.mxu0 %v2045_v19 }
 0x2bc   : > { %2433 = vmatmul.bf16.gmra.mxu1 %v4092_v28 }
 0x2bd   : > { %v2460_v33 = vadd.f32 %v2395_v32, %v2235_v12 }
 0x2bf   : > { %v1969_v56 = vpop.f32.mrf.mxu3  ;;  %v2490_v55 = vmax.f32 %v2460_v33, 0.0  ;;  %v2032_v33 = vld [vmem:[#allocation4 + $0xf1] sm:$0xff] }
 0x2c0   : > { %v2140_v35 = vpop.f32.mrf.mxu0  ;;  %v4361_v48 = vadd.f32 %v1969_v56, %v1837_v16 }
 0x2c1   : > { %v2205_v36 = vadd.f32 %v2140_v35, %v1947_v34  ;;  %v2396_v40 = vpop.f32.mrf.mxu1  ;;  %v1842_v3 = vpop.f32.mrf.mxu2  ;;  %v2033_v34 = vld [vmem:[#allocation4 + $0xf9] sm:$0xff]  ;;  %v2287_v35 = vld [vmem:[#allocation2 + $0xf0] sm:$0xff] }
 0x2c2   : > { %v2397_v44 = vadd.f32 %v4302_v57, %v2396_v40  ;;  %v2048_v40 = vpack.c.bf16 %v2033_v34, %v2032_v33 }
 0x2c3   : > { %v2236_v39 = vadd.f32 %v4295_v58, %v2205_v36  ;;  %v2288_v36 = vld [vmem:[#allocation2 + $0xf8] sm:$0xff] }
 0x2c5   : > { %v2461_v49 = vadd.f32 %v2397_v44, %v2236_v39  ;;  %v2303_v44 = vpack.c.bf16 %v2288_v36, %v2287_v35 }
 0x2c7   : > { %v2491_v22 = vmax.f32 %v2461_v49, 0.0  ;;  %v4367_v2 = vpop.f32.mrf.mxu3 }
 0x2c8   : > { %v2143_v4 = vpop.f32.mrf.mxu0 }
 0x2c9   : > { %v2206_v45 = vadd.f32 %v2143_v4, %v4289_v47  ;;  %v4364_v1 = vpack.c.bf16 %v2491_v22, %v2490_v55  ;;  %v2399_v62 = vpop.f32.mrf.mxu1  ;;  %v4376_v11 = vpop.f32.mrf.mxu2  ;;  %v1965_v4 = vadd.f32 %v4344_v21, %v4331_v46 }
 0x2ca   : > { %v2400_v41 = vadd.f32 %v4302_v57, %v2399_v62 }
 0x2cb   : > { %v2237_v60 = vadd.f32 %v4295_v58, %v2206_v45  ;;  %2182 = vmatmul.bf16.gmra.mxu0 %v2046_v14  ;;  %v1962_v14 = vadd.f32 %v4337_v63, %v4317_v51  ;;  %v1955_v51 = vadd.f32 %v4313_v8, %v4286_v38 }
 0x2cc   : > { %2438 = vmatmul.bf16.gmra.mxu1 %v2301_v52 }
 0x2cd   : > { %v4370_v6 = vadd.f32 %v2400_v41, %v2237_v60  ;;  %v1960_v60 = vadd.f32 %v4328_v42, %v4309_v25  ;;  %v1952_v42 = vadd.f32 %v4306_v10, %v4278_v23 }
 0x2cf   : > { %v1974_v47 = vpop.f32.mrf.mxu3 }
 0x2d0   : > { %v2145_v61 = vpop.f32.mrf.mxu0  ;;  %v4374_v31 = vadd.f32 %v1974_v47, %v1842_v3  ;;  %v1967_v3 = vadd.f32 %v4351_v27, %v4340_v5  ;;  %v1957_v47 = vadd.f32 %v4322_v29, %v4297_v43 }
 0x2d1   : > { %v4372_v7 = vpop.f32.mrf.mxu1  ;;  %v1847_v18 = vpop.f32.mrf.mxu2  ;;  %v2207_v8 = vadd.f32 %v2145_v61, %v1952_v42 }
 0x2d7   : > { %v4378_v17 = vpop.f32.mrf.mxu3 }
 0x2d8   : > { %v2148_v15 = vpop.f32.mrf.mxu0 }
 0x2d9   : > { %v2404_v16 = vpop.f32.mrf.mxu1  ;;  %v4383_v56 = vpop.f32.mrf.mxu2  ;;  %v2208_v5 = vadd.f32 %v2148_v15, %v1955_v51 }
 0x2da   : > { %v2405_v10 = vadd.f32 %v4302_v57, %v2404_v16 }
 0x2db   : > { %2187 = vmatmul.bf16.gmra.mxu0 %v2047_v37  ;;  %v2239_v23 = vadd.f32 %v4295_v58, %v2208_v5 }
 0x2dc   : > { %2443 = vmatmul.bf16.gmra.mxu1 %v4092_v28 }
 0x2dd   : > { %v2464_v16 = vadd.f32 %v2405_v10, %v2239_v23 }
 0x2df   : > { %v1979_v26 = vpop.f32.mrf.mxu3 }
 0x2e0   : > { %v2150_v19 = vpop.f32.mrf.mxu0  ;;  %v4381_v32 = vadd.f32 %v1979_v26, %v1847_v18 }
 0x2e1   : > { %v2406_v12 = vpop.f32.mrf.mxu1  ;;  %v1852_v54 = vpop.f32.mrf.mxu2  ;;  %v2209_v13 = vadd.f32 %v2150_v19, %v1957_v47 }
 0x2e2   : > { %v2407_v15 = vadd.f32 %v4302_v57, %v2406_v12 }
 0x2e3   : > { %v2240_v19 = vadd.f32 %v4295_v58, %v2209_v13 }
 0x2e7   : > { %v4385_v50 = vpop.f32.mrf.mxu3 }
 0x2e8   : > { %v2153_v39 = vpop.f32.mrf.mxu0 }
 0x2e9   : > { %v2409_v49 = vpop.f32.mrf.mxu1  ;;  %v2210_v41 = vadd.f32 %v2153_v39, %v1960_v60  ;;  %v1972_v60 = vadd.f32 %v4367_v2, %v4357_v20 }
 0x2ea   : > { %v2410_v37 = vadd.f32 %v4302_v57, %v2409_v49  ;;  %v2238_v49 = vadd.f32 %v4295_v58, %v2207_v8 }
 0x2eb   : > { %2192 = vmatmul.bf16.gmra.mxu0 %v2048_v40  ;;  %v2241_v27 = vadd.f32 %v4295_v58, %v2210_v41 }
 0x2ec   : > { %2448 = vmatmul.bf16.gmra.mxu1 %v2303_v44 }
 0x2ed   : > { %v2466_v35 = vadd.f32 %v2410_v37, %v2241_v27  ;;  %v1977_v37 = vadd.f32 %v4378_v17, %v4376_v11 }
 0x2ef   : > { %v1984_v0 = vpop.f32.mrf.mxu3 }
 0x2f0   : > { %v2155_v28 = vpop.f32.mrf.mxu0  ;;  %v4387_v55 = vadd.f32 %v1984_v0, %v1852_v54 }
 0x2f1   : > { %v2411_v53 = vpop.f32.mrf.mxu1  ;;  %v2211_v62 = vadd.f32 %v2155_v28, %v1962_v14  ;;  %v2465_v28 = vadd.f32 %v2407_v15, %v2240_v19 }
 0x2f2   : > { %v2412_v18 = vadd.f32 %v4302_v57, %v2411_v53 }
 0x2f3   : > { %v2242_v25 = vadd.f32 %v4295_v58, %v2211_v62  ;;  %v2495_v14 = vmax.f32 %v2465_v28, 0.0  ;;  %v2494_v62 = vmax.f32 %v2464_v16, 0.0  ;;  %v1854_v28 = vpop.f32.mrf.mxu2 }
 0x2f5   : > { %v2467_v33 = vadd.f32 %v2412_v18, %v2242_v25 }
 0x2f7   : > { %v2497_v61 = vmax.f32 %v2467_v33, 0.0 }
 0x2f8   : > { %v2158_v22 = vpop.f32.mrf.mxu0 }
 0x2f9   : > { %v2414_v45 = vpop.f32.mrf.mxu1  ;;  %v2212_v52 = vadd.f32 %v2158_v22, %v1965_v4  ;;  %v2402_v22 = vadd.f32 %v4302_v57, %v4372_v7  ;;  %v2496_v4 = vmax.f32 %v2466_v35, 0.0 }
 0x2fa   : > { %v2415_v46 = vadd.f32 %v4302_v57, %v2414_v45 }
 0x2fb   : > { %v2243_v9 = vadd.f32 %v4295_v58, %v2212_v52  ;;  %v2463_v45 = vadd.f32 %v2402_v22, %v2238_v49 }
 0x2fd   : > { %v2468_v26 = vadd.f32 %v2415_v46, %v2243_v9  ;;  %v2493_v47 = vmax.f32 %v2463_v45, 0.0  ;;  %v2519_v9 = vpack.c.bf16 %v2495_v14, %v2494_v62  ;;  %v1857_v14 = vpop.f32.mrf.mxu2 }
 0x2ff   : > { %v2498_v36 = vmax.f32 %v2468_v26, 0.0 }
 0x300   : > { %v2160_v21 = vpop.f32.mrf.mxu0 }
 0x301   : > { %v2213_v63 = vadd.f32 %v2160_v21, %v1967_v3  ;;  %v2416_v29 = vpop.f32.mrf.mxu1  ;;  %v2492_v21 = vmax.f32 %v4370_v6, 0.0 }
 0x302   : > { %v2417_v38 = vadd.f32 %v4302_v57, %v2416_v29 }
 0x303   : > { %v2244_v43 = vadd.f32 %v4295_v58, %v2213_v63  ;;  %v2518_v13 = vpack.c.bf16 %v2493_v47, %v2492_v21 }
 0x305   : > { %v2469_v34 = vadd.f32 %v2417_v38, %v2244_v43 }
 0x307   : > { %v2499_v39 = vmax.f32 %v2469_v34, 0.0 }
 0x308   : > { %v2163_v40 = vpop.f32.mrf.mxu0 }
 0x309   : > { %v2214_v44 = vadd.f32 %v2163_v40, %v4361_v48  ;;  %v2521_v53 = vpack.c.bf16 %v2499_v39, %v2498_v36  ;;  %v2419_v0 = vpop.f32.mrf.mxu1  ;;  %v2520_v48 = vpack.c.bf16 %v2497_v61, %v2496_v4  ;;  %v1982_v39 = vadd.f32 %v4385_v50, %v4383_v56  ;;  %v1986_v40 = vpop.f32.mrf.mxu3 }
 0x30a   : > { %v2420_v12 = vadd.f32 %v4302_v57, %v2419_v0 }
 0x30b   : > { %v2245_v54 = vadd.f32 %v4295_v58, %v2214_v44  ;;  %2586 = vmatpush.bf16.msra.mxu2 %v2521_v53 }
 0x30d   : > { %v2470_v52 = vadd.f32 %v2420_v12, %v2245_v54 }
 0x30f   : > { %2587 = vmatpush.bf16.msra.mxu2 %v2520_v48  ;;  %v2500_v25 = vmax.f32 %v2470_v52, 0.0 }
 0x310   : > { %v2165_v3 = vpop.f32.mrf.mxu0 }
 0x311   : > { %v2215_v41 = vadd.f32 %v2165_v3, %v1972_v60  ;;  %v2421_v46 = vpop.f32.mrf.mxu1  ;;  %v1989_v56 = vpop.f32.mrf.mxu3 }
 0x312   : > { %v2422_v51 = vadd.f32 %v4302_v57, %v2421_v46 }
 0x313   : > { %v2246_v7 = vadd.f32 %v4295_v58, %v2215_v41  ;;  %2588 = vmatpush.bf16.msra.mxu2 %v2519_v9 }
 0x315   : > { %v2471_v63 = vadd.f32 %v2422_v51, %v2246_v7 }
 0x317   : > { %v2501_v42 = vmax.f32 %v2471_v63, 0.0  ;;  %2589 = vmatpush.bf16.msra.mxu2 %v2518_v13 }
 0x318   : > { %v2168_v20 = vpop.f32.mrf.mxu0 }
 0x319   : > { %v2216_v2 = vadd.f32 %v2168_v20, %v4374_v31  ;;  %v4427_v5 = vpack.c.bf16 %v2501_v42, %v2500_v25  ;;  %v2424_v43 = vpop.f32.mrf.mxu1 }
 0x31a   : > { %v2425_v29 = vadd.f32 %v4302_v57, %v2424_v43 }
 0x31b   : > { %v2247_v27 = vadd.f32 %v4295_v58, %v2216_v2  ;;  %2590 = vmatpush.bf16.msra.mxu2 %v4364_v1 }
 0x31d   : > { %v2472_v6 = vadd.f32 %v2425_v29, %v2247_v27 }
 0x31f   : > { %2591 = vmatpush.bf16.msra.mxu2 %v4348_v24  ;;  %v2502_v33 = vmax.f32 %v2472_v6, 0.0 }
 0x320   : > { %v2170_v18 = vpop.f32.mrf.mxu0 }
 0x321   : > { %v2217_v26 = vadd.f32 %v2170_v18, %v1977_v37  ;;  %v2426_v31 = vpop.f32.mrf.mxu1 }
 0x322   : > { %v2427_v8 = vadd.f32 %v4302_v57, %v2426_v31 }
 0x323   : > { %v2248_v38 = vadd.f32 %v4295_v58, %v2217_v26  ;;  %2592 = vmatpush.bf16.msra.mxu2 %v4334_v59 }
 0x325   : > { %v2473_v19 = vadd.f32 %v2427_v8, %v2248_v38 }
 0x327   : > { %v2503_v34 = vmax.f32 %v2473_v19, 0.0  ;;  %2593 = vmatpush.bf16.msra.mxu2 %v4319_v30 }
 0x328   : > { %v2173_v23 = vpop.f32.mrf.mxu0 }
 0x329   : > { %v2218_v10 = vadd.f32 %v2173_v23, %v4381_v32  ;;  %v4440_v11 = vpack.c.bf16 %v2503_v34, %v2502_v33  ;;  %v2429_v15 = vpop.f32.mrf.mxu1  ;;  %v1990_v34 = vadd.f32 %v1989_v56, %v1857_v14 }
 0x32a   : > { %v2430_v35 = vadd.f32 %v4302_v57, %v2429_v15  ;;  %v1987_v15 = vadd.f32 %v1986_v40, %v1854_v28 }
 0x32b   : > { %2701 = vmatpush.bf16.msrb.mxu2 %v2521_v53  ;;  %v2249_v17 = vadd.f32 %v4295_v58, %v2218_v10 }
 0x32d   : > { %v2474_v36 = vadd.f32 %v2430_v35, %v2249_v17 }
 0x32f   : > { %2702 = vmatpush.bf16.msrb.mxu2 %v2520_v48  ;;  %v2504_v0 = vmax.f32 %v2474_v36, 0.0 }
 0x330   : > { %v2175_v44 = vpop.f32.mrf.mxu0 }
 0x331   : > { %v2219_v49 = vadd.f32 %v2175_v44, %v1982_v39  ;;  %v2431_v61 = vpop.f32.mrf.mxu1 }
 0x332   : > { %v2432_v53 = vadd.f32 %v4302_v57, %v2431_v61 }
 0x333   : > { %2703 = vmatpush.bf16.msrb.mxu2 %v2519_v9  ;;  %v2250_v32 = vadd.f32 %v4295_v58, %v2219_v49 }
 0x335   : > { %v2475_v54 = vadd.f32 %v2432_v53, %v2250_v32 }
 0x337   : > { %2704 = vmatpush.bf16.msrb.mxu2 %v2518_v13  ;;  %v2505_v22 = vmax.f32 %v2475_v54, 0.0 }
 0x338   : > { %v2178_v16 = vpop.f32.mrf.mxu0 }
 0x339   : > { %v2220_v4 = vadd.f32 %v2178_v16, %v4387_v55  ;;  %v4450_v50 = vpack.c.bf16 %v2505_v22, %v2504_v0  ;;  %v2434_v45 = vpop.f32.mrf.mxu1  ;;  %v1991_v55 = vpop.f32.mrf.mxu3 }
 0x33a   : > { %v2435_v52 = vadd.f32 %v4302_v57, %v2434_v45 }
 0x33b   : > { %2705 = vmatpush.bf16.msrb.mxu2 %v4364_v1  ;;  %v2251_v12 = vadd.f32 %v4295_v58, %v2220_v4  ;;  %v1859_v1 = vpop.f32.mrf.mxu2 }
 0x33c   : > { %v1992_v31 = vadd.f32 %v1991_v55, %v1859_v1 }
 0x33d   : > { %v4455_v48 = vadd.f32 %v2435_v52, %v2251_v12 }
 0x33f   : > { %2706 = vmatpush.bf16.msrb.mxu2 %v4348_v24 }
 0x340   : > { %v2180_v60 = vpop.f32.mrf.mxu0 }
 0x341   : > { %v2436_v62 = vpop.f32.mrf.mxu1  ;;  %v1994_v47 = vpop.f32.mrf.mxu3  ;;  %v2221_v54 = vadd.f32 %v2180_v60, %v1987_v15  ;;  %v3722_v15 = vld [vmem:[%s4666_s6 + $0x44] sm:$0xf] }
 0x342   : > { %v2437_v60 = vadd.f32 %v4302_v57, %v2436_v62  ;;  %v2506_v62 = vmax.f32 %v4455_v48, 0.0  ;;  %v3714_v48 = vld [vmem:[%s4666_s6 + $0x4] sm:$0xf] }
 0x343   : > { %2707 = vmatpush.bf16.msrb.mxu2 %v4334_v59  ;;  %v1862_v9 = vpop.f32.mrf.mxu2  ;;  %v2252_v14 = vadd.f32 %v4295_v58, %v2221_v54  ;;  %v3541_v54 = vld [vmem:[%s4666_s6 + $0x70] sm:$0xf] }
 0x344   : > { %v1995_v6 = vadd.f32 %v1994_v47, %v1862_v9 }
 0x345   : > { %v2477_v9 = vadd.f32 %v2437_v60, %v2252_v14 }
 0x347   : > { %2708 = vmatpush.bf16.msrb.mxu2 %v4319_v30 }
 0x348   : > { %v2183_v3 = vpop.f32.mrf.mxu0 }
 0x349   : > { %v2439_v41 = vpop.f32.mrf.mxu1  ;;  %v1996_v21 = vpop.f32.mrf.mxu3  ;;  %v2222_v35 = vadd.f32 %v2183_v3, %v1990_v34 }
 0x34a   : > { %v2440_v28 = vadd.f32 %v4302_v57, %v2439_v41  ;;  %v3473_v41 = vld [vmem:[%s4666_s6] sm:$0xf] }
 0x34b   : > { %v1864_v63 = vpop.f32.mrf.mxu2  ;;  %v2253_v40 = vadd.f32 %v4295_v58, %v2222_v35  ;;  %v3519_v35 = vld [vmem:[%s4666_s6 + $0x48] sm:$0xf0] }
 0x34c   : > { %v1997_v43 = vadd.f32 %v1996_v21, %v1864_v63  ;;  %v2507_v63 = vmax.f32 %v2477_v9, 0.0 }
 0x34d   : > { %v2478_v3 = vadd.f32 %v2440_v28, %v2253_v40  ;;  %v3535_v40 = vld [vmem:[%s4666_s6 + $0x68] sm:$0xf0] }
 0x350   : > { %v2185_v7 = vpop.f32.mrf.mxu0 }
 0x351   : > { %v2441_v46 = vpop.f32.mrf.mxu1  ;;  %v1999_v25 = vpop.f32.mrf.mxu3  ;;  %v2223_v10 = vadd.f32 %v2185_v7, %v1992_v31  ;;  %v3517_v31 = vld [vmem:[%s4666_s6 + $0x40] sm:$0xf] }
 0x352   : > { %v2442_v4 = vadd.f32 %v4302_v57, %v2441_v46  ;;  %v3715_v46 = vld [vmem:[%s4666_s6 + $0x4] sm:$0xf0] }
 0x353   : > { %v1867_v20 = vpop.f32.mrf.mxu2  ;;  %v2254_v0 = vadd.f32 %v4295_v58, %v2223_v10  ;;  %v3725_v10 = vld [vmem:[%s4666_s6 + $0x54] sm:$0xf0] }
 0x354   : > { %v2000_v2 = vadd.f32 %v1999_v25, %v1867_v20  ;;  %v3717_v25 = vld [vmem:[%s4666_s6 + $0x14] sm:$0xf0]  ;;  %v3475_v20 = vld [vmem:[%s4666_s6 + $0x8] sm:$0xf0] }
 0x355   : > { %v2479_v52 = vadd.f32 %v2442_v4, %v2254_v0  ;;  %v3729_v0 = vld [vmem:[%s4666_s6 + $0x74] sm:$0xf0]  ;;  %v3728_v4 = vld [vmem:[%s4666_s6 + $0x74] sm:$0xf] }
 0x357   : > { %v2509_v7 = vmax.f32 %v2479_v52, 0.0 }
 0x358   : > { %v2188_v51 = vpop.f32.mrf.mxu0 }
 0x359   : > { %v2444_v24 = vpop.f32.mrf.mxu1  ;;  %v2001_v30 = vpop.f32.mrf.mxu3  ;;  %v2224_v38 = vadd.f32 %v2188_v51, %v1995_v6  ;;  %v2508_v51 = vmax.f32 %v2478_v3, 0.0 }
 0x35a   : > { %v2445_v49 = vadd.f32 %v4302_v57, %v2444_v24  ;;  %v2525_v24 = vpack.c.bf16 %v2507_v63, %v2506_v62 }
 0x35b   : > { %v1869_v37 = vpop.f32.mrf.mxu2  ;;  %v2255_v36 = vadd.f32 %v4295_v58, %v2224_v38  ;;  %v3718_v38 = vld [vmem:[%s4666_s6 + $0x24] sm:$0xf] }
 0x35c   : > { %v2002_v26 = vadd.f32 %v2001_v30, %v1869_v37  ;;  %v3716_v30 = vld [vmem:[%s4666_s6 + $0x14] sm:$0xf]  ;;  %v3497_v37 = vld [vmem:[%s4666_s6 + $0x30] sm:$0xf] }
 0x35d   : > { %v2480_v56 = vadd.f32 %v2445_v49, %v2255_v36  ;;  %v3522_v36 = vor.u32 %v3722_v15, %v3519_v35 }
 0x35f   : > { %v2510_v47 = vmax.f32 %v2480_v56, 0.0  ;;  %v3543_v56 = vld [vmem:[%s4666_s6 + $0x78] sm:$0xf0] }
 0x360   : > { %v2190_v13 = vpop.f32.mrf.mxu0 }
 0x361   : > { %v2446_v42 = vpop.f32.mrf.mxu1  ;;  %v2225_v18 = vadd.f32 %v2190_v13, %v1997_v43  ;;  %v3481_v13 = vld [vmem:[%s4666_s6 + $0x10] sm:$0xf] }
 0x362   : > { %v2447_v32 = vadd.f32 %v4302_v57, %v2446_v42  ;;  %v3482_v42 = vor.u32 %v3717_v25, %v3481_v13  ;;  %v3743_v13 = vld [vmem:[%s4667_s7 + $0x68] sm:$0xff]  ;;  %v3734_v25 = vld [vmem:[%s4667_s7 + $0x20] sm:$0xff] }
 0x363   : > { %v2256_v17 = vadd.f32 %v4295_v58, %v2225_v18  ;;  %v3721_v18 = vld [vmem:[%s4666_s6 + $0x34] sm:$0xf0] }
 0x365   : > { %v2481_v22 = vadd.f32 %v2447_v32, %v2256_v17  ;;  %v3724_v32 = vld [vmem:[%s4666_s6 + $0x54] sm:$0xf] }
 0x367   : > { %v2511_v55 = vmax.f32 %v2481_v22, 0.0  ;;  %v3542_v22 = vor.u32 %v3729_v0, %v3541_v54 }
 0x368   : > { %v2193_v59 = vpop.f32.mrf.mxu0 }
 0x369   : > { %v2449_v27 = vpop.f32.mrf.mxu1  ;;  %v2226_v29 = vadd.f32 %v2193_v59, %v2000_v2  ;;  %v2527_v21 = vpack.c.bf16 %v2511_v55, %v2510_v47  ;;  %v3478_v59 = vor.u32 %v3714_v48, %v3475_v20  ;;  %v3489_v2 = vld [vmem:[%s4666_s6 + $0x20] sm:$0xf] }
 0x36a   : > { %v2450_v19 = vadd.f32 %v4302_v57, %v2449_v27  ;;  %v3719_v27 = vld [vmem:[%s4666_s6 + $0x24] sm:$0xf0] }
 0x36b   : > { %v2257_v8 = vadd.f32 %v4295_v58, %v2226_v29  ;;  %v3490_v43 = vor.u32 %v3719_v27, %v3489_v2  ;;  %v3483_v29 = vld [vmem:[%s4666_s6 + $0x18] sm:$0xf0] }
 0x36c   : > { %v3486_v6 = vor.u32 %v3716_v30, %v3483_v29  ;;  %v3733_v2 = vld [vmem:[%s4667_s7 + $0x18] sm:$0xff]  ;;  %v3740_v30 = vld [vmem:[%s4667_s7 + $0x50] sm:$0xff] }
 0x36d   : > { %v2482_v61 = vadd.f32 %v2450_v19, %v2257_v8  ;;  %v3720_v19 = vld [vmem:[%s4666_s6 + $0x34] sm:$0xf]  ;;  %v3741_v27 = vld [vmem:[%s4667_s7 + $0x58] sm:$0xff] }
 0x36f   : > { %v2512_v12 = vmax.f32 %v2482_v61, 0.0  ;;  %v3527_v61 = vld [vmem:[%s4666_s6 + $0x58] sm:$0xf0] }
 0x370   : > { %v2195_v33 = vpop.f32.mrf.mxu0 }
 0x371   : > { %v2227_v23 = vadd.f32 %v2195_v33, %v2002_v26  ;;  %v2451_v44 = vpop.f32.mrf.mxu1  ;;  %v3498_v26 = vor.u32 %v3721_v18, %v3497_v37  ;;  %v3499_v33 = vld [vmem:[%s4666_s6 + $0x38] sm:$0xf0]  ;;  %v3731_v18 = vld [vmem:[%s4667_s7 + $0x8] sm:$0xff] }
 0x372   : > { %v2452_v53 = vadd.f32 %v4302_v57, %v2451_v44  ;;  %v2526_v57 = vpack.c.bf16 %v2509_v7, %v2508_v51  ;;  %v3502_v34 = vor.u32 %v3720_v19, %v3499_v33  ;;  %v3727_v44 = vld [vmem:[%s4666_s6 + $0x64] sm:$0xf0]  ;;  %v3744_v51 = vld [vmem:[%s4667_s7 + $0x70] sm:$0xff] }
 0x373   : > { %v2258_v39 = vadd.f32 %v4295_v58, %v2227_v23  ;;  %v3474_v58 = vor.u32 %v3715_v46, %v3473_v41  ;;  %v3525_v23 = vld [vmem:[%s4666_s6 + $0x50] sm:$0xf]  ;;  %v3737_v41 = vld [vmem:[%s4667_s7 + $0x38] sm:$0xff] }
 0x374   : > { %v3526_v17 = vor.u32 %v3725_v10, %v3525_v23  ;;  %v3745_v46 = vld [vmem:[%s4667_s7 + $0x78] sm:$0xff] }
 0x375   : > { %v2483_v16 = vadd.f32 %v2452_v53, %v2258_v39  ;;  %2594 = vmatmul.bf16.vlgmr.msra.gmra.mxu2 %v3474_v58  ;;  %v3533_v39 = vld [vmem:[%s4666_s6 + $0x60] sm:$0xf]  ;;  %v3530_v53 = vor.u32 %v3724_v32, %v3527_v61  ;;  %v3736_v58 = vld [vmem:[%s4667_s7 + $0x30] sm:$0xff] }
 0x376   : > { %v3534_v49 = vor.u32 %v3727_v44, %v3533_v39  ;;  %2835 = vmatpush.bf16.msra.mxu2 %v3737_v41 }
 0x377   : > { %v2513_v45 = vmax.f32 %v2483_v16, 0.0  ;;  %v3726_v16 = vld [vmem:[%s4666_s6 + $0x64] sm:$0xf] }
 0x378   : > { %v3538_v28 = vor.u32 %v3726_v16, %v3535_v40 }
 0x379   : > { %v2528_v1 = vpack.c.bf16 %v2513_v45, %v2512_v12  ;;  %v3546_v12 = vor.u32 %v3728_v4, %v3543_v56 }
 0x37a   : > { %2836 = vmatpush.bf16.msra.mxu2 %v3736_v58 }
 0x37b   : > { %2616 = vmatpush.bf16.msra.mxu3 %v2528_v1 }
 0x37f   : > { %2617 = vmatpush.bf16.msra.mxu3 %v2527_v21 }
 0x383   : > { %2618 = vmatpush.bf16.msra.mxu3 %v2526_v57 }
 0x385   : > { %2599 = vmatmul.bf16.gmra.mxu2 %v3482_v42  ;;  %v3742_v42 = vld [vmem:[%s4667_s7 + $0x60] sm:$0xff] }
 0x387   : > { %2619 = vmatpush.bf16.msra.mxu3 %v2525_v24 }
 0x38b   : > { %2620 = vmatpush.bf16.msra.mxu3 %v4450_v50 }
 0x38f   : > { %2621 = vmatpush.bf16.msra.mxu3 %v4440_v11 }
 0x393   : > { %2622 = vmatpush.bf16.msra.mxu3 %v4427_v5 }
 0x395   : > { %2604 = vmatmul.bf16.gmra.mxu2 %v3490_v43  ;;  %v3732_v43 = vld [vmem:[%s4667_s7 + $0x10] sm:$0xff] }
 0x396   : > { %3503 = vmatmul.msk.bf16.vlgmr.msra.gmra.mxu3 %vm2573_vm0, %v3478_v59 }
 0x397   : > { %2731 = vmatpush.bf16.msrb.mxu3 %v2528_v1 }
 0x39b   : > { %2732 = vmatpush.bf16.msrb.mxu3 %v2527_v21 }
 0x39f   : > { %2733 = vmatpush.bf16.msrb.mxu3 %v2526_v57 }
 0x3a3   : > { %2734 = vmatpush.bf16.msrb.mxu3 %v2525_v24  ;;  %v3735_v24 = vld [vmem:[%s4667_s7 + $0x28] sm:$0xff] }
 0x3a4   : > { %2837 = vmatpush.bf16.msra.mxu2 %v3735_v24 }
 0x3a5   : > { %2609 = vmatmul.bf16.gmra.mxu2 %v3498_v26  ;;  %v3739_v26 = vld [vmem:[%s4667_s7 + $0x48] sm:$0xff] }
 0x3a6   : > { %3504 = vmatmul.msk.bf16.gmra.mxu3 %vm2573_vm0, %v3486_v6 }
 0x3a7   : > { %2735 = vmatpush.bf16.msrb.mxu3 %v4450_v50  ;;  %v3491_v50 = vld [vmem:[%s4666_s6 + $0x28] sm:$0xf0] }
 0x3a8   : > { %2838 = vmatpush.bf16.msra.mxu2 %v3734_v25 }
 0x3ab   : > { %2736 = vmatpush.bf16.msrb.mxu3 %v4440_v11  ;;  %v3494_v11 = vor.u32 %v3718_v38, %v3491_v50  ;;  %v3730_v38 = vld [vmem:[%s4667_s7] sm:$0xff] }
 0x3ac   : > { %2839 = vmatpush.bf16.msra.mxu2 %v3733_v2  ;;  %v3738_v50 = vld [vmem:[%s4667_s7 + $0x40] sm:$0xff] }
 0x3af   : > { %2737 = vmatpush.bf16.msrb.mxu3 %v4427_v5  ;;  %v3723_v5 = vld [vmem:[%s4666_s6 + $0x44] sm:$0xf0] }
 0x3b0   : > { %v3518_v8 = vor.u32 %v3723_v5, %v3517_v31  ;;  %2840 = vmatpush.bf16.msra.mxu2 %v3732_v43 }
 0x3b3   : > { %2929 = vmatpush.bf16.msra.mxu3 %v3745_v46 }
 0x3b4   : > { %2841 = vmatpush.bf16.msra.mxu2 %v3731_v18 }
 0x3b5   : > { %2709 = vmatmul.bf16.vlgmr.msrb.gmra.mxu2 %v3518_v8 }
 0x3b6   : > { %3505 = vmatmul.msk.bf16.gmra.mxu3 %vm2573_vm0, %v3494_v11 }
 0x3b7   : > { %2930 = vmatpush.bf16.msra.mxu3 %v3744_v51 }
 0x3b8   : > { %2842 = vmatpush.bf16.msra.mxu2 %v3730_v38 }
 0x3bb   : > { %2931 = vmatpush.bf16.msra.mxu3 %v3743_v13 }
 0x3bf   : > { %2932 = vmatpush.bf16.msra.mxu3 %v3742_v42 }
 0x3c3   : > { %2933 = vmatpush.bf16.msra.mxu3 %v3741_v27 }
 0x3c5   : > { %2714 = vmatmul.bf16.gmra.mxu2 %v3526_v17 }
 0x3c6   : > { %3506 = vmatmul.msk.bf16.gmra.mxu3 %vm2573_vm0, %v3502_v34 }
 0x3c7   : > { %2934 = vmatpush.bf16.msra.mxu3 %v3740_v30 }
 0x3cb   : > { %2935 = vmatpush.bf16.msra.mxu3 %v3739_v26 }
 0x3cf   : > { %2936 = vmatpush.bf16.msra.mxu3 %v3738_v50 }
 0x3d5   : > { %2719 = vmatmul.bf16.gmra.mxu2 %v3534_v49 }
 0x3d6   : > { %3547 = vmatmul.msk.bf16.vlgmr.msrb.gmra.mxu3 %vm2573_vm0, %v3522_v36 }
 0x3e5   : > { %2724 = vmatmul.bf16.gmra.mxu2 %v3542_v22 }
 0x3e6   : > { %3548 = vmatmul.msk.bf16.gmra.mxu3 %vm2573_vm0, %v3530_v53 }
 0x3f6   : > { %3549 = vmatmul.msk.bf16.gmra.mxu3 %vm2573_vm0, %v3538_v28 }
 0x3f8   : > { %v2595_v45 = vpop.f32.mrf.mxu2 }
 0x400   : > { %v2597_v14 = vpop.f32.mrf.mxu2 }
 0x406   : > { %3550 = vmatmul.msk.bf16.gmra.mxu3 %vm2573_vm0, %v3546_v12 }
 0x408   : > { %v2600_v52 = vpop.f32.mrf.mxu2 }
 0x410   : > { %v2602_v60 = vpop.f32.mrf.mxu2 }
 0x418   : > { %v2605_v9 = vpop.f32.mrf.mxu2 }
 0x419   : > { %v2624_v55 = vpop.f32.mrf.mxu3 }
 0x41a   : > { %v2625_v1 = vadd.f32 %v2624_v55, %v2595_v45 }
 0x420   : > { %v2607_v63 = vpop.f32.mrf.mxu2 }
 0x421   : > { %v2626_v3 = vpop.f32.mrf.mxu3 }
 0x422   : > { %v2627_v47 = vadd.f32 %v2626_v3, %v2597_v14 }
 0x428   : > { %v2610_v48 = vpop.f32.mrf.mxu2 }
 0x429   : > { %v2629_v7 = vpop.f32.mrf.mxu3 }
 0x42a   : > { %v4584_v21 = vadd.f32 %v2629_v7, %v2600_v52 }
 0x430   : > { %v2612_v6 = vpop.f32.mrf.mxu2 }
 0x431   : > { %v2631_v57 = vpop.f32.mrf.mxu3 }
 0x432   : > { %v2632_v62 = vadd.f32 %v2631_v57, %v2602_v60 }
 0x438   : > { %v2710_v5 = vpop.f32.mrf.mxu2 }
 0x439   : > { %v2634_v20 = vpop.f32.mrf.mxu3 }
 0x43a   : > { %v2635_v59 = vadd.f32 %v2634_v20, %v2605_v9 }
 0x440   : > { %v2712_v33 = vpop.f32.mrf.mxu2 }
 0x441   : > { %v2636_v29 = vpop.f32.mrf.mxu3 }
 0x442   : > { %v2637_v37 = vadd.f32 %v2636_v29, %v2607_v63 }
 0x448   : > { %v2715_v23 = vpop.f32.mrf.mxu2 }
 0x449   : > { %v2639_v11 = vpop.f32.mrf.mxu3 }
 0x44a   : > { %v2640_v31 = vadd.f32 %v2639_v11, %v2610_v48 }
 0x450   : > { %v2717_v49 = vpop.f32.mrf.mxu2 }
 0x451   : > { %v2641_v8 = vpop.f32.mrf.mxu3 }
 0x452   : > { %v2642_v19 = vadd.f32 %v2641_v8, %v2612_v6 }
 0x458   : > { %v2720_v54 = vpop.f32.mrf.mxu2 }
 0x459   : > { %v2739_v34 = vpop.f32.mrf.mxu3 }
 0x45a   : > { %v2740_v10 = vadd.f32 %v2739_v34, %v2710_v5 }
 0x45c   : > { %v2759_v35 = vmax.f32 %v2625_v1, %v2740_v10 }
 0x460   : > { %v2722_v28 = vpop.f32.mrf.mxu2 }
 0x461   : > { %v2741_v17 = vpop.f32.mrf.mxu3 }
 0x462   : > { %v2742_v15 = vadd.f32 %v2741_v17, %v2712_v33 }
 0x464   : > { %v2760_v36 = vmax.f32 %v2627_v47, %v2742_v15 }
 0x466   : > { %v2767_v39 = vpack.c.bf16 %v2760_v36, %v2759_v35 }
 0x468   : > { %2843 = vmatmul.bf16.vlgmr.msra.gmra.mxu2 %v2767_v39  ;;  %2937 = vmatmul.bf16.vlgmr.msra.gmra.mxu3 %v2767_v39  ;;  %v2725_v55 = vpop.f32.mrf.mxu2 }
 0x469   : > { %v2744_v44 = vpop.f32.mrf.mxu3 }
 0x46a   : > { %v2745_v32 = vadd.f32 %v2744_v44, %v2715_v23 }
 0x46c   : > { %v2761_v0 = vmax.f32 %v4584_v21, %v2745_v32 }
 0x470   : > { %v2727_v3 = vpop.f32.mrf.mxu2 }
 0x471   : > { %v2746_v61 = vpop.f32.mrf.mxu3 }
 0x472   : > { %v2747_v53 = vadd.f32 %v2746_v61, %v2717_v49 }
 0x474   : > { %v2762_v22 = vmax.f32 %v2632_v62, %v2747_v53 }
 0x476   : > { %v2768_v16 = vpack.c.bf16 %v2762_v22, %v2761_v0 }
 0x478   : > { %2848 = vmatmul.bf16.gmra.mxu2 %v2768_v16  ;;  %2942 = vmatmul.bf16.gmra.mxu3 %v2768_v16 }
 0x479   : > { %v2749_v40 = vpop.f32.mrf.mxu3 }
 0x47a   : > { %v2750_v4 = vadd.f32 %v2749_v40, %v2720_v54 }
 0x47c   : > { %v2763_v45 = vmax.f32 %v2635_v59, %v2750_v4 }
 0x481   : > { %v2751_v56 = vpop.f32.mrf.mxu3 }
 0x482   : > { %v2752_v12 = vadd.f32 %v2751_v56, %v2722_v28 }
 0x484   : > { %v2764_v14 = vmax.f32 %v2637_v37, %v2752_v12 }
 0x486   : > { %v2769_v52 = vpack.c.bf16 %v2764_v14, %v2763_v45 }
 0x488   : > { %2853 = vmatmul.bf16.gmra.mxu2 %v2769_v52  ;;  %2947 = vmatmul.bf16.gmra.mxu3 %v2769_v52 }
 0x489   : > { %v2754_v1 = vpop.f32.mrf.mxu3 }
 0x48a   : > { %v2755_v60 = vadd.f32 %v2754_v1, %v2725_v55 }
 0x48c   : > { %v2765_v7 = vmax.f32 %v2640_v31, %v2755_v60 }
 0x491   : > { %v2756_v47 = vpop.f32.mrf.mxu3 }
 0x492   : > { %v2757_v9 = vadd.f32 %v2756_v47, %v2727_v3 }
 0x494   : > { %v2766_v21 = vmax.f32 %v2642_v19, %v2757_v9 }
 0x496   : > { %v2770_v41 = vpack.c.bf16 %v2766_v21, %v2765_v7 }
 0x498   : > { %2858 = vmatmul.bf16.gmra.mxu2 %v2770_v41  ;;  %2952 = vmatmul.bf16.gmra.mxu3 %v2770_v41 }
 0x4eb   : > { %v2844_v46 = vpop.f32.mrf.mxu2  ;;  %v2938_v58 = vpop.f32.mrf.mxu3 }
 0x4ec   : > { %v2958_v51 = vmax.f32 %v2844_v46, %v2938_v58 }
 0x4ee   : > { %2967 = vst.msk [vmem:[%s4639_s21] sm:$0xff] %vm2966_vm1, %v2958_v51 }
 0x4f3   : > { %v2846_v63 = vpop.f32.mrf.mxu2  ;;  %v2940_v57 = vpop.f32.mrf.mxu3 }
 0x4f4   : > { %v2959_v62 = vmax.f32 %v2846_v63, %v2940_v57 }
 0x4f6   : > { %2968 = vst.msk [vmem:[%s4639_s21 + $0x8] sm:$0xff] %vm2966_vm1, %v2959_v62 }
 0x4fb   : > { %v2849_v24 = vpop.f32.mrf.mxu2  ;;  %v2943_v13 = vpop.f32.mrf.mxu3 }
 0x4fc   : > { %v2960_v25 = vmax.f32 %v2849_v24, %v2943_v13 }
 0x4fe   : > { %2969 = vst.msk [vmem:[%s4639_s21 + $0x10] sm:$0xff] %vm2966_vm1, %v2960_v25 }
 0x503   : > { %v2851_v42 = vpop.f32.mrf.mxu2  ;;  %v2945_v48 = vpop.f32.mrf.mxu3 }
 0x504   : > { %v2961_v20 = vmax.f32 %v2851_v42, %v2945_v48 }
 0x506   : > { %2970 = vst.msk [vmem:[%s4639_s21 + $0x18] sm:$0xff] %vm2966_vm1, %v2961_v20 }
 0x50b   : > { %v2854_v59 = vpop.f32.mrf.mxu2  ;;  %v2948_v2 = vpop.f32.mrf.mxu3 }
 0x50c   : > { %v2962_v27 = vmax.f32 %v2854_v59, %v2948_v2 }
 0x50e   : > { %2971 = vst.msk [vmem:[%s4639_s21 + $0x20] sm:$0xff] %vm2966_vm1, %v2962_v27 }
 0x513   : > { %v2856_v43 = vpop.f32.mrf.mxu2  ;;  %v2950_v30 = vpop.f32.mrf.mxu3 }
 0x514   : > { %v2963_v29 = vmax.f32 %v2856_v43, %v2950_v30 }
 0x516   : > { %2972 = vst.msk [vmem:[%s4639_s21 + $0x28] sm:$0xff] %vm2966_vm1, %v2963_v29 }
 0x51b   : > { %v2859_v6 = vpop.f32.mrf.mxu2  ;;  %v2953_v37 = vpop.f32.mrf.mxu3 }
 0x51c   : > { %v2964_v18 = vmax.f32 %v2859_v6, %v2953_v37 }
 0x51e   : > { %2973 = vst.msk [vmem:[%s4639_s21 + $0x30] sm:$0xff] %vm2966_vm1, %v2964_v18 }
 0x523   : > { %v2861_v26 = vpop.f32.mrf.mxu2  ;;  %v2955_v38 = vpop.f32.mrf.mxu3 }
 0x524   : > { %v2965_v50 = vmax.f32 %v2861_v26, %v2955_v38 }
 0x526   : > { %2974 = vst.msk [vmem:[%s4639_s21 + $0x38] sm:$0xff] %vm2966_vm1, %v2965_v50 }
 0x527 PF: > { %s18_s27 = sadd.s32 1, %s3766_s27  }
 0x528   : > { %p15_p4 = scmp.ge.s32.totalorder %s18_s27, 4  }
 0x52a   :  { %17 = sbr.rel (!%p15_p4) target bundleno = 1 (0x1), region = 97 }

</bundles_post_ra>
